<compile_context>
chip_gen: v5e
topology: v5e:2x2
jax: 0.10.0
libtpu: 0.0.40
codegen_flags: <defaults>
</compile_context>

<pallas_src>
import jax
import jax.numpy as jnp
from jax.experimental import pallas as pl
from jax.experimental.pallas import tpu as pltpu

EPS = 1e-5
LANES = 128


def _round_up(x, m):
    return (x + m - 1) // m * m


def _arm_kernel(x_ref, wc_ref, s1_ref, b1_ref, wa_ref, s2_ref, b2_ref,
                o_ref, xpad_ref, col_ref):
    """One batch element per grid step.

    x_ref   : (1, H, W, Cin)       unpadded input tile (f32)
    wc_ref  : (9*Cp, Kp)           3x3 conv weight, tap-major rows, bf16, zero padded
    s1/b1   : (1, Kp)              folded BN1 scale / bias (f32)
    wa_ref  : (Kp, Kp)             1x1 attention conv weight (in, out), bf16
    s2/b2   : (1, Kp)              folded BN2 scale / bias (f32)
    o_ref   : (1, H, W, Kp)        output tile
    xpad_ref: (H+2, W+2, Cp) f32   VMEM scratch: spatial halo + channel padding
    col_ref : (H, W, 9*Cp)   bf16  VMEM scratch: im2col buffer
    """
    _, H, W, Cin = x_ref.shape
    Cp = xpad_ref.shape[-1]
    Kp = o_ref.shape[-1]

    # --- zero halo + lane padding built on-chip (no HBM pad pass) ---
    xpad_ref[...] = jnp.zeros_like(xpad_ref)
    xpad_ref[1:H + 1, 1:W + 1, :Cin] = x_ref[0]

    # --- im2col: the 9 shifted windows laid side by side on the lane axis ---
    for ky in range(3):
        for kx in range(3):
            t = ky * 3 + kx
            col_ref[:, :, t * Cp:(t + 1) * Cp] = (
                xpad_ref[ky:ky + H, kx:kx + W, :].astype(jnp.bfloat16))

    # --- 3x3 conv as ONE big-K MXU matmul: (H*W, 9*Cp) x (9*Cp, Kp) ---
    im2col = col_ref[...].reshape(H * W, 9 * Cp)   # layout-free (W % 8 == 0 here)
    acc = jnp.dot(im2col, wc_ref[...], preferred_element_type=jnp.float32)

    # --- folded BN1 + ReLU (f32 VPU math) ---
    feat = jnp.maximum(acc * s1_ref[...] + b1_ref[...], 0.0)      # (H*W, Kp)

    # --- adaptive_avg_pool2d(feat, 1) -> 1x1 conv -> BN2 -> sigmoid ---
    pooled = jnp.mean(feat, axis=0, keepdims=True)                # (1, Kp)
    att = jnp.dot(pooled.astype(jnp.bfloat16), wa_ref[...],
                  preferred_element_type=jnp.float32)
    att = jax.nn.sigmoid(att * s2_ref[...] + b2_ref[...])         # (1, Kp)

    # --- channel-wise reweighting; lane-dense (Kp % 128 == 0) output store ---
    o_ref[...] = (feat * att).reshape(1, H, W, Kp).astype(o_ref.dtype)


def _fold_bn(gamma, beta, mean, var):
    scale = gamma / jnp.sqrt(var + EPS)
    return scale, beta - mean * scale


def attention_refinement_module(x_nchw, params):
    """Pallas forward of AttentionRefinementModule. x_nchw: (N, Cin, H, W) -> (N, Cout, H, W)."""
    N, Cin, H, W = x_nchw.shape
    Cout = params["w_conv"].shape[0]
    Cp = _round_up(Cin, LANES)      # lane-dense input channels
    Kp = _round_up(Cout, LANES)     # lane-dense output channels

    # glue: NCHW -> NHWC so channels sit on the TPU lane axis
    # TODO(synk): accept NHWC at the API boundary to drop this extra HBM pass.
    x_nhwc = jnp.transpose(x_nchw, (0, 2, 3, 1))

    # 3x3 conv weight (Cout, Cin, 3, 3) -> tap-major (9*Cp, Kp), zero padded, bf16.
    wc = jnp.transpose(params["w_conv"], (2, 3, 1, 0)).reshape(9, Cin, Cout)
    wc = jnp.zeros((9, Cp, Kp), jnp.float32).at[:, :Cin, :Cout].set(wc)
    wc = wc.reshape(9 * Cp, Kp).astype(jnp.bfloat16)

    # 1x1 attention conv weight (Cout, Cout, 1, 1) -> (in=Kp, out=Kp), bf16.
    wa = jnp.transpose(params["w_att"][:, :, 0, 0], (1, 0))
    wa = jnp.zeros((Kp, Kp), jnp.float32).at[:Cout, :Cout].set(wa).astype(jnp.bfloat16)

    # Fold eval-mode BN into scale/bias, zero-padded to Kp lanes
    # (padded channels then produce feat == 0, so the final slice is exact).
    s1, b1 = _fold_bn(params["g1"], params["b1"], params["m1"], params["v1"])
    s2, b2 = _fold_bn(params["g2"], params["b2"], params["m2"], params["v2"])
    pad_vec = lambda v: jnp.zeros((1, Kp), jnp.float32).at[0, :Cout].set(v)
    s1, b1, s2, b2 = pad_vec(s1), pad_vec(b1), pad_vec(s2), pad_vec(b2)

    flops = 2 * N * H * W * (9 * Cin) * Cout + 2 * N * Cout * Cout
    bytes_accessed = (x_nchw.size * 4 + N * H * W * Kp * 4
                      + wc.size * 2 + wa.size * 2 + 4 * Kp * 4)

    out_nhwc = pl.pallas_call(
        _arm_kernel,
        out_shape=jax.ShapeDtypeStruct((N, H, W, Kp), x_nchw.dtype),
        grid=(N,),
        in_specs=[
            pl.BlockSpec((1, H, W, Cin), lambda n: (n, 0, 0, 0)),
            pl.BlockSpec((9 * Cp, Kp), lambda n: (0, 0)),
            pl.BlockSpec((1, Kp), lambda n: (0, 0)),
            pl.BlockSpec((1, Kp), lambda n: (0, 0)),
            pl.BlockSpec((Kp, Kp), lambda n: (0, 0)),
            pl.BlockSpec((1, Kp), lambda n: (0, 0)),
            pl.BlockSpec((1, Kp), lambda n: (0, 0)),
        ],
        out_specs=pl.BlockSpec((1, H, W, Kp), lambda n: (n, 0, 0, 0)),
        scratch_shapes=[
            pltpu.VMEM((H + 2, W + 2, Cp), jnp.float32),   # halo-padded input
            pltpu.VMEM((H, W, 9 * Cp), jnp.bfloat16),      # im2col buffer
        ],
        compiler_params=pltpu.CompilerParams(
            dimension_semantics=("parallel",),             # batch across TCs (v7x megacore)
            vmem_limit_bytes=32 * 1024 * 1024),
        cost_estimate=pl.CostEstimate(
            flops=flops, transcendentals=N * Cout, bytes_accessed=bytes_accessed),
    )(x_nhwc, wc, s1, b1, wa, s2, b2)

    # TODO(synk): for production ARM shapes on v7x (64x64 spatial, Cin=512; 64 MiB VMEM)
    # add an H-tile grid axis with a split reduce/scale phase instead of one image/step.

    return jnp.transpose(out_nhwc[:, :, :, :Cout], (0, 3, 1, 2))


def _reference(x, p):
    """Pure-JAX NCHW reference mirroring the PyTorch module (eval-mode BN)."""
    def bn(t, g, b, m, v):
        sh = (1, -1, 1, 1)
        return (t - m.reshape(sh)) / jnp.sqrt(v.reshape(sh) + EPS) * g.reshape(sh) + b.reshape(sh)

    feat = jax.lax.conv_general_dilated(
        x, p["w_conv"], (1, 1), ((1, 1), (1, 1)),
        dimension_numbers=("NCHW", "OIHW", "NCHW"))
    feat = jnp.maximum(bn(feat, p["g1"], p["b1"], p["m1"], p["v1"]), 0.0)
    att = jnp.mean(feat, axis=(2, 3), keepdims=True)
    att = jax.lax.conv_general_dilated(
        att, p["w_att"], (1, 1), ((0, 0), (0, 0)),
        dimension_numbers=("NCHW", "OIHW", "NCHW"))
    att = jax.nn.sigmoid(bn(att, p["g2"], p["b2"], p["m2"], p["v2"]))
    return feat * att


def make_params(key, in_chan, out_chan):
    ks = jax.random.split(key, 10)
    f32 = jnp.float32
    return {
        "w_conv": 0.1 * jax.random.normal(ks[0], (out_chan, in_chan, 3, 3), f32),
        "g1": jax.random.uniform(ks[1], (out_chan,), f32, 0.5, 1.5),
        "b1": 0.1 * jax.random.normal(ks[2], (out_chan,), f32),
        "m1": 0.1 * jax.random.normal(ks[3], (out_chan,), f32),
        "v1": jax.random.uniform(ks[4], (out_chan,), f32, 0.5, 1.5),
        "w_att": 0.1 * jax.random.normal(ks[5], (out_chan, out_chan, 1, 1), f32),
        "g2": jax.random.uniform(ks[6], (out_chan,), f32, 0.5, 1.5),
        "b2": 0.1 * jax.random.normal(ks[7], (out_chan,), f32),
        "m2": 0.1 * jax.random.normal(ks[8], (out_chan,), f32),
        "v2": jax.random.uniform(ks[9], (out_chan,), f32, 0.5, 1.5),
    }


if __name__ == "__main__":
    key = jax.random.PRNGKey(0)
    k_x, k_p = jax.random.split(key)

    N, IN_CHAN, OUT_CHAN, H, W = 2, 4, 8, 16, 16
    x = jax.random.normal(k_x, (N, IN_CHAN, H, W), jnp.float32)   # NCHW, like PyTorch
    params = make_params(k_p, IN_CHAN, OUT_CHAN)

    out = jax.block_until_ready(jax.jit(attention_refinement_module)(x, params))

    ref = jax.block_until_ready(_reference(x, params))
    assert out.shape == (N, OUT_CHAN, H, W)
    # bf16 MXU inputs (f32 accumulation) -> bf16-level tolerance vs the f32 reference.
    assert jnp.allclose(out, ref, rtol=2e-2, atol=2e-2), "mismatch vs JAX reference"

    print("KERNEL_OK")
</pallas_src>

<mosaic_0001>
module attributes {stable_mosaic.version = 11 : i64} {
  func.func @_arm_kernel(%arg0: i32, %arg1: memref<1x16x16x4xf32, #tpu.memory_space<vmem>>, %arg2: memref<1152x128xbf16, #tpu.memory_space<vmem>>, %arg3: memref<1x128xf32, #tpu.memory_space<vmem>>, %arg4: memref<1x128xf32, #tpu.memory_space<vmem>>, %arg5: memref<128x128xbf16, #tpu.memory_space<vmem>>, %arg6: memref<1x128xf32, #tpu.memory_space<vmem>>, %arg7: memref<1x128xf32, #tpu.memory_space<vmem>>, %arg8: memref<1x16x16x128xf32, #tpu.memory_space<vmem>>, %arg9: memref<18x18x128xf32, #tpu.memory_space<vmem>>, %arg10: memref<16x16x1152xbf16, #tpu.memory_space<vmem>>) attributes {dimension_semantics = [#tpu.dimension_semantics<parallel>], iteration_bounds = array<i64: 2>, scalar_prefetch = 0 : i64, scratch_operands = 2 : i64, tpu.core_type = #tpu.core_type<tc>, window_params = [{transform_indices = @transform_0, window_bounds = array<i64: 1, 16, 16, 4>}, {pipeline_mode = #tpu.pipeline_mode<synchronous>, transform_indices = @transform_1, window_bounds = array<i64: 1152, 128>}, {pipeline_mode = #tpu.pipeline_mode<synchronous>, transform_indices = @transform_2, window_bounds = array<i64: 1, 128>}, {pipeline_mode = #tpu.pipeline_mode<synchronous>, transform_indices = @transform_3, window_bounds = array<i64: 1, 128>}, {pipeline_mode = #tpu.pipeline_mode<synchronous>, transform_indices = @transform_4, window_bounds = array<i64: 128, 128>}, {pipeline_mode = #tpu.pipeline_mode<synchronous>, transform_indices = @transform_5, window_bounds = array<i64: 1, 128>}, {pipeline_mode = #tpu.pipeline_mode<synchronous>, transform_indices = @transform_6, window_bounds = array<i64: 1, 128>}, {transform_indices = @transform_7, window_bounds = array<i64: 1, 16, 16, 128>}]} {
    %cst = arith.constant 0.000000e+00 : f32
    %0 = vector.broadcast %cst : f32 to vector<18x18x128xf32>
    %c0 = arith.constant 0 : index
    %c0_0 = arith.constant 0 : index
    %c0_1 = arith.constant 0 : index
    %1 = vector.load %arg9[%c0, %c0_0, %c0_1] : memref<18x18x128xf32, #tpu.memory_space<vmem>>, vector<18x18x128xf32>
    tpu.vector_store %arg9[%c0, %c0_0, %c0_1], %0 {strides = array<i32>} : memref<18x18x128xf32, #tpu.memory_space<vmem>>, vector<18x18x128xf32>,
    %c0_2 = arith.constant 0 : index
    %c0_3 = arith.constant 0 : index
    %c0_4 = arith.constant 0 : index
    %c0_5 = arith.constant 0 : index
    %2 = vector.load %arg1[%c0_2, %c0_3, %c0_4, %c0_5] : memref<1x16x16x4xf32, #tpu.memory_space<vmem>>, vector<1x16x16x4xf32>
    %3 = vector.shape_cast %2 : vector<1x16x16x4xf32> to vector<16x16x4xf32>
    %c1 = arith.constant 1 : index
    %c1_6 = arith.constant 1 : index
    %c0_7 = arith.constant 0 : index
    %4 = vector.load %arg9[%c1, %c1_6, %c0_7] : memref<18x18x128xf32, #tpu.memory_space<vmem>>, vector<16x16x4xf32>
    tpu.vector_store %arg9[%c1, %c1_6, %c0_7], %3 {strides = array<i32>} : memref<18x18x128xf32, #tpu.memory_space<vmem>>, vector<16x16x4xf32>,
    %c0_8 = arith.constant 0 : index
    %c0_9 = arith.constant 0 : index
    %c0_10 = arith.constant 0 : index
    %5 = vector.load %arg9[%c0_8, %c0_9, %c0_10] : memref<18x18x128xf32, #tpu.memory_space<vmem>>, vector<16x16x128xf32>
    %6 = arith.truncf %5 : vector<16x16x128xf32> to vector<16x16x128xbf16>
    %c0_11 = arith.constant 0 : index
    %c0_12 = arith.constant 0 : index
    %c0_13 = arith.constant 0 : index
    %7 = vector.load %arg10[%c0_11, %c0_12, %c0_13] : memref<16x16x1152xbf16, #tpu.memory_space<vmem>>, vector<16x16x128xbf16>
    tpu.vector_store %arg10[%c0_11, %c0_12, %c0_13], %6 {strides = array<i32>} : memref<16x16x1152xbf16, #tpu.memory_space<vmem>>, vector<16x16x128xbf16>,
    %c0_14 = arith.constant 0 : index
    %c1_15 = arith.constant 1 : index
    %c0_16 = arith.constant 0 : index
    %8 = vector.load %arg9[%c0_14, %c1_15, %c0_16] : memref<18x18x128xf32, #tpu.memory_space<vmem>>, vector<16x16x128xf32>
    %9 = arith.truncf %8 : vector<16x16x128xf32> to vector<16x16x128xbf16>
    %c0_17 = arith.constant 0 : index
    %c0_18 = arith.constant 0 : index
    %c128 = arith.constant 128 : index
    %10 = vector.load %arg10[%c0_17, %c0_18, %c128] : memref<16x16x1152xbf16, #tpu.memory_space<vmem>>, vector<16x16x128xbf16>
    tpu.vector_store %arg10[%c0_17, %c0_18, %c128], %9 {strides = array<i32>} : memref<16x16x1152xbf16, #tpu.memory_space<vmem>>, vector<16x16x128xbf16>,
    %c0_19 = arith.constant 0 : index
    %c2 = arith.constant 2 : index
    %c0_20 = arith.constant 0 : index
    %11 = vector.load %arg9[%c0_19, %c2, %c0_20] : memref<18x18x128xf32, #tpu.memory_space<vmem>>, vector<16x16x128xf32>
    %12 = arith.truncf %11 : vector<16x16x128xf32> to vector<16x16x128xbf16>
    %c0_21 = arith.constant 0 : index
    %c0_22 = arith.constant 0 : index
    %c256 = arith.constant 256 : index
    %13 = vector.load %arg10[%c0_21, %c0_22, %c256] : memref<16x16x1152xbf16, #tpu.memory_space<vmem>>, vector<16x16x128xbf16>
    tpu.vector_store %arg10[%c0_21, %c0_22, %c256], %12 {strides = array<i32>} : memref<16x16x1152xbf16, #tpu.memory_space<vmem>>, vector<16x16x128xbf16>,
    %c1_23 = arith.constant 1 : index
    %c0_24 = arith.constant 0 : index
    %c0_25 = arith.constant 0 : index
    %14 = vector.load %arg9[%c1_23, %c0_24, %c0_25] : memref<18x18x128xf32, #tpu.memory_space<vmem>>, vector<16x16x128xf32>
    %15 = arith.truncf %14 : vector<16x16x128xf32> to vector<16x16x128xbf16>
    %c0_26 = arith.constant 0 : index
    %c0_27 = arith.constant 0 : index
    %c384 = arith.constant 384 : index
    %16 = vector.load %arg10[%c0_26, %c0_27, %c384] : memref<16x16x1152xbf16, #tpu.memory_space<vmem>>, vector<16x16x128xbf16>
    tpu.vector_store %arg10[%c0_26, %c0_27, %c384], %15 {strides = array<i32>} : memref<16x16x1152xbf16, #tpu.memory_space<vmem>>, vector<16x16x128xbf16>,
    %c1_28 = arith.constant 1 : index
    %c1_29 = arith.constant 1 : index
    %c0_30 = arith.constant 0 : index
    %17 = vector.load %arg9[%c1_28, %c1_29, %c0_30] : memref<18x18x128xf32, #tpu.memory_space<vmem>>, vector<16x16x128xf32>
    %18 = arith.truncf %17 : vector<16x16x128xf32> to vector<16x16x128xbf16>
    %c0_31 = arith.constant 0 : index
    %c0_32 = arith.constant 0 : index
    %c512 = arith.constant 512 : index
    %19 = vector.load %arg10[%c0_31, %c0_32, %c512] : memref<16x16x1152xbf16, #tpu.memory_space<vmem>>, vector<16x16x128xbf16>
    tpu.vector_store %arg10[%c0_31, %c0_32, %c512], %18 {strides = array<i32>} : memref<16x16x1152xbf16, #tpu.memory_space<vmem>>, vector<16x16x128xbf16>,
    %c1_33 = arith.constant 1 : index
    %c2_34 = arith.constant 2 : index
    %c0_35 = arith.constant 0 : index
    %20 = vector.load %arg9[%c1_33, %c2_34, %c0_35] : memref<18x18x128xf32, #tpu.memory_space<vmem>>, vector<16x16x128xf32>
    %21 = arith.truncf %20 : vector<16x16x128xf32> to vector<16x16x128xbf16>
    %c0_36 = arith.constant 0 : index
    %c0_37 = arith.constant 0 : index
    %c640 = arith.constant 640 : index
    %22 = vector.load %arg10[%c0_36, %c0_37, %c640] : memref<16x16x1152xbf16, #tpu.memory_space<vmem>>, vector<16x16x128xbf16>
    tpu.vector_store %arg10[%c0_36, %c0_37, %c640], %21 {strides = array<i32>} : memref<16x16x1152xbf16, #tpu.memory_space<vmem>>, vector<16x16x128xbf16>,
    %c2_38 = arith.constant 2 : index
    %c0_39 = arith.constant 0 : index
    %c0_40 = arith.constant 0 : index
    %23 = vector.load %arg9[%c2_38, %c0_39, %c0_40] : memref<18x18x128xf32, #tpu.memory_space<vmem>>, vector<16x16x128xf32>
    %24 = arith.truncf %23 : vector<16x16x128xf32> to vector<16x16x128xbf16>
    %c0_41 = arith.constant 0 : index
    %c0_42 = arith.constant 0 : index
    %c768 = arith.constant 768 : index
    %25 = vector.load %arg10[%c0_41, %c0_42, %c768] : memref<16x16x1152xbf16, #tpu.memory_space<vmem>>, vector<16x16x128xbf16>
    tpu.vector_store %arg10[%c0_41, %c0_42, %c768], %24 {strides = array<i32>} : memref<16x16x1152xbf16, #tpu.memory_space<vmem>>, vector<16x16x128xbf16>,
    %c2_43 = arith.constant 2 : index
    %c1_44 = arith.constant 1 : index
    %c0_45 = arith.constant 0 : index
    %26 = vector.load %arg9[%c2_43, %c1_44, %c0_45] : memref<18x18x128xf32, #tpu.memory_space<vmem>>, vector<16x16x128xf32>
    %27 = arith.truncf %26 : vector<16x16x128xf32> to vector<16x16x128xbf16>
    %c0_46 = arith.constant 0 : index
    %c0_47 = arith.constant 0 : index
    %c896 = arith.constant 896 : index
    %28 = vector.load %arg10[%c0_46, %c0_47, %c896] : memref<16x16x1152xbf16, #tpu.memory_space<vmem>>, vector<16x16x128xbf16>
    tpu.vector_store %arg10[%c0_46, %c0_47, %c896], %27 {strides = array<i32>} : memref<16x16x1152xbf16, #tpu.memory_space<vmem>>, vector<16x16x128xbf16>,
    %c2_48 = arith.constant 2 : index
    %c2_49 = arith.constant 2 : index
    %c0_50 = arith.constant 0 : index
    %29 = vector.load %arg9[%c2_48, %c2_49, %c0_50] : memref<18x18x128xf32, #tpu.memory_space<vmem>>, vector<16x16x128xf32>
    %30 = arith.truncf %29 : vector<16x16x128xf32> to vector<16x16x128xbf16>
    %c0_51 = arith.constant 0 : index
    %c0_52 = arith.constant 0 : index
    %c1024 = arith.constant 1024 : index
    %31 = vector.load %arg10[%c0_51, %c0_52, %c1024] : memref<16x16x1152xbf16, #tpu.memory_space<vmem>>, vector<16x16x128xbf16>
    tpu.vector_store %arg10[%c0_51, %c0_52, %c1024], %30 {strides = array<i32>} : memref<16x16x1152xbf16, #tpu.memory_space<vmem>>, vector<16x16x128xbf16>,
    %c0_53 = arith.constant 0 : index
    %c0_54 = arith.constant 0 : index
    %c0_55 = arith.constant 0 : index
    %32 = vector.load %arg10[%c0_53, %c0_54, %c0_55] : memref<16x16x1152xbf16, #tpu.memory_space<vmem>>, vector<16x16x1152xbf16>
    %33 = vector.shape_cast %32 : vector<16x16x1152xbf16> to vector<256x1152xbf16>
    %c0_56 = arith.constant 0 : index
    %c0_57 = arith.constant 0 : index
    %34 = vector.load %arg2[%c0_56, %c0_57] : memref<1152x128xbf16, #tpu.memory_space<vmem>>, vector<1152x128xbf16>
    %cst_58 = arith.constant dense<0.000000e+00> : vector<256x128xf32>
    %35 = tpu.matmul %33, %34, %cst_58 {dimension_numbers = #tpu.dot_dimension_numbers<[1], [0], [0], [1], [0, 0, 1, 1], [], []>} : vector<256x1152xbf16>, vector<1152x128xbf16>, vector<256x128xf32> -> vector<256x128xf32>
    %c0_59 = arith.constant 0 : index
    %c0_60 = arith.constant 0 : index
    %36 = vector.load %arg3[%c0_59, %c0_60] : memref<1x128xf32, #tpu.memory_space<vmem>>, vector<1x128xf32>
    %37 = vector.broadcast %36 : vector<1x128xf32> to vector<256x128xf32>
    %38 = arith.mulf %35, %37 : vector<256x128xf32>
    %c0_61 = arith.constant 0 : index
    %c0_62 = arith.constant 0 : index
    %39 = vector.load %arg4[%c0_61, %c0_62] : memref<1x128xf32, #tpu.memory_space<vmem>>, vector<1x128xf32>
    %40 = vector.broadcast %39 : vector<1x128xf32> to vector<256x128xf32>
    %41 = arith.addf %38, %40 : vector<256x128xf32>
    %cst_63 = arith.constant 0.000000e+00 : f32
    %42 = vector.broadcast %cst_63 : f32 to vector<256x128xf32>
    %43 = arith.maximumf %41, %42 : vector<256x128xf32>
    %cst_64 = arith.constant dense<0.000000e+00> : vector<128xf32>
    %44 = vector.multi_reduction <add>, %43, %cst_64 [0] : vector<256x128xf32> to vector<128xf32>
    %45 = vector.shape_cast %44 : vector<128xf32> to vector<1x128xf32>
    %cst_65 = arith.constant 2.560000e+02 : f32
    %46 = vector.broadcast %cst_65 : f32 to vector<1x128xf32>
    %47 = arith.divf %45, %46 : vector<1x128xf32>
    %48 = arith.truncf %47 : vector<1x128xf32> to vector<1x128xbf16>
    %c0_66 = arith.constant 0 : index
    %c0_67 = arith.constant 0 : index
    %49 = vector.load %arg5[%c0_66, %c0_67] : memref<128x128xbf16, #tpu.memory_space<vmem>>, vector<128x128xbf16>
    %cst_68 = arith.constant dense<0.000000e+00> : vector<1x128xf32>
    %50 = tpu.matmul %48, %49, %cst_68 {dimension_numbers = #tpu.dot_dimension_numbers<[1], [0], [0], [1], [0, 0, 1, 1], [], []>} : vector<1x128xbf16>, vector<128x128xbf16>, vector<1x128xf32> -> vector<1x128xf32>
    %c0_69 = arith.constant 0 : index
    %c0_70 = arith.constant 0 : index
    %51 = vector.load %arg6[%c0_69, %c0_70] : memref<1x128xf32, #tpu.memory_space<vmem>>, vector<1x128xf32>
    %52 = arith.mulf %50, %51 : vector<1x128xf32>
    %c0_71 = arith.constant 0 : index
    %c0_72 = arith.constant 0 : index
    %53 = vector.load %arg7[%c0_71, %c0_72] : memref<1x128xf32, #tpu.memory_space<vmem>>, vector<1x128xf32>
    %54 = arith.addf %52, %53 : vector<1x128xf32>
    %55 = arith.negf %54 : vector<1x128xf32>
    %56 = math.exp %55 : vector<1x128xf32>
    %cst_73 = arith.constant 1.000000e+00 : f32
    %57 = vector.broadcast %cst_73 : f32 to vector<1x128xf32>
    %58 = arith.addf %57, %56 : vector<1x128xf32>
    %59 = arith.divf %57, %58 : vector<1x128xf32>
    %60 = vector.broadcast %59 : vector<1x128xf32> to vector<256x128xf32>
    %61 = arith.mulf %43, %60 : vector<256x128xf32>
    %62 = vector.shape_cast %61 : vector<256x128xf32> to vector<1x16x16x128xf32>
    %c0_74 = arith.constant 0 : index
    %c0_75 = arith.constant 0 : index
    %c0_76 = arith.constant 0 : index
    %c0_77 = arith.constant 0 : index
    %63 = vector.load %arg8[%c0_74, %c0_75, %c0_76, %c0_77] : memref<1x16x16x128xf32, #tpu.memory_space<vmem>>, vector<1x16x16x128xf32>
    tpu.vector_store %arg8[%c0_74, %c0_75, %c0_76, %c0_77], %62 {strides = array<i32>} : memref<1x16x16x128xf32, #tpu.memory_space<vmem>>, vector<1x16x16x128xf32>,
    return
  }
  func.func @transform_0(%arg0: i32) -> (i32, i32, i32, i32) {
    %c0_i32 = arith.constant 0 : i32
    %c0_i32_0 = arith.constant 0 : i32
    %c0_i32_1 = arith.constant 0 : i32
    %c0_i32_2 = arith.constant 0 : i32
    return %arg0, %c0_i32, %c0_i32_0, %c0_i32_1 : i32, i32, i32, i32
  }
  func.func @transform_1(%arg0: i32) -> (i32, i32) {
    %c0_i32 = arith.constant 0 : i32
    %c0_i32_0 = arith.constant 0 : i32
    %c0_i32_1 = arith.constant 0 : i32
    return %c0_i32, %c0_i32_0 : i32, i32
  }
  func.func @transform_2(%arg0: i32) -> (i32, i32) {
    %c0_i32 = arith.constant 0 : i32
    %c0_i32_0 = arith.constant 0 : i32
    %c0_i32_1 = arith.constant 0 : i32
    return %c0_i32, %c0_i32_0 : i32, i32
  }
  func.func @transform_3(%arg0: i32) -> (i32, i32) {
    %c0_i32 = arith.constant 0 : i32
    %c0_i32_0 = arith.constant 0 : i32
    %c0_i32_1 = arith.constant 0 : i32
    return %c0_i32, %c0_i32_0 : i32, i32
  }
  func.func @transform_4(%arg0: i32) -> (i32, i32) {
    %c0_i32 = arith.constant 0 : i32
    %c0_i32_0 = arith.constant 0 : i32
    %c0_i32_1 = arith.constant 0 : i32
    return %c0_i32, %c0_i32_0 : i32, i32
  }
  func.func @transform_5(%arg0: i32) -> (i32, i32) {
    %c0_i32 = arith.constant 0 : i32
    %c0_i32_0 = arith.constant 0 : i32
    %c0_i32_1 = arith.constant 0 : i32
    return %c0_i32, %c0_i32_0 : i32, i32
  }
  func.func @transform_6(%arg0: i32) -> (i32, i32) {
    %c0_i32 = arith.constant 0 : i32
    %c0_i32_0 = arith.constant 0 : i32
    %c0_i32_1 = arith.constant 0 : i32
    return %c0_i32, %c0_i32_0 : i32, i32
  }
  func.func @transform_7(%arg0: i32) -> (i32, i32, i32, i32) {
    %c0_i32 = arith.constant 0 : i32
    %c0_i32_0 = arith.constant 0 : i32
    %c0_i32_1 = arith.constant 0 : i32
    %c0_i32_2 = arith.constant 0 : i32
    return %arg0, %c0_i32, %c0_i32_0, %c0_i32_1 : i32, i32, i32, i32
  }
}

</mosaic_0001>

<bundles_post_ra>
// kernel: attention_refinement_module.1
= control target key start
LH: loop header
LB: loop body
LE: loop exit
PB: predicated region body
PF: predicated region fallthrough
CT: control target
= control target key end

     0   :  { %s5135_s24 = smov 0   ;;  %s6580_s0 = inlined_call_operand.vmem [shape: f32[2,16,16,4], index: 0, kind: input, shape index: {}]   ;;  %s6581_s1 = inlined_call_operand.vmem [shape: bf16[1152,128], index: 1, kind: input, shape index: {}]   ;;  %s6582_s2 = inlined_call_operand.vmem [shape: f32[1,128], index: 2, kind: input, shape index: {}]   ;;  %s6583_s3 = inlined_call_operand.vmem [shape: f32[1,128], index: 3, kind: input, shape index: {}]   ;;  %s6584_s4 = inlined_call_operand.vmem [shape: bf16[128,128], index: 4, kind: input, shape index: {}]   ;;  %s6585_s5 = inlined_call_operand.vmem [shape: f32[1,128], index: 5, kind: input, shape index: {}]   ;;  %s6586_s6 = inlined_call_operand.vmem [shape: f32[1,128], index: 6, kind: input, shape index: {}]   ;;  %s6587_s7 = inlined_call_operand.vmem [shape: f32[2,16,16,128], index: 7, kind: output, shape index: {}]  }
   0x1 LB: > { %s3907_s25 = sadd.s32 4294967295, %s5090_s24   ;;  %p3911_p0 = scmp.ge.s32.totalorder %s5090_s24, 1  ;;  %s5090_s24 = sphi %s5135_s24, %s17_s24  }
   0x2   : > { %p237_p1 = scmp.lt.s32.totalorder %s5090_s24, 3 }
   0x4   : > { %p238_p2 = pnand %p3911_p0, %p237_p1 }
   0x6   : > { %241 = sbr.rel (%p238_p2) target bundleno = 1031 (0x407), region = 48 }
   0xb   : > { %v4968_v0 = vld [vmem:[%s6581_s1 + $0x38] sm:$0xff]  ;;  %p269_p3 = scmp.lt.s32.totalorder %s3907_s25, 1  ;;  %v5092_v1 = vmov 0.0   ;;  %v4967_v2 = vld [vmem:[%s6581_s1 + $0x30] sm:$0xff]  ;;  %vm366_vm0 = vcmask 31744   ;;  %v4966_v3 = vld [vmem:[%s6581_s1 + $0x28] sm:$0xff] }
   0xc   : > { %294 = vst [vmem:[#allocation2 + $0x78] sm:$0xff] %v5092_v1  ;;  %5041 = vmatpush.bf16.msra.mxu1 %v4968_v0  ;;  %5042 = vmatpush.bf16.msra.mxu2 %v4968_v0  ;;  %v4965_v6 = vld [vmem:[%s6581_s1 + $0x20] sm:$0xff]  ;;  %v4964_v7 = vld [vmem:[%s6581_s1 + $0x18] sm:$0xff]  ;;  %v4963_v12 = vld [vmem:[%s6581_s1 + $0x10] sm:$0xff]  ;;  %v5093_v24 = vmov 0.0|0.0  }
   0xd   : > { %s6635_s25 = smov (!%p269_p3, %s3907_s25), 1  ;;  %295 = vst [vmem:[#allocation2 + $0x80] sm:$0xff] %v5092_v1  ;;  %2736 = vmatpush.bf16.msra.mxu0 %v4968_v0  ;;  %5043 = vmatpush.bf16.msra.mxu3 %v4968_v0  ;;  %v4962_v13 = vld [vmem:[%s6581_s1 + $0x8] sm:$0xff]  ;;  %v4961_v14 = vld [vmem:[%s6581_s1] sm:$0xff]  ;;  %v4984_v18 = vld [vmem:[%s6581_s1 + $0xb8] sm:$0xff] }
   0xe   : > { %296 = vst [vmem:[#allocation2 + $0x88] sm:$0x3] %v5092_v1  ;;  %s4815_s30 = sshll.u32 %s6635_s25, 8  ;;  %v5000_v19 = vld [vmem:[%s6581_s1 + $0x138] sm:$0xff]  ;;  %v4983_v20 = vld [vmem:[%s6581_s1 + $0xb0] sm:$0xff]  ;;  %v4982_v30 = vld [vmem:[%s6581_s1 + $0xa8] sm:$0xff] }
   0xf   : > { %279 = vst [vmem:[#allocation2] sm:$0xff] %v5092_v1  ;;  %s5161_s10 = scalar_lea.vmem %s6580_s0, %s4815_s30  ;;  %v4976_v29 = vld [vmem:[%s6581_s1 + $0x78] sm:$0xff]  ;;  %v4999_v31 = vld [vmem:[%s6581_s1 + $0x130] sm:$0xff]  ;;  %v4981_v35 = vld [vmem:[%s6581_s1 + $0xa0] sm:$0xff]  ;;  %s6479_s23 = scalar_lea.vmem %s6587_s7, %s4815_s30 }
  0x10   : > { %280 = vst [vmem:[#allocation2 + $0x8] sm:$0xff] %v5092_v1  ;;  %5044 = vmatpush.bf16.msra.mxu1 %v4967_v2  ;;  %5045 = vmatpush.bf16.msra.mxu2 %v4967_v2  ;;  %v341_v4 = vld [vmem:[%s5161_s10 + $0x40] sm:$0xff]  ;;  %v342_v5 = vld [vmem:[%s5161_s10 + $0x48] sm:$0xff]  ;;  %v343_v23 = vld [vmem:[%s5161_s10 + $0x50] sm:$0xff] }
  0x11   : > { %281 = vst [vmem:[#allocation2 + $0x10] sm:$0x3] %v5092_v1  ;;  %2737 = vmatpush.bf16.msra.mxu0 %v4967_v2  ;;  %5046 = vmatpush.bf16.msra.mxu3 %v4967_v2  ;;  %v349_v21 = vld [vmem:[%s5161_s10 + $0x80] sm:$0xff]  ;;  %v350_v22 = vld [vmem:[%s5161_s10 + $0x88] sm:$0xff]  ;;  %v344_v25 = vld [vmem:[%s5161_s10 + $0x58] sm:$0xff] }
  0x12   : > { %375 = vst.msk [vmem:[#allocation2 + $0x79] sm:$0xff] %vm366_vm0, %v341_v4  ;;  %v351_v26 = vld [vmem:[%s5161_s10 + $0x90] sm:$0xff]  ;;  %v352_v27 = vld [vmem:[%s5161_s10 + $0x98] sm:$0xff]  ;;  %v333_v28 = vld [vmem:[%s5161_s10] sm:$0xff] }
  0x13   : > { %376 = vst.msk [vmem:[#allocation2 + $0x81] sm:$0xff] %vm366_vm0, %v342_v5  ;;  %v334_v32 = vld [vmem:[%s5161_s10 + $0x8] sm:$0xff]  ;;  %v4975_v34 = vld [vmem:[%s6581_s1 + $0x70] sm:$0xff]  ;;  %v345_v41 = vld [vmem:[%s5161_s10 + $0x60] sm:$0xff] }
  0x14   : > { %282 = vst [vmem:[#allocation2 + $0x18] sm:$0xff] %v5092_v1  ;;  %5047 = vmatpush.bf16.msra.mxu1 %v4966_v3  ;;  %5048 = vmatpush.bf16.msra.mxu2 %v4966_v3  ;;  %v4998_v38 = vld [vmem:[%s6581_s1 + $0x128] sm:$0xff]  ;;  %v353_v58 = vld [vmem:[%s5161_s10 + $0xa0] sm:$0xff]  ;;  %v336_v2 = vld [vmem:[%s5161_s10 + $0x18] sm:$0xff] }
  0x15   : > { %283 = vst [vmem:[#allocation2 + $0x20] sm:$0xff] %v5092_v1  ;;  %2738 = vmatpush.bf16.msra.mxu0 %v4966_v3  ;;  %5049 = vmatpush.bf16.msra.mxu3 %v4966_v3  ;;  %v346_v43 = vld [vmem:[%s5161_s10 + $0x68] sm:$0xff] }
  0x16   : > { %284 = vst [vmem:[#allocation2 + $0x28] sm:$0x3] %v5092_v1  ;;  %v354_v60 = vld [vmem:[%s5161_s10 + $0xa8] sm:$0xff] }
  0x17   : > { %285 = vst [vmem:[#allocation2 + $0x30] sm:$0xff] %v5092_v1  ;;  %v4974_v5 = vld [vmem:[%s6581_s1 + $0x68] sm:$0xff] }
  0x18   : > { %286 = vst [vmem:[#allocation2 + $0x38] sm:$0xff] %v5092_v1  ;;  %5050 = vmatpush.bf16.msra.mxu1 %v4965_v6  ;;  %5051 = vmatpush.bf16.msra.mxu2 %v4965_v6 }
  0x19   : > { %v409_v8 = vld [vmem:[#allocation2 + $0x78] sm:$0xff]  ;;  %287 = vst [vmem:[#allocation2 + $0x40] sm:$0x3] %v5092_v1  ;;  %2739 = vmatpush.bf16.msra.mxu0 %v4965_v6  ;;  %5052 = vmatpush.bf16.msra.mxu3 %v4965_v6 }
  0x1a   : > { %v410_v9 = vld [vmem:[#allocation2 + $0x80] sm:$0xff]  ;;  %v441_v10 = vpack.c.bf16 %v409_v8, %v409_v8  ;;  %288 = vst [vmem:[#allocation2 + $0x48] sm:$0xff] %v5092_v1  ;;  %v4980_v6 = vld [vmem:[%s6581_s1 + $0x98] sm:$0xff] }
  0x1b   : > { %v442_v11 = vpack.c.bf16 %v410_v9, %v410_v9  ;;  %289 = vst [vmem:[#allocation2 + $0x50] sm:$0xff] %v5092_v1  ;;  %v4997_v8 = vld [vmem:[%s6581_s1 + $0x120] sm:$0xff]  ;;  %v4992_v9 = vld [vmem:[%s6581_s1 + $0xf8] sm:$0xff] }
  0x1c   : > { %473 = vst [vmem:[#allocation3 + $0x168] sm:$0xf] %v441_v10  ;;  %5053 = vmatpush.bf16.msra.mxu1 %v4964_v7  ;;  %5054 = vmatpush.bf16.msra.mxu2 %v4964_v7 }
  0x1d   : > { %474 = vst [vmem:[#allocation3 + $0x18c] sm:$0xf] %v442_v11  ;;  %2740 = vmatpush.bf16.msra.mxu0 %v4964_v7  ;;  %5055 = vmatpush.bf16.msra.mxu3 %v4964_v7  ;;  %v359_v11 = vld [vmem:[%s5161_s10 + $0xd0] sm:$0xff] }
  0x1e   : > { %290 = vst [vmem:[#allocation2 + $0x58] sm:$0x3] %v5092_v1 }
  0x1f   : > { %291 = vst [vmem:[#allocation2 + $0x60] sm:$0xff] %v5092_v1 }
  0x20   : > { %292 = vst [vmem:[#allocation2 + $0x68] sm:$0xff] %v5092_v1  ;;  %5056 = vmatpush.bf16.msra.mxu1 %v4963_v12  ;;  %5057 = vmatpush.bf16.msra.mxu2 %v4963_v12 }
  0x21   : > { %293 = vst [vmem:[#allocation2 + $0x70] sm:$0x3] %v5092_v1  ;;  %2741 = vmatpush.bf16.msra.mxu0 %v4963_v12  ;;  %5058 = vmatpush.bf16.msra.mxu3 %v4963_v12  ;;  %v4973_v12 = vld [vmem:[%s6581_s1 + $0x60] sm:$0xff] }
  0x22   : > { %297 = vst [vmem:[#allocation2 + $0x90] sm:$0xff] %v5092_v1 }
  0x23   : > { %298 = vst [vmem:[#allocation2 + $0x98] sm:$0xff] %v5092_v1  ;;  %v4098_v15 = vld [vmem:[#allocation3 + $0x168] sm:$0xf] }
  0x24   : > { %299 = vst [vmem:[#allocation2 + $0xa0] sm:$0x3] %v5092_v1  ;;  %5059 = vmatpush.bf16.msra.mxu1 %v4962_v13  ;;  %5060 = vmatpush.bf16.msra.mxu2 %v4962_v13  ;;  %v4866_v16 = vld [vmem:[#allocation3 + $0x188] sm:$0xf0] }
  0x25   : > { %300 = vst [vmem:[#allocation2 + $0xa8] sm:$0xff] %v5092_v1  ;;  %2742 = vmatpush.bf16.msra.mxu0 %v4962_v13  ;;  %5061 = vmatpush.bf16.msra.mxu3 %v4962_v13  ;;  %v4099_v17 = vor.u32 %v4866_v16, %v4098_v15  ;;  %v360_v13 = vld [vmem:[%s5161_s10 + $0xd8] sm:$0xff]  ;;  %v347_v16 = vld [vmem:[%s5161_s10 + $0x70] sm:$0xff] }
  0x26   : > { %301 = vst [vmem:[#allocation2 + $0xb0] sm:$0xff] %v5092_v1 }
  0x27   : > { %302 = vst [vmem:[#allocation2 + $0xb8] sm:$0x3] %v5092_v1 }
  0x28   : > { %303 = vst [vmem:[#allocation2 + $0xc0] sm:$0xff] %v5092_v1  ;;  %5062 = vmatpush.bf16.msra.mxu1 %v4961_v14  ;;  %5063 = vmatpush.bf16.msra.mxu2 %v4961_v14 }
  0x29   : > { %304 = vst [vmem:[#allocation2 + $0xc8] sm:$0xff] %v5092_v1  ;;  %2743 = vmatpush.bf16.msra.mxu0 %v4961_v14  ;;  %5064 = vmatpush.bf16.msra.mxu3 %v4961_v14  ;;  %v4991_v14 = vld [vmem:[%s6581_s1 + $0xf0] sm:$0xff] }
  0x2a   : > { %305 = vst [vmem:[#allocation2 + $0xd0] sm:$0x3] %v5092_v1 }
  0x2b   : > { %306 = vst [vmem:[#allocation2 + $0xd8] sm:$0xff] %v5092_v1  ;;  %2769 = vmatmul.bf16.vlgmr.msra.gmra.mxu1 %v4099_v17 }
  0x2c   : > { %307 = vst [vmem:[#allocation2 + $0xe0] sm:$0xff] %v5092_v1  ;;  %2914 = vmatpush.bf16.msrb.mxu2 %v4984_v18  ;;  %2825 = vmatpush.bf16.msrb.mxu1 %v4976_v29  ;;  %v348_v18 = vld [vmem:[%s5161_s10 + $0x78] sm:$0xff] }
  0x2d   : > { %308 = vst [vmem:[#allocation2 + $0xe8] sm:$0x3] %v5092_v1  ;;  %3092 = vmatpush.bf16.msrb.mxu0 %v5000_v19  ;;  %3003 = vmatpush.bf16.msrb.mxu3 %v4992_v9 }
  0x2e   : > { %309 = vst [vmem:[#allocation2 + $0xf0] sm:$0xff] %v5092_v1 }
  0x2f   : > { %310 = vst [vmem:[#allocation2 + $0xf8] sm:$0xff] %v5092_v1 }
  0x30   : > { %311 = vst [vmem:[#allocation2 + $0x100] sm:$0x3] %v5092_v1  ;;  %2915 = vmatpush.bf16.msrb.mxu2 %v4983_v20  ;;  %2826 = vmatpush.bf16.msrb.mxu1 %v4975_v34 }
  0x31   : > { %312 = vst [vmem:[#allocation2 + $0x108] sm:$0xff] %v5092_v1  ;;  %3093 = vmatpush.bf16.msrb.mxu0 %v4999_v31  ;;  %3004 = vmatpush.bf16.msrb.mxu3 %v4991_v14  ;;  %v4969_v14 = vld [vmem:[%s6581_s1 + $0x40] sm:$0xff] }
  0x32   : > { %313 = vst [vmem:[#allocation2 + $0x110] sm:$0xff] %v5092_v1 }
  0x33   : > { %314 = vst [vmem:[#allocation2 + $0x118] sm:$0x3] %v5092_v1 }
  0x34   : > { %315 = vst [vmem:[#allocation2 + $0x120] sm:$0xff] %v5092_v1  ;;  %2916 = vmatpush.bf16.msrb.mxu2 %v4982_v30  ;;  %2827 = vmatpush.bf16.msrb.mxu1 %v4974_v5  ;;  %v496_v5 = vld [vmem:[#allocation2 + $0x9] sm:$0xff] }
  0x35   : > { %316 = vst [vmem:[#allocation2 + $0x128] sm:$0xff] %v5092_v1  ;;  %3094 = vmatpush.bf16.msrb.mxu0 %v4998_v38 }
  0x36   : > { %317 = vst [vmem:[#allocation2 + $0x130] sm:$0x3] %v5092_v1 }
  0x37   : > { %318 = vst [vmem:[#allocation2 + $0x138] sm:$0xff] %v5092_v1 }
  0x38   : > { %319 = vst [vmem:[#allocation2 + $0x140] sm:$0xff] %v5092_v1  ;;  %2917 = vmatpush.bf16.msrb.mxu2 %v4981_v35  ;;  %2828 = vmatpush.bf16.msrb.mxu1 %v4973_v12 }
  0x39   : > { %320 = vst [vmem:[#allocation2 + $0x148] sm:$0x3] %v5092_v1  ;;  %3095 = vmatpush.bf16.msrb.mxu0 %v4997_v8  ;;  %v358_v8 = vld [vmem:[%s5161_s10 + $0xc8] sm:$0xff] }
  0x3a   : > { %321 = vst [vmem:[#allocation2 + $0x150] sm:$0xff] %v5092_v1 }
  0x3b   : > { %322 = vst [vmem:[#allocation2 + $0x158] sm:$0xff] %v5092_v1 }
  0x3c   : > { %323 = vst [vmem:[#allocation2 + $0x160] sm:$0x3] %v5092_v1  ;;  %2918 = vmatpush.bf16.msrb.mxu2 %v4980_v6 }
  0x3d   : > { %324 = vst [vmem:[#allocation2 + $0x168] sm:$0xff] %v5092_v1 }
  0x3e   : > { %325 = vst [vmem:[#allocation2 + $0x170] sm:$0xff] %v5092_v1 }
  0x3f   : > { %326 = vst [vmem:[#allocation2 + $0x178] sm:$0x3] %v5092_v1 }
  0x40   : > { %327 = vst [vmem:[#allocation2 + $0x180] sm:$0xff] %v5092_v1 }
  0x41   : > { %328 = vst [vmem:[#allocation2 + $0x188] sm:$0xff] %v5092_v1 }
  0x42   : > { %329 = vst [vmem:[#allocation2 + $0x190] sm:$0x3] %v5092_v1 }
  0x43   : > { %330 = vst [vmem:[#allocation2 + $0x198] sm:$0xff] %v5092_v1 }
  0x44   : > { %331 = vst [vmem:[#allocation2 + $0x1a0] sm:$0xff] %v5092_v1 }
  0x45   : > { %332 = vst [vmem:[#allocation2 + $0x1a8] sm:$0x3] %v5092_v1  ;;  %v335_v1 = vld [vmem:[%s5161_s10 + $0x10] sm:$0xff] }
  0x46   : > { %383 = vst.msk [vmem:[#allocation2 + $0xd9] sm:$0xff] %vm366_vm0, %v349_v21 }
  0x47   : > { %384 = vst.msk [vmem:[#allocation2 + $0xe1] sm:$0xff] %vm366_vm0, %v350_v22 }
  0x48   : > { %463 = vst [vmem:[#allocation3] sm:$0xf] %v5093_v24 }
  0x49   : > { %464 = vst [vmem:[#allocation3 + $0x24] sm:$0xf] %v5093_v24  ;;  %v355_v24 = vld [vmem:[%s5161_s10 + $0xb0] sm:$0xff] }
  0x4a   : > { %377 = vst.msk [vmem:[#allocation2 + $0x91] sm:$0xff] %vm366_vm0, %v343_v23 }
  0x4b   : > { %378 = vst.msk [vmem:[#allocation2 + $0x99] sm:$0xff] %vm366_vm0, %v344_v25  ;;  %v356_v25 = vld [vmem:[%s5161_s10 + $0xb8] sm:$0xff] }
  0x4c   : > { %385 = vst.msk [vmem:[#allocation2 + $0xf1] sm:$0xff] %vm366_vm0, %v351_v26 }
  0x4d   : > { %v417_v33 = vld [vmem:[#allocation2 + $0xd8] sm:$0xff]  ;;  %386 = vst.msk [vmem:[#allocation2 + $0xf9] sm:$0xff] %vm366_vm0, %v352_v27 }
  0x4e   : > { %v418_v36 = vld [vmem:[#allocation2 + $0xe0] sm:$0xff]  ;;  %v449_v37 = vpack.c.bf16 %v417_v33, %v417_v33  ;;  %367 = vst.msk [vmem:[#allocation2 + $0x19] sm:$0xff] %vm366_vm0, %v333_v28 }
  0x4f   : > { %v450_v39 = vpack.c.bf16 %v418_v36, %v418_v36  ;;  %v3918_v40 = vld [vmem:[#allocation3] sm:$0xf]  ;;  %368 = vst.msk [vmem:[#allocation2 + $0x21] sm:$0xff] %vm366_vm0, %v334_v32 }
  0x50   : > { %481 = vst [vmem:[#allocation3 + $0x288] sm:$0xf] %v449_v37  ;;  %v4821_v42 = vld [vmem:[#allocation3 + $0x20] sm:$0xf0] }
  0x51   : > { %482 = vst [vmem:[#allocation3 + $0x2ac] sm:$0xf] %v450_v39  ;;  %v3919_v44 = vor.u32 %v4821_v42, %v3918_v40  ;;  %v411_v45 = vld [vmem:[#allocation2 + $0x90] sm:$0xff]  ;;  %v4972_v42 = vld [vmem:[%s6581_s1 + $0x58] sm:$0xff] }
  0x52   : > { %v412_v46 = vld [vmem:[#allocation2 + $0x98] sm:$0xff]  ;;  %v443_v47 = vpack.c.bf16 %v411_v45, %v411_v45  ;;  %379 = vst.msk [vmem:[#allocation2 + $0xa9] sm:$0xff] %vm366_vm0, %v345_v41  ;;  %v337_v45 = vld [vmem:[%s5161_s10 + $0x20] sm:$0xff]  ;;  %2829 = vmatpush.bf16.msrb.mxu1 %v4972_v42 }
  0x53   : > { %2744 = vmatmul.bf16.vlgmr.msra.gmra.mxu0 %v3919_v44  ;;  %v444_v48 = vpack.c.bf16 %v412_v46, %v412_v46  ;;  %v419_v49 = vld [vmem:[#allocation2 + $0xf0] sm:$0xff]  ;;  %380 = vst.msk [vmem:[#allocation2 + $0xb1] sm:$0xff] %vm366_vm0, %v346_v43 }
  0x54   : > { %475 = vst [vmem:[#allocation3 + $0x1b0] sm:$0xf] %v443_v47  ;;  %v420_v50 = vld [vmem:[#allocation2 + $0xf8] sm:$0xff]  ;;  %v451_v51 = vpack.c.bf16 %v419_v49, %v419_v49  ;;  %v4979_v46 = vld [vmem:[%s6581_s1 + $0x90] sm:$0xff]  ;;  %v4990_v49 = vld [vmem:[%s6581_s1 + $0xe8] sm:$0xff] }
  0x55   : > { %476 = vst [vmem:[#allocation3 + $0x1d4] sm:$0xf] %v444_v48  ;;  %v452_v52 = vpack.c.bf16 %v420_v50, %v420_v50  ;;  %v401_v53 = vld [vmem:[#allocation2 + $0x18] sm:$0xff]  ;;  %v338_v48 = vld [vmem:[%s5161_s10 + $0x28] sm:$0xff]  ;;  %v4971_v50 = vld [vmem:[%s6581_s1 + $0x50] sm:$0xff]  ;;  %2919 = vmatpush.bf16.msrb.mxu2 %v4979_v46  ;;  %3005 = vmatpush.bf16.msrb.mxu3 %v4990_v49 }
  0x56   : > { %483 = vst [vmem:[#allocation3 + $0x2d0] sm:$0xf] %v451_v51  ;;  %v402_v54 = vld [vmem:[#allocation2 + $0x20] sm:$0xff]  ;;  %v5282_v55 = vpack.c.bf16 %v401_v53, %v401_v53  ;;  %v4996_v47 = vld [vmem:[%s6581_s1 + $0x118] sm:$0xff]  ;;  %2830 = vmatpush.bf16.msrb.mxu1 %v4971_v50 }
  0x57   : > { %v4242_v56 = vld [vmem:[#allocation3 + $0x288] sm:$0xf]  ;;  %484 = vst [vmem:[#allocation3 + $0x2f4] sm:$0xf] %v452_v52  ;;  %v5284_v57 = vpack.c.bf16 %v402_v54, %v402_v54  ;;  %3096 = vmatpush.bf16.msrb.mxu0 %v4996_v47  ;;  %v361_v52 = vld [vmem:[%s5161_s10 + $0xe0] sm:$0xff] }
  0x58   : > { %v4902_v59 = vld [vmem:[#allocation3 + $0x2a8] sm:$0xf0]  ;;  %465 = vst [vmem:[#allocation3 + $0x48] sm:$0xf] %v5282_v55  ;;  %v498_v42 = vld [vmem:[#allocation2 + $0x21] sm:$0xff] }
  0x59   : > { %v4243_v61 = vor.u32 %v4902_v59, %v4242_v56  ;;  %466 = vst [vmem:[#allocation3 + $0x6c] sm:$0xf] %v5284_v57  ;;  %v413_v62 = vld [vmem:[#allocation2 + $0xa8] sm:$0xff]  ;;  %v4989_v56 = vld [vmem:[%s6581_s1 + $0xe0] sm:$0xff] }
  0x5a   : > { %v414_v63 = vld [vmem:[#allocation2 + $0xb0] sm:$0xff]  ;;  %v445_v0 = vpack.c.bf16 %v413_v62, %v413_v62  ;;  %387 = vst.msk [vmem:[#allocation2 + $0x109] sm:$0xff] %vm366_vm0, %v353_v58  ;;  %v4978_v58 = vld [vmem:[%s6581_s1 + $0x88] sm:$0xff]  ;;  %3006 = vmatpush.bf16.msrb.mxu3 %v4989_v56 }
  0x5b   : > { %2789 = vmatmul.bf16.vlgmr.msra.gmra.mxu2 %v4243_v61  ;;  %v4134_v3 = vld [vmem:[#allocation3 + $0x1b0] sm:$0xf]  ;;  %v446_v4 = vpack.c.bf16 %v414_v63, %v414_v63  ;;  %388 = vst.msk [vmem:[#allocation2 + $0x111] sm:$0xff] %vm366_vm0, %v354_v60  ;;  %v362_v61 = vld [vmem:[%s5161_s10 + $0xe8] sm:$0xff]  ;;  %v4995_v62 = vld [vmem:[%s6581_s1 + $0x110] sm:$0xff] }
  0x5c   : > { %v4875_v7 = vld [vmem:[#allocation3 + $0x1d0] sm:$0xf0]  ;;  %477 = vst [vmem:[#allocation3 + $0x1f8] sm:$0xf] %v445_v0  ;;  %v4970_v0 = vld [vmem:[%s6581_s1 + $0x48] sm:$0xff]  ;;  %2920 = vmatpush.bf16.msrb.mxu2 %v4978_v58  ;;  %3097 = vmatpush.bf16.msrb.mxu0 %v4995_v62 }
  0x5d   : > { %v4135_v10 = vor.u32 %v4875_v7, %v4134_v3  ;;  %478 = vst [vmem:[#allocation3 + $0x21c] sm:$0xf] %v446_v4  ;;  %v4278_v26 = vld [vmem:[#allocation3 + $0x2d0] sm:$0xf]  ;;  %v4988_v7 = vld [vmem:[%s6581_s1 + $0xd8] sm:$0xff]  ;;  %2831 = vmatpush.bf16.msrb.mxu1 %v4970_v0 }
  0x5e   : > { %369 = vst.msk [vmem:[#allocation2 + $0x31] sm:$0xff] %vm366_vm0, %v335_v1  ;;  %v4911_v27 = vld [vmem:[#allocation3 + $0x2f0] sm:$0xf0]  ;;  %3007 = vmatpush.bf16.msrb.mxu3 %v4988_v7 }
  0x5f   : > { %2774 = vmatmul.bf16.gmra.mxu1 %v4135_v10  ;;  %v3954_v15 = vld [vmem:[#allocation3 + $0x48] sm:$0xf]  ;;  %370 = vst.msk [vmem:[#allocation2 + $0x39] sm:$0xff] %vm366_vm0, %v336_v2  ;;  %v4279_v31 = vor.u32 %v4911_v27, %v4278_v26  ;;  %v495_v1 = vld [vmem:[#allocation2 + $0x1] sm:$0xff] }
  0x60   : > { %v4830_v17 = vld [vmem:[#allocation3 + $0x68] sm:$0xf0]  ;;  %393 = vst.msk [vmem:[#allocation2 + $0x151] sm:$0xff] %vm366_vm0, %v359_v11  ;;  %v357_v4 = vld [vmem:[%s5161_s10 + $0xc0] sm:$0xff]  ;;  %v527_v9 = vpack.c.bf16 %v495_v1, %v495_v1  ;;  %v528_v11 = vpack.c.bf16 %v496_v5, %v496_v5 }
  0x61   : > { %v3955_v19 = vor.u32 %v4830_v17, %v3954_v15  ;;  %v421_v20 = vld [vmem:[#allocation2 + $0x108] sm:$0xff]  ;;  %394 = vst.msk [vmem:[#allocation2 + $0x159] sm:$0xff] %vm366_vm0, %v360_v13  ;;  %2832 = vmatpush.bf16.msrb.mxu1 %v4969_v14  ;;  %v5008_v5 = vld [vmem:[%s6581_s1 + $0x178] sm:$0xff] }
  0x62   : > { %v422_v21 = vld [vmem:[#allocation2 + $0x110] sm:$0xff]  ;;  %v453_v22 = vpack.c.bf16 %v421_v20, %v421_v20  ;;  %381 = vst.msk [vmem:[#allocation2 + $0xc1] sm:$0xff] %vm366_vm0, %v347_v16  ;;  %v591_v46 = vld [vmem:[#allocation2 + $0x2] sm:$0xff] }
  0x63   : > { %2749 = vmatmul.bf16.gmra.mxu0 %v3955_v19  ;;  %v454_v23 = vpack.c.bf16 %v422_v21, %v422_v21  ;;  %382 = vst.msk [vmem:[#allocation2 + $0xc9] sm:$0xff] %vm366_vm0, %v348_v18  ;;  %v4170_v32 = vld [vmem:[#allocation3 + $0x1f8] sm:$0xf]  ;;  %v4987_v18 = vld [vmem:[%s6581_s1 + $0xd0] sm:$0xff] }
  0x64   : > { %485 = vst [vmem:[#allocation3 + $0x318] sm:$0xf] %v453_v22  ;;  %v4884_v35 = vld [vmem:[#allocation3 + $0x218] sm:$0xf0]  ;;  %v339_v21 = vld [vmem:[%s5161_s10 + $0x30] sm:$0xff]  ;;  %v340_v22 = vld [vmem:[%s5161_s10 + $0x38] sm:$0xff]  ;;  %3008 = vmatpush.bf16.msrb.mxu3 %v4987_v18 }
  0x65   : > { %486 = vst [vmem:[#allocation3 + $0x33c] sm:$0xf] %v454_v23  ;;  %v403_v28 = vld [vmem:[#allocation2 + $0x30] sm:$0xff]  ;;  %v4171_v43 = vor.u32 %v4884_v35, %v4170_v32  ;;  %v4986_v32 = vld [vmem:[%s6581_s1 + $0xc8] sm:$0xff]  ;;  %3181 = vmatpush.bf16.msra.mxu1 %v5008_v5  ;;  %v696_v5 = vld [vmem:[#allocation2 + $0x80] sm:$0xff] }
  0x66   : > { %v404_v29 = vld [vmem:[#allocation2 + $0x38] sm:$0xff]  ;;  %v5324_v30 = vpack.c.bf16 %v403_v28, %v403_v28  ;;  %389 = vst.msk [vmem:[#allocation2 + $0x121] sm:$0xff] %vm366_vm0, %v355_v24 }
  0x67   : > { %v5327_v33 = vpack.c.bf16 %v404_v29, %v404_v29  ;;  %v427_v34 = vld [vmem:[#allocation2 + $0x150] sm:$0xff]  ;;  %390 = vst.msk [vmem:[#allocation2 + $0x129] sm:$0xff] %vm366_vm0, %v356_v25  ;;  %v500_v7 = vld [vmem:[#allocation2 + $0x39] sm:$0xff] }
  0x68   : > { %467 = vst [vmem:[#allocation3 + $0x90] sm:$0xf] %v5324_v30  ;;  %v428_v36 = vld [vmem:[#allocation2 + $0x158] sm:$0xff]  ;;  %v459_v37 = vpack.c.bf16 %v427_v34, %v427_v34  ;;  %v4977_v34 = vld [vmem:[%s6581_s1 + $0x80] sm:$0xff]  ;;  %3009 = vmatpush.bf16.msrb.mxu3 %v4986_v32 }
  0x69   : > { %468 = vst [vmem:[#allocation3 + $0xb4] sm:$0xf] %v5327_v33  ;;  %v460_v38 = vpack.c.bf16 %v428_v36, %v428_v36  ;;  %v415_v39 = vld [vmem:[#allocation2 + $0xc0] sm:$0xff]  ;;  %2921 = vmatpush.bf16.msrb.mxu2 %v4977_v34 }
  0x6a   : > { %491 = vst [vmem:[#allocation3 + $0x3f0] sm:$0xf] %v459_v37  ;;  %v416_v40 = vld [vmem:[#allocation2 + $0xc8] sm:$0xff]  ;;  %v447_v41 = vpack.c.bf16 %v415_v39, %v415_v39  ;;  %v497_v39 = vld [vmem:[#allocation2 + $0x19] sm:$0xff] }
  0x6b   : > { %2794 = vmatmul.bf16.gmra.mxu2 %v4279_v31  ;;  %492 = vst [vmem:[#allocation3 + $0x414] sm:$0xf] %v460_v38  ;;  %v448_v44 = vpack.c.bf16 %v416_v40, %v416_v40  ;;  %v4314_v12 = vld [vmem:[#allocation3 + $0x318] sm:$0xf]  ;;  %v4985_v40 = vld [vmem:[%s6581_s1 + $0xc0] sm:$0xff] }
  0x6c   : > { %479 = vst [vmem:[#allocation3 + $0x240] sm:$0xf] %v447_v41  ;;  %v4920_v13 = vld [vmem:[#allocation3 + $0x338] sm:$0xf0]  ;;  %v4993_v41 = vld [vmem:[%s6581_s1 + $0x100] sm:$0xff]  ;;  %3010 = vmatpush.bf16.msrb.mxu3 %v4985_v40 }
  0x6d   : > { %480 = vst [vmem:[#allocation3 + $0x264] sm:$0xf] %v448_v44  ;;  %v423_v51 = vld [vmem:[#allocation2 + $0x120] sm:$0xff]  ;;  %v4315_v19 = vor.u32 %v4920_v13, %v4314_v12  ;;  %v4994_v37 = vld [vmem:[%s6581_s1 + $0x108] sm:$0xff] }
  0x6e   : > { %v424_v53 = vld [vmem:[#allocation2 + $0x128] sm:$0xff]  ;;  %v455_v54 = vpack.c.bf16 %v423_v51, %v423_v51  ;;  %371 = vst.msk [vmem:[#allocation2 + $0x49] sm:$0xff] %vm366_vm0, %v337_v45  ;;  %3098 = vmatpush.bf16.msrb.mxu0 %v4994_v37  ;;  %v530_v45 = vpack.c.bf16 %v498_v42, %v498_v42 }
  0x6f   : > { %2779 = vmatmul.bf16.gmra.mxu1 %v4171_v43  ;;  %v3990_v59 = vld [vmem:[#allocation3 + $0x90] sm:$0xf]  ;;  %v456_v60 = vpack.c.bf16 %v424_v53, %v424_v53  ;;  %372 = vst.msk [vmem:[#allocation2 + $0x51] sm:$0xff] %vm366_vm0, %v338_v48  ;;  %v529_v43 = vpack.c.bf16 %v497_v39, %v497_v39  ;;  %v592_v48 = vld [vmem:[#allocation2 + $0xa] sm:$0xff]  ;;  %v623_v53 = vpack.c.bf16 %v591_v46, %v591_v46 }
  0x70   : > { %v4839_v63 = vld [vmem:[#allocation3 + $0xb0] sm:$0xf0]  ;;  %487 = vst [vmem:[#allocation3 + $0x360] sm:$0xf] %v455_v54 }
  0x71   : > { %v3991_v2 = vor.u32 %v4839_v63, %v3990_v59  ;;  %v4422_v3 = vld [vmem:[#allocation3 + $0x3f0] sm:$0xf]  ;;  %488 = vst [vmem:[#allocation3 + $0x384] sm:$0xf] %v456_v60  ;;  %v624_v59 = vpack.c.bf16 %v592_v48, %v592_v48  ;;  %v5023_v48 = vld [vmem:[%s6581_s1 + $0x1f0] sm:$0xff] }
  0x72   : > { %v4947_v6 = vld [vmem:[#allocation3 + $0x410] sm:$0xf0]  ;;  %395 = vst.msk [vmem:[#allocation2 + $0x169] sm:$0xff] %vm366_vm0, %v361_v52  ;;  %3099 = vmatpush.bf16.msrb.mxu0 %v4993_v41 }
  0x73   : > { %2754 = vmatmul.bf16.gmra.mxu0 %v3991_v2  ;;  %v4423_v10 = vor.u32 %v4947_v6, %v4422_v3  ;;  %396 = vst.msk [vmem:[#allocation2 + $0x171] sm:$0xff] %vm366_vm0, %v362_v61  ;;  %v4206_v23 = vld [vmem:[#allocation3 + $0x240] sm:$0xf]  ;;  %v5016_v2 = vld [vmem:[%s6581_s1 + $0x1b8] sm:$0xff] }
  0x74   : > { %391 = vst.msk [vmem:[#allocation2 + $0x139] sm:$0xff] %vm366_vm0, %v357_v4  ;;  %v4893_v24 = vld [vmem:[#allocation3 + $0x260] sm:$0xf0]  ;;  %v5024_v3 = vld [vmem:[%s6581_s1 + $0x1f8] sm:$0xff]  ;;  %3270 = vmatpush.bf16.msra.mxu2 %v5016_v2 }
  0x75   : > { %2814 = vmatmul.bf16.vlgmr.msra.gmra.mxu3 %v4423_v10  ;;  %v405_v15 = vld [vmem:[#allocation2 + $0x48] sm:$0xff]  ;;  %392 = vst.msk [vmem:[#allocation2 + $0x141] sm:$0xff] %vm366_vm0, %v358_v8  ;;  %v4207_v28 = vor.u32 %v4893_v24, %v4206_v23  ;;  %v499_v6 = vld [vmem:[#allocation2 + $0x31] sm:$0xff]  ;;  %v532_v8 = vpack.c.bf16 %v500_v7, %v500_v7 }
  0x76   : > { %v406_v16 = vld [vmem:[#allocation2 + $0x50] sm:$0xff]  ;;  %v5377_v17 = vpack.c.bf16 %v405_v15, %v405_v15  ;;  %559 = vst [vmem:[#allocation3 + $0x4] sm:$0xf] %v527_v9  ;;  %3359 = vmatpush.bf16.msra.mxu3 %v5024_v3  ;;  %v593_v9 = vld [vmem:[#allocation2 + $0x1a] sm:$0xff]  ;;  %v594_v10 = vld [vmem:[#allocation2 + $0x22] sm:$0xff] }
  0x77   : > { %v5382_v20 = vpack.c.bf16 %v406_v16, %v406_v16  ;;  %560 = vst [vmem:[#allocation3 + $0x28] sm:$0xf] %v528_v11  ;;  %v4350_v54 = vld [vmem:[#allocation3 + $0x360] sm:$0xf]  ;;  %v625_v12 = vpack.c.bf16 %v593_v9, %v593_v9  ;;  %v626_v13 = vpack.c.bf16 %v594_v10, %v594_v10  ;;  %v505_v9 = vld [vmem:[#allocation2 + $0x79] sm:$0xff]  ;;  %v506_v10 = vld [vmem:[#allocation2 + $0x81] sm:$0xff] }
  0x78   : > { %469 = vst [vmem:[#allocation3 + $0xd8] sm:$0xf] %v5377_v17  ;;  %v4929_v60 = vld [vmem:[#allocation3 + $0x380] sm:$0xf0] }
  0x79   : > { %470 = vst [vmem:[#allocation3 + $0xfc] sm:$0xf] %v5382_v20  ;;  %v429_v25 = vld [vmem:[#allocation2 + $0x168] sm:$0xff]  ;;  %v4351_v62 = vor.u32 %v4929_v60, %v4350_v54 }
  0x7a   : > { %v430_v26 = vld [vmem:[#allocation2 + $0x170] sm:$0xff]  ;;  %v461_v27 = vpack.c.bf16 %v429_v25, %v429_v25  ;;  %373 = vst.msk [vmem:[#allocation2 + $0x61] sm:$0xff] %vm366_vm0, %v339_v21  ;;  %3360 = vmatpush.bf16.msra.mxu3 %v5023_v48 }
  0x7b   : > { %2799 = vmatmul.bf16.gmra.mxu2 %v4315_v19  ;;  %v462_v29 = vpack.c.bf16 %v430_v26, %v430_v26  ;;  %v425_v31 = vld [vmem:[#allocation2 + $0x138] sm:$0xff]  ;;  %374 = vst.msk [vmem:[#allocation2 + $0x69] sm:$0xff] %vm366_vm0, %v340_v22  ;;  %v501_v25 = vld [vmem:[#allocation2 + $0x49] sm:$0xff] }
  0x7c   : > { %493 = vst [vmem:[#allocation3 + $0x438] sm:$0xf] %v461_v27  ;;  %v426_v35 = vld [vmem:[#allocation2 + $0x140] sm:$0xff]  ;;  %v457_v36 = vpack.c.bf16 %v425_v31, %v425_v31  ;;  %v502_v26 = vld [vmem:[#allocation2 + $0x51] sm:$0xff]  ;;  %v533_v27 = vpack.c.bf16 %v501_v25, %v501_v25 }
  0x7d   : > { %494 = vst [vmem:[#allocation3 + $0x45c] sm:$0xf] %v462_v29  ;;  %v458_v38 = vpack.c.bf16 %v426_v35, %v426_v35  ;;  %v595_v29 = vld [vmem:[#allocation2 + $0x32] sm:$0xff]  ;;  %v596_v31 = vld [vmem:[#allocation2 + $0x3a] sm:$0xff]  ;;  %v597_v54 = vld [vmem:[#allocation2 + $0x4a] sm:$0xff] }
  0x7e   : > { %489 = vst [vmem:[#allocation3 + $0x3a8] sm:$0xf] %v457_v36  ;;  %v3920_v63 = vld [vmem:[#allocation3 + $0x24] sm:$0xf0]  ;;  %v627_v34 = vpack.c.bf16 %v595_v29, %v595_v29  ;;  %v628_v35 = vpack.c.bf16 %v596_v31, %v596_v31  ;;  %v629_v60 = vpack.c.bf16 %v597_v54, %v597_v54 }
  0x7f   : > { %2784 = vmatmul.bf16.gmra.mxu1 %v4207_v28  ;;  %v4026_v44 = vld [vmem:[#allocation3 + $0xd8] sm:$0xf]  ;;  %490 = vst [vmem:[#allocation3 + $0x3cc] sm:$0xf] %v458_v38  ;;  %v534_v28 = vpack.c.bf16 %v502_v26, %v502_v26 }
  0x80   : > { %v4848_v47 = vld [vmem:[#allocation3 + $0xf8] sm:$0xf0]  ;;  %751 = vst [vmem:[#allocation3 + $0xc] sm:$0xf] %v5282_v55 }
  0x81   : > { %v4027_v49 = vor.u32 %v4848_v47, %v4026_v44  ;;  %v407_v50 = vld [vmem:[#allocation2 + $0x60] sm:$0xff]  ;;  %752 = vst [vmem:[#allocation3 + $0x30] sm:$0xf] %v5284_v57  ;;  %v4817_v57 = vld [vmem:[#allocation3 + $0x4] sm:$0xf] }
  0x82   : > { %v408_v51 = vld [vmem:[#allocation2 + $0x68] sm:$0xff]  ;;  %v439_v52 = vpack.c.bf16 %v407_v50, %v407_v50  ;;  %561 = vst [vmem:[#allocation3 + $0x4c] sm:$0xf] %v529_v43  ;;  %v3923_v0 = vor.u32 %v4817_v57, %v3920_v63  ;;  %v5015_v47 = vld [vmem:[%s6581_s1 + $0x1b0] sm:$0xff] }
  0x83   : > { %2759 = vmatmul.bf16.gmra.mxu0 %v4027_v49  ;;  %v4458_v56 = vld [vmem:[#allocation3 + $0x438] sm:$0xf]  ;;  %v440_v58 = vpack.c.bf16 %v408_v51, %v408_v51  ;;  %562 = vst [vmem:[#allocation3 + $0x70] sm:$0xf] %v530_v45  ;;  %v5007_v49 = vld [vmem:[%s6581_s1 + $0x170] sm:$0xff]  ;;  %3271 = vmatpush.bf16.msra.mxu2 %v5015_v47 }
  0x84   : > { %v4956_v61 = vld [vmem:[#allocation3 + $0x458] sm:$0xf0]  ;;  %471 = vst [vmem:[#allocation3 + $0x120] sm:$0xf] %v439_v52  ;;  %v5031_v50 = vld [vmem:[%s6581_s1 + $0x230] sm:$0xff]  ;;  %3182 = vmatpush.bf16.msra.mxu1 %v5007_v49 }
  0x85   : > { %v4459_v55 = vor.u32 %v4956_v61, %v4458_v56  ;;  %472 = vst [vmem:[#allocation3 + $0x144] sm:$0xf] %v440_v58 }
  0x86   : > { %655 = vst [vmem:[#allocation3 + $0x8] sm:$0xf] %v623_v53  ;;  %v4938_v18 = vld [vmem:[#allocation3 + $0x3c8] sm:$0xf0]  ;;  %v504_v53 = vld [vmem:[#allocation2 + $0x69] sm:$0xff] }
  0x87   : > { %2819 = vmatmul.bf16.gmra.mxu3 %v4459_v55  ;;  %656 = vst [vmem:[#allocation3 + $0x2c] sm:$0xf] %v624_v59  ;;  %v4818_v14 = vld [vmem:[#allocation3 + $0xc] sm:$0xf]  ;;  %v598_v59 = vld [vmem:[#allocation2 + $0x52] sm:$0xff] }
  0x88   : > { %847 = vst [vmem:[#allocation3 + $0x10] sm:$0xf] %v529_v43  ;;  %v3928_v15 = vld [vmem:[#allocation3 + $0x2c] sm:$0xf0] }
  0x89   : > { %848 = vst [vmem:[#allocation3 + $0x34] sm:$0xf] %v530_v45  ;;  %v3931_v16 = vor.u32 %v4818_v14, %v3928_v15  ;;  %v538_v14 = vpack.c.bf16 %v506_v10, %v506_v10  ;;  %v600_v15 = vld [vmem:[#allocation2 + $0x6a] sm:$0xff] }
  0x8a   : > { %753 = vst [vmem:[#allocation3 + $0x54] sm:$0xf] %v5324_v30  ;;  %v5032_v30 = vld [vmem:[%s6581_s1 + $0x238] sm:$0xff]  ;;  %v3956_v21 = vld [vmem:[#allocation3 + $0x6c] sm:$0xf0] }
  0x8b   : > { %2804 = vmatmul.bf16.gmra.mxu2 %v4351_v62  ;;  %v4062_v1 = vld [vmem:[#allocation3 + $0x120] sm:$0xf]  ;;  %754 = vst [vmem:[#allocation3 + $0x78] sm:$0xf] %v5327_v33  ;;  %3448 = vmatpush.bf16.msra.mxu0 %v5032_v30  ;;  %v531_v33 = vpack.c.bf16 %v499_v6, %v499_v6  ;;  %v630_v62 = vpack.c.bf16 %v598_v59, %v598_v59 }
  0x8c   : > { %v4857_v4 = vld [vmem:[#allocation3 + $0x140] sm:$0xf0]  ;;  %755 = vst [vmem:[#allocation3 + $0x9c] sm:$0xf] %v5377_v17  ;;  %v4386_v17 = vld [vmem:[#allocation3 + $0x3a8] sm:$0xf]  ;;  %v728_v6 = vpack.c.bf16 %v696_v5, %v696_v5 }
  0x8d   : > { %756 = vst [vmem:[#allocation3 + $0xc0] sm:$0xf] %v5382_v20  ;;  %v4063_v11 = vor.u32 %v4857_v4, %v4062_v1  ;;  %v4387_v19 = vor.u32 %v4938_v18, %v4386_v17  ;;  %v4826_v20 = vld [vmem:[#allocation3 + $0x4c] sm:$0xf]  ;;  %v3926_v39 = vld [vmem:[#allocation3 + $0x8] sm:$0xf] }
  0x8e   : > { %757 = vst [vmem:[#allocation3 + $0xe4] sm:$0xf] %v439_v52  ;;  %v3959_v22 = vor.u32 %v4826_v20, %v3956_v21  ;;  %v4822_v40 = vld [vmem:[#allocation3 + $0x28] sm:$0xf0]  ;;  %v503_v52 = vld [vmem:[#allocation2 + $0x61] sm:$0xff]  ;;  %v509_v5 = vld [vmem:[#allocation2 + $0xa9] sm:$0xff] }
  0x8f   : > { %2833 = vmatmul.bf16.vlgmr.msrb.gmra.mxu1 %v3923_v0  ;;  %758 = vst [vmem:[#allocation3 + $0x108] sm:$0xf] %v440_v58  ;;  %v3934_v23 = vld [vmem:[#allocation3 + $0x10] sm:$0xf]  ;;  %v3927_v41 = vor.u32 %v4822_v40, %v3926_v39  ;;  %3449 = vmatpush.bf16.msra.mxu0 %v5031_v50  ;;  %v535_v56 = vpack.c.bf16 %v503_v52, %v503_v52  ;;  %v695_v4 = vld [vmem:[#allocation2 + $0x78] sm:$0xff]  ;;  %v5030_v39 = vld [vmem:[%s6581_s1 + $0x228] sm:$0xff] }
  0x90   : > { %563 = vst [vmem:[#allocation3 + $0x94] sm:$0xf] %v531_v33  ;;  %v4823_v24 = vld [vmem:[#allocation3 + $0x30] sm:$0xf0]  ;;  %v536_v58 = vpack.c.bf16 %v504_v53, %v504_v53  ;;  %v727_v30 = vpack.c.bf16 %v695_v4, %v695_v4  ;;  %v507_v40 = vld [vmem:[#allocation2 + $0x91] sm:$0xff] }
  0x91   : > { %564 = vst [vmem:[#allocation3 + $0xb8] sm:$0xf] %v532_v8  ;;  %v3935_v32 = vor.u32 %v4823_v24, %v3934_v23  ;;  %v4827_v36 = vld [vmem:[#allocation3 + $0x54] sm:$0xf] }
  0x92   : > { %657 = vst [vmem:[#allocation3 + $0x50] sm:$0xf] %v625_v12  ;;  %v3964_v37 = vld [vmem:[#allocation3 + $0x74] sm:$0xf0] }
  0x93   : > { %2764 = vmatmul.bf16.gmra.mxu0 %v4063_v11  ;;  %658 = vst [vmem:[#allocation3 + $0x74] sm:$0xf] %v626_v13  ;;  %v3967_v38 = vor.u32 %v4827_v36, %v3964_v37  ;;  %v4836_v61 = vld [vmem:[#allocation3 + $0x9c] sm:$0xf]  ;;  %v599_v11 = vld [vmem:[#allocation2 + $0x62] sm:$0xff]  ;;  %v537_v13 = vpack.c.bf16 %v505_v9, %v505_v9  ;;  %v604_v9 = vld [vmem:[#allocation2 + $0x9a] sm:$0xff] }
  0x94   : > { %849 = vst [vmem:[#allocation3 + $0x58] sm:$0xf] %v531_v33  ;;  %v4000_v55 = vld [vmem:[#allocation3 + $0xbc] sm:$0xf0]  ;;  %3450 = vmatpush.bf16.msra.mxu0 %v5030_v39  ;;  %v5029_v39 = vld [vmem:[%s6581_s1 + $0x220] sm:$0xff] }
  0x95   : > { %850 = vst [vmem:[#allocation3 + $0x7c] sm:$0xf] %v532_v8  ;;  %v4003_v57 = vor.u32 %v4836_v61, %v4000_v55  ;;  %v4845_v17 = vld [vmem:[#allocation3 + $0xe4] sm:$0xf]  ;;  %v699_v55 = vld [vmem:[#allocation2 + $0xa8] sm:$0xff] }
  0x96   : > { %565 = vst [vmem:[#allocation3 + $0xdc] sm:$0xf] %v533_v27  ;;  %v4036_v18 = vld [vmem:[#allocation3 + $0x104] sm:$0xf0] }
  0x97   : > { %3011 = vmatmul.bf16.vlgmr.msrb.gmra.mxu3 %v3931_v16  ;;  %566 = vst [vmem:[#allocation3 + $0x100] sm:$0xf] %v534_v28  ;;  %v4835_v42 = vld [vmem:[#allocation3 + $0x94] sm:$0xf]  ;;  %v631_v16 = vpack.c.bf16 %v599_v11, %v599_v11  ;;  %v4039_v20 = vor.u32 %v4845_v17, %v4036_v18 }
  0x98   : > { %659 = vst [vmem:[#allocation3 + $0x98] sm:$0xf] %v627_v34  ;;  %v3992_v43 = vld [vmem:[#allocation3 + $0xb4] sm:$0xf0]  ;;  %3451 = vmatpush.bf16.msra.mxu0 %v5029_v39 }
  0x99   : > { %660 = vst [vmem:[#allocation3 + $0xbc] sm:$0xf] %v628_v35  ;;  %v3995_v45 = vor.u32 %v4835_v42, %v3992_v43  ;;  %v3962_v63 = vld [vmem:[#allocation3 + $0x50] sm:$0xf]  ;;  %v5014_v34 = vld [vmem:[%s6581_s1 + $0x1a8] sm:$0xff]  ;;  %v539_v43 = vpack.c.bf16 %v507_v40, %v507_v40 }
  0x9a   : > { %851 = vst [vmem:[#allocation3 + $0xa0] sm:$0xf] %v533_v27  ;;  %v4831_v0 = vld [vmem:[#allocation3 + $0x70] sm:$0xf0]  ;;  %v697_v27 = vld [vmem:[#allocation2 + $0x90] sm:$0xff]  ;;  %v5022_v35 = vld [vmem:[%s6581_s1 + $0x1e8] sm:$0xff]  ;;  %3272 = vmatpush.bf16.msra.mxu2 %v5014_v34 }
  0x9b   : > { %2809 = vmatmul.bf16.gmra.mxu2 %v4387_v19  ;;  %852 = vst [vmem:[#allocation3 + $0xc4] sm:$0xf] %v534_v28  ;;  %v3970_v44 = vld [vmem:[#allocation3 + $0x58] sm:$0xf]  ;;  %v3963_v1 = vor.u32 %v4831_v0, %v3962_v63  ;;  %v632_v19 = vpack.c.bf16 %v600_v15, %v600_v15  ;;  %v698_v28 = vld [vmem:[#allocation2 + $0x98] sm:$0xff]  ;;  %v729_v29 = vpack.c.bf16 %v697_v27, %v697_v27 }
  0x9c   : > { %v4832_v46 = vld [vmem:[#allocation3 + $0x78] sm:$0xf0]  ;;  %567 = vst [vmem:[#allocation3 + $0x124] sm:$0xf] %v535_v56  ;;  %v730_v31 = vpack.c.bf16 %v698_v28, %v698_v28  ;;  %3361 = vmatpush.bf16.msra.mxu3 %v5022_v35  ;;  %v508_v42 = vld [vmem:[#allocation2 + $0x99] sm:$0xff]  ;;  %v511_v40 = vld [vmem:[#allocation2 + $0xc1] sm:$0xff] }
  0x9d   : > { %v3971_v51 = vor.u32 %v4832_v46, %v3970_v44  ;;  %568 = vst [vmem:[#allocation3 + $0x148] sm:$0xf] %v536_v58  ;;  %v4844_v2 = vld [vmem:[#allocation3 + $0xdc] sm:$0xf]  ;;  %v601_v44 = vld [vmem:[#allocation2 + $0x7a] sm:$0xff]  ;;  %v540_v49 = vpack.c.bf16 %v508_v42, %v508_v42 }
  0x9e   : > { %661 = vst [vmem:[#allocation3 + $0xe0] sm:$0xf] %v629_v60  ;;  %v4028_v3 = vld [vmem:[#allocation3 + $0xfc] sm:$0xf0]  ;;  %v633_v50 = vpack.c.bf16 %v601_v44, %v601_v44 }
  0x9f   : > { %2838 = vmatmul.bf16.gmra.mxu1 %v3959_v22  ;;  %662 = vst [vmem:[#allocation3 + $0x104] sm:$0xf] %v630_v62  ;;  %v4031_v7 = vor.u32 %v4844_v2, %v4028_v3  ;;  %v3998_v21 = vld [vmem:[#allocation3 + $0x98] sm:$0xf]  ;;  %v700_v62 = vld [vmem:[#allocation2 + $0xb0] sm:$0xff] }
  0xa0   : > { %853 = vst [vmem:[#allocation3 + $0xe8] sm:$0xf] %v535_v56  ;;  %v4840_v22 = vld [vmem:[#allocation3 + $0xb8] sm:$0xf0]  ;;  %v732_v63 = vpack.c.bf16 %v700_v62, %v700_v62 }
  0xa1   : > { %854 = vst [vmem:[#allocation3 + $0x10c] sm:$0xf] %v536_v58  ;;  %v4006_v33 = vld [vmem:[#allocation3 + $0xa0] sm:$0xf]  ;;  %v3999_v23 = vor.u32 %v4840_v22, %v3998_v21 }
  0xa2   : > { %759 = vst [vmem:[#allocation3 + $0x12c] sm:$0xf] %v727_v30  ;;  %v4841_v8 = vld [vmem:[#allocation3 + $0xc0] sm:$0xf0]  ;;  %v512_v42 = vld [vmem:[#allocation2 + $0xc9] sm:$0xff] }
  0xa3   : > { %3100 = vmatmul.bf16.vlgmr.msrb.gmra.mxu0 %v3935_v32  ;;  %760 = vst [vmem:[#allocation3 + $0x150] sm:$0xf] %v728_v6  ;;  %v4007_v12 = vor.u32 %v4841_v8, %v4006_v33  ;;  %v4853_v24 = vld [vmem:[#allocation3 + $0x124] sm:$0xf]  ;;  %v541_v33 = vpack.c.bf16 %v509_v5, %v509_v5  ;;  %v605_v44 = vld [vmem:[#allocation2 + $0xaa] sm:$0xff] }
  0xa4   : > { %569 = vst [vmem:[#allocation3 + $0x16c] sm:$0xf] %v537_v13  ;;  %v4064_v26 = vld [vmem:[#allocation3 + $0x144] sm:$0xf0] }
  0xa5   : > { %570 = vst [vmem:[#allocation3 + $0x190] sm:$0xf] %v538_v14  ;;  %v4067_v32 = vor.u32 %v4853_v24, %v4064_v26  ;;  %v4034_v54 = vld [vmem:[#allocation3 + $0xe0] sm:$0xf]  ;;  %v701_v24 = vld [vmem:[#allocation2 + $0xc0] sm:$0xff]  ;;  %v702_v26 = vld [vmem:[#allocation2 + $0xc8] sm:$0xff] }
  0xa6   : > { %663 = vst [vmem:[#allocation3 + $0x128] sm:$0xf] %v631_v16  ;;  %v4849_v56 = vld [vmem:[#allocation3 + $0x100] sm:$0xf0]  ;;  %v733_v27 = vpack.c.bf16 %v701_v24, %v701_v24  ;;  %v734_v28 = vpack.c.bf16 %v702_v26, %v702_v26 }
  0xa7   : > { %3016 = vmatmul.bf16.gmra.mxu3 %v3967_v38  ;;  %664 = vst [vmem:[#allocation3 + $0x14c] sm:$0xf] %v632_v19  ;;  %v4042_v36 = vld [vmem:[#allocation3 + $0xe8] sm:$0xf]  ;;  %v5006_v38 = vld [vmem:[%s6581_s1 + $0x168] sm:$0xff]  ;;  %v4035_v58 = vor.u32 %v4849_v56, %v4034_v54 }
  0xa8   : > { %855 = vst [vmem:[#allocation3 + $0x130] sm:$0xf] %v537_v13  ;;  %v5435_v25 = vpop.f32.mrf.mxu1  ;;  %v4850_v37 = vld [vmem:[#allocation3 + $0x108] sm:$0xf0]  ;;  %3183 = vmatpush.bf16.msra.mxu1 %v5006_v38  ;;  %v510_v30 = vld [vmem:[#allocation2 + $0xb1] sm:$0xff]  ;;  %v5005_v38 = vld [vmem:[%s6581_s1 + $0x160] sm:$0xff] }
  0xa9   : > { %856 = vst [vmem:[#allocation3 + $0x154] sm:$0xf] %v538_v14  ;;  %v4854_v47 = vld [vmem:[#allocation3 + $0x12c] sm:$0xf]  ;;  %v603_v6 = vld [vmem:[#allocation2 + $0x92] sm:$0xff]  ;;  %v542_v8 = vpack.c.bf16 %v510_v30, %v510_v30  ;;  %v636_v14 = vpack.c.bf16 %v604_v9, %v604_v9 }
  0xaa   : > { %761 = vst [vmem:[#allocation3 + $0x174] sm:$0xf] %v729_v29  ;;  %v4072_v48 = vld [vmem:[#allocation3 + $0x14c] sm:$0xf0]  ;;  %v635_v10 = vpack.c.bf16 %v603_v6, %v603_v6 }
  0xab   : > { %2922 = vmatmul.bf16.vlgmr.msrb.gmra.mxu2 %v3927_v41  ;;  %762 = vst [vmem:[#allocation3 + $0x198] sm:$0xf] %v730_v31  ;;  %v4043_v41 = vor.u32 %v4850_v37, %v4042_v36  ;;  %v4075_v53 = vor.u32 %v4854_v47, %v4072_v48  ;;  %v4862_v59 = vld [vmem:[#allocation3 + $0x16c] sm:$0xf]  ;;  %v5013_v31 = vld [vmem:[%s6581_s1 + $0x1a0] sm:$0xff] }
  0xac   : > { %571 = vst [vmem:[#allocation3 + $0x1b4] sm:$0xf] %v539_v43  ;;  %v4100_v61 = vld [vmem:[#allocation3 + $0x18c] sm:$0xf0]  ;;  %3273 = vmatpush.bf16.msra.mxu2 %v5013_v31  ;;  %3184 = vmatpush.bf16.msra.mxu1 %v5005_v38 }
  0xad   : > { %572 = vst [vmem:[#allocation3 + $0x1d8] sm:$0xf] %v540_v49  ;;  %v4103_v0 = vor.u32 %v4862_v59, %v4100_v61  ;;  %v4070_v16 = vld [vmem:[#allocation3 + $0x128] sm:$0xf] }
  0xae   : > { %665 = vst [vmem:[#allocation3 + $0x170] sm:$0xf] %v633_v50  ;;  %v4858_v17 = vld [vmem:[#allocation3 + $0x148] sm:$0xf0]  ;;  %v544_v50 = vpack.c.bf16 %v512_v42, %v512_v42 }
  0xaf   : > { %2843 = vmatmul.bf16.gmra.mxu1 %v3995_v45  ;;  %v602_v45 = vld [vmem:[#allocation2 + $0x82] sm:$0xff]  ;;  %857 = vst [vmem:[#allocation3 + $0x178] sm:$0xf] %v539_v43  ;;  %v543_v43 = vpack.c.bf16 %v511_v40, %v511_v40  ;;  %v706_v42 = vld [vmem:[#allocation2 + $0xf8] sm:$0xff] }
  0xb0   : > { %v5451_v52 = vpop.f32.mrf.mxu1  ;;  %858 = vst [vmem:[#allocation3 + $0x19c] sm:$0xf] %v540_v49  ;;  %v4078_v2 = vld [vmem:[#allocation3 + $0x130] sm:$0xf]  ;;  %v4859_v3 = vld [vmem:[#allocation3 + $0x150] sm:$0xf0] }
  0xb1   : > { %764 = vst [vmem:[#allocation3 + $0x1e0] sm:$0xf] %v732_v63 }
  0xb2   : > { %v4108_v13 = vld [vmem:[#allocation3 + $0x194] sm:$0xf0]  ;;  %573 = vst [vmem:[#allocation3 + $0x1fc] sm:$0xf] %v541_v33 }
  0xb3   : > { %3105 = vmatmul.bf16.gmra.mxu0 %v3971_v51  ;;  %v634_v51 = vpack.c.bf16 %v602_v45, %v602_v45  ;;  %574 = vst [vmem:[#allocation3 + $0x220] sm:$0xf] %v542_v8  ;;  %v4871_v21 = vld [vmem:[#allocation3 + $0x1b4] sm:$0xf]  ;;  %v606_v45 = vld [vmem:[#allocation2 + $0xb2] sm:$0xff] }
  0xb4   : > { %667 = vst [vmem:[#allocation3 + $0x1b8] sm:$0xf] %v635_v10  ;;  %v513_v10 = vld [vmem:[#allocation2 + $0xd9] sm:$0xff] }
  0xb5   : > { %666 = vst [vmem:[#allocation3 + $0x194] sm:$0xf] %v634_v51  ;;  %v637_v51 = vpack.c.bf16 %v605_v44, %v605_v44  ;;  %v4106_v56 = vld [vmem:[#allocation3 + $0x170] sm:$0xf]  ;;  %v738_v44 = vpack.c.bf16 %v706_v42, %v706_v42 }
  0xb6   : > { %668 = vst [vmem:[#allocation3 + $0x1dc] sm:$0xf] %v636_v14  ;;  %v4114_v35 = vld [vmem:[#allocation3 + $0x178] sm:$0xf] }
  0xb7   : > { %3021 = vmatmul.bf16.gmra.mxu3 %v4003_v57  ;;  %v731_v57 = vpack.c.bf16 %v699_v55, %v699_v55  ;;  %859 = vst [vmem:[#allocation3 + $0x1c0] sm:$0xf] %v541_v33  ;;  %v4868_v36 = vld [vmem:[#allocation3 + $0x198] sm:$0xf0] }
  0xb8   : > { %860 = vst [vmem:[#allocation3 + $0x1e4] sm:$0xf] %v542_v8  ;;  %v4144_v49 = vld [vmem:[#allocation3 + $0x1dc] sm:$0xf0] }
  0xb9   : > { %763 = vst [vmem:[#allocation3 + $0x1bc] sm:$0xf] %v731_v57  ;;  %v4880_v62 = vld [vmem:[#allocation3 + $0x1fc] sm:$0xf] }
  0xba   : > { %765 = vst [vmem:[#allocation3 + $0x204] sm:$0xf] %v733_v27 }
  0xbb   : > { %2927 = vmatmul.bf16.gmra.mxu2 %v3963_v1  ;;  %766 = vst [vmem:[#allocation3 + $0x228] sm:$0xf] %v734_v28 }
  0xbc   : > { %575 = vst [vmem:[#allocation3 + $0x244] sm:$0xf] %v543_v43 }
  0xbd   : > { %576 = vst [vmem:[#allocation3 + $0x268] sm:$0xf] %v544_v50  ;;  %v4876_v31 = vld [vmem:[#allocation3 + $0x1d8] sm:$0xf0] }
  0xbe   : > { %669 = vst [vmem:[#allocation3 + $0x200] sm:$0xf] %v637_v51  ;;  %v4150_v33 = vld [vmem:[#allocation3 + $0x1c0] sm:$0xf] }
  0xbf   : > { %2848 = vmatmul.bf16.gmra.mxu1 %v4031_v7  ;;  %v4079_v7 = vor.u32 %v4859_v3, %v4078_v2  ;;  %861 = vst [vmem:[#allocation3 + $0x208] sm:$0xf] %v543_v43  ;;  %v703_v2 = vld [vmem:[#allocation2 + $0xd8] sm:$0xff]  ;;  %v704_v3 = vld [vmem:[#allocation2 + $0xe0] sm:$0xff]  ;;  %v4877_v8 = vld [vmem:[#allocation3 + $0x1e0] sm:$0xf0] }
  0xc0   : > { %v4872_v48 = vld [vmem:[#allocation3 + $0x1bc] sm:$0xf]  ;;  %862 = vst [vmem:[#allocation3 + $0x22c] sm:$0xf] %v544_v50  ;;  %v735_v5 = vpack.c.bf16 %v703_v2, %v703_v2  ;;  %v736_v30 = vpack.c.bf16 %v704_v3, %v704_v3  ;;  %v4151_v14 = vor.u32 %v4877_v8, %v4150_v33  ;;  %v5020_v50 = vld [vmem:[%s6581_s1 + $0x1d8] sm:$0xff] }
  0xc1   : > { %v4147_v54 = vor.u32 %v4872_v48, %v4144_v49  ;;  %v4881_v24 = vld [vmem:[#allocation3 + $0x204] sm:$0xf]  ;;  %v5012_v49 = vld [vmem:[%s6581_s1 + $0x198] sm:$0xff]  ;;  %770 = vst [vmem:[#allocation3 + $0x2b8] sm:$0xf] %v738_v44 }
  0xc2   : > { %767 = vst [vmem:[#allocation3 + $0x24c] sm:$0xf] %v735_v5  ;;  %v4180_v26 = vld [vmem:[#allocation3 + $0x224] sm:$0xf0]  ;;  %3274 = vmatpush.bf16.msra.mxu2 %v5012_v49 }
  0xc3   : > { %3110 = vmatmul.bf16.gmra.mxu0 %v4007_v12  ;;  %v4863_v12 = vld [vmem:[#allocation3 + $0x174] sm:$0xf]  ;;  %768 = vst [vmem:[#allocation3 + $0x270] sm:$0xf] %v736_v30  ;;  %v4183_v28 = vor.u32 %v4881_v24, %v4180_v26  ;;  %v4889_v38 = vld [vmem:[#allocation3 + $0x244] sm:$0xf] }
  0xc4   : > { %v4111_v15 = vor.u32 %v4863_v12, %v4108_v13  ;;  %v514_v12 = vld [vmem:[#allocation2 + $0xe1] sm:$0xff]  ;;  %v4208_v40 = vld [vmem:[#allocation3 + $0x264] sm:$0xf0] }
  0xc5   : > { %v607_v13 = vld [vmem:[#allocation2 + $0xc2] sm:$0xff]  ;;  %v4211_v48 = vor.u32 %v4889_v38, %v4208_v40  ;;  %v708_v38 = vld [vmem:[#allocation2 + $0x110] sm:$0xff] }
  0xc6   : > { %v610_v30 = vld [vmem:[#allocation2 + $0xe2] sm:$0xff] }
  0xc7   : > { %3026 = vmatmul.bf16.gmra.mxu3 %v4039_v20  ;;  %v4071_v20 = vor.u32 %v4858_v17, %v4070_v16  ;;  %v546_v16 = vpack.c.bf16 %v514_v12, %v514_v12  ;;  %v608_v17 = vld [vmem:[#allocation2 + $0xca] sm:$0xff]  ;;  %v642_v12 = vpack.c.bf16 %v610_v30, %v610_v30 }
  0xc8   : > { %v640_v27 = vpack.c.bf16 %v608_v17, %v608_v17 }
  0xc9   : > { %578 = vst [vmem:[#allocation3 + $0x2b0] sm:$0xf] %v546_v16  ;;  %v4890_v8 = vld [vmem:[#allocation3 + $0x24c] sm:$0xf] }
  0xca   : > { %672 = vst [vmem:[#allocation3 + $0x26c] sm:$0xf] %v640_v27 }
  0xcb   : > { %2932 = vmatmul.bf16.gmra.mxu2 %v3999_v23  ;;  %v4136_v23 = vld [vmem:[#allocation3 + $0x1d4] sm:$0xf0]  ;;  %864 = vst [vmem:[#allocation3 + $0x274] sm:$0xf] %v546_v16  ;;  %v4178_v16 = vld [vmem:[#allocation3 + $0x200] sm:$0xf] }
  0xcc   : > { %v4139_v29 = vor.u32 %v4871_v21, %v4136_v23  ;;  %674 = vst [vmem:[#allocation3 + $0x2b4] sm:$0xf] %v642_v12 }
  0xcf   : > { %2853 = vmatmul.bf16.gmra.mxu1 %v4067_v32  ;;  %v5021_v32 = vld [vmem:[%s6581_s1 + $0x1e0] sm:$0xff] }
  0xd0   : > { %v5449_v46 = vpop.f32.mrf.mxu0  ;;  %3362 = vmatpush.bf16.msra.mxu3 %v5021_v32 }
  0xd3   : > { %3115 = vmatmul.bf16.gmra.mxu0 %v4043_v41  ;;  %v4115_v41 = vor.u32 %v4868_v36, %v4114_v35 }
  0xd4   : > { %3363 = vmatpush.bf16.msra.mxu3 %v5020_v50 }
  0xd7   : > { %3031 = vmatmul.bf16.gmra.mxu3 %v4075_v53  ;;  %v638_v53 = vpack.c.bf16 %v606_v45, %v606_v45 }
  0xd8   : > { %v5453_v60 = vpop.f32.mrf.mxu0 }
  0xd9   : > { %670 = vst [vmem:[#allocation3 + $0x224] sm:$0xf] %v638_v53  ;;  %v4186_v53 = vld [vmem:[#allocation3 + $0x208] sm:$0xf] }
  0xdb   : > { %2937 = vmatmul.bf16.gmra.mxu2 %v4035_v58  ;;  %v4867_v58 = vld [vmem:[#allocation3 + $0x190] sm:$0xf0] }
  0xdc   : > { %v5455_v1 = vpop.f32.mrf.mxu1  ;;  %v4107_v55 = vor.u32 %v4867_v58, %v4106_v56 }
  0xde   : > { %v5457_v4 = vpop.f32.mrf.mxu2 }
  0xdf   : > { %2858 = vmatmul.bf16.gmra.mxu1 %v4103_v0  ;;  %v4172_v0 = vld [vmem:[#allocation3 + $0x21c] sm:$0xf0] }
  0xe0   : > { %v5459_v11 = vpop.f32.mrf.mxu0  ;;  %v4175_v6 = vor.u32 %v4880_v62, %v4172_v0  ;;  %v516_v62 = vld [vmem:[#allocation2 + $0xf9] sm:$0xff]  ;;  %v4885_v17 = vld [vmem:[#allocation3 + $0x220] sm:$0xf0] }
  0xe1   : > { %v609_v0 = vld [vmem:[#allocation2 + $0xda] sm:$0xff]  ;;  %v548_v5 = vpack.c.bf16 %v516_v62, %v516_v62  ;;  %v4179_v27 = vor.u32 %v4885_v17, %v4178_v16 }
  0xe3   : > { %3120 = vmatmul.bf16.gmra.mxu0 %v4079_v7  ;;  %580 = vst [vmem:[#allocation3 + $0x2f8] sm:$0xf] %v548_v5 }
  0xe4   : > { %v5461_v18 = vpop.f32.mrf.mxu1  ;;  %866 = vst [vmem:[#allocation3 + $0x2bc] sm:$0xf] %v548_v5 }
  0xe6   : > { %v5463_v19 = vpop.f32.mrf.mxu2 }
  0xe7   : > { %3036 = vmatmul.bf16.gmra.mxu3 %v4111_v15  ;;  %v545_v15 = vpack.c.bf16 %v513_v10, %v513_v10  ;;  %v4216_v10 = vld [vmem:[#allocation3 + $0x26c] sm:$0xf0] }
  0xe8   : > { %v5465_v22 = vpop.f32.mrf.mxu0 }
  0xe9   : > { %577 = vst [vmem:[#allocation3 + $0x28c] sm:$0xf] %v545_v15 }
  0xea   : > { %863 = vst [vmem:[#allocation3 + $0x250] sm:$0xf] %v545_v15  ;;  %v4219_v15 = vor.u32 %v4890_v8, %v4216_v10 }
  0xeb   : > { %2942 = vmatmul.bf16.gmra.mxu2 %v4071_v20  ;;  %v639_v20 = vpack.c.bf16 %v607_v13, %v607_v13  ;;  %v5028_v13 = vld [vmem:[%s6581_s1 + $0x218] sm:$0xff] }
  0xec   : > { %v5473_v34 = vpop.f32.mrf.mxu1  ;;  %3452 = vmatpush.bf16.msra.mxu0 %v5028_v13 }
  0xed   : > { %671 = vst [vmem:[#allocation3 + $0x248] sm:$0xf] %v639_v20 }
  0xee   : > { %v5475_v37 = vpop.f32.mrf.mxu2 }
  0xef   : > { %2863 = vmatmul.bf16.gmra.mxu1 %v4139_v29  ;;  %v4142_v29 = vld [vmem:[#allocation3 + $0x1b8] sm:$0xf] }
  0xf0   : > { %v5483_v47 = vpop.f32.mrf.mxu0  ;;  %v4143_v36 = vor.u32 %v4876_v31, %v4142_v29  ;;  %v4244_v31 = vld [vmem:[#allocation3 + $0x2ac] sm:$0xf0] }
  0xf1   : > { %v4222_v44 = vld [vmem:[#allocation3 + $0x250] sm:$0xf] }
  0xf3   : > { %3125 = vmatmul.bf16.gmra.mxu0 %v4115_v41  ;;  %v705_v41 = vld [vmem:[#allocation2 + $0xf0] sm:$0xff] }
  0xf4   : > { %v5485_v59 = vpop.f32.mrf.mxu1  ;;  %v737_v43 = vpack.c.bf16 %v705_v41, %v705_v41  ;;  %v740_v41 = vpack.c.bf16 %v708_v38, %v708_v38  ;;  %v4214_v12 = vld [vmem:[#allocation3 + $0x248] sm:$0xf] }
  0xf6   : > { %v5487_v61 = vpop.f32.mrf.mxu2  ;;  %769 = vst [vmem:[#allocation3 + $0x294] sm:$0xf] %v737_v43 }
  0xf7   : > { %3041 = vmatmul.bf16.gmra.mxu3 %v4147_v54  ;;  %v4886_v54 = vld [vmem:[#allocation3 + $0x228] sm:$0xf0]  ;;  %772 = vst [vmem:[#allocation3 + $0x300] sm:$0xf] %v740_v41 }
  0xf8   : > { %v5489_v57 = vpop.f32.mrf.mxu0  ;;  %v5491_v63 = vpop.f32.mrf.mxu3  ;;  %v4187_v2 = vor.u32 %v4886_v54, %v4186_v53  ;;  %v518_v53 = vld [vmem:[#allocation2 + $0x111] sm:$0xff] }
  0xf9   : > { %v611_v54 = vld [vmem:[#allocation2 + $0xf2] sm:$0xff] }
  0xfb   : > { %2947 = vmatmul.bf16.gmra.mxu2 %v4107_v55  ;;  %v515_v55 = vld [vmem:[#allocation2 + $0xf1] sm:$0xff] }
  0xfc   : > { %v5493_v7 = vpop.f32.mrf.mxu1  ;;  %v547_v3 = vpack.c.bf16 %v515_v55, %v515_v55 }
  0xfd   : > { %v4899_v30 = vld [vmem:[#allocation3 + $0x294] sm:$0xf] }
  0xfe   : > { %v5495_v9 = vpop.f32.mrf.mxu2  ;;  %579 = vst [vmem:[#allocation3 + $0x2d4] sm:$0xf] %v547_v3 }
  0xff   : > { %2868 = vmatmul.bf16.gmra.mxu1 %v4175_v6  ;;  %v641_v6 = vpack.c.bf16 %v609_v0, %v609_v0  ;;  %865 = vst [vmem:[#allocation3 + $0x298] sm:$0xf] %v547_v3  ;;  %v550_v0 = vpack.c.bf16 %v518_v53, %v518_v53  ;;  %v643_v3 = vpack.c.bf16 %v611_v54, %v611_v54 }
 0x100   : > { %v5497_v21 = vpop.f32.mrf.mxu0  ;;  %v5499_v23 = vpop.f32.mrf.mxu3 }
 0x101   : > { %673 = vst [vmem:[#allocation3 + $0x290] sm:$0xf] %v641_v6  ;;  %v4252_v6 = vld [vmem:[#allocation3 + $0x2b4] sm:$0xf0] }
 0x102   : > { %582 = vst [vmem:[#allocation3 + $0x340] sm:$0xf] %v550_v0 }
 0x103   : > { %3130 = vmatmul.bf16.gmra.mxu0 %v4151_v14  ;;  %675 = vst [vmem:[#allocation3 + $0x2d8] sm:$0xf] %v643_v3 }
 0x104   : > { %v5501_v32 = vpop.f32.mrf.mxu1  ;;  %868 = vst [vmem:[#allocation3 + $0x304] sm:$0xf] %v550_v0  ;;  %v520_v0 = vld [vmem:[#allocation2 + $0x129] sm:$0xff] }
 0x106   : > { %v5503_v35 = vpop.f32.mrf.mxu2 }
 0x107   : > { %3046 = vmatmul.bf16.gmra.mxu3 %v4183_v28  ;;  %v4898_v28 = vld [vmem:[#allocation3 + $0x28c] sm:$0xf] }
 0x108   : > { %v5505_v39 = vpop.f32.mrf.mxu0  ;;  %v4247_v43 = vor.u32 %v4898_v28, %v4244_v31  ;;  %v4280_v28 = vld [vmem:[#allocation3 + $0x2f4] sm:$0xf0]  ;;  %v709_v31 = vld [vmem:[#allocation2 + $0x120] sm:$0xff] }
 0x109   : > { %v741_v38 = vpack.c.bf16 %v709_v31, %v709_v31 }
 0x10a   : > { %v5507_v45 = vpop.f32.mrf.mxu3 }
 0x10b   : > { %2952 = vmatmul.bf16.gmra.mxu2 %v4143_v36  ;;  %v707_v36 = vld [vmem:[#allocation2 + $0x108] sm:$0xff]  ;;  %773 = vst [vmem:[#allocation3 + $0x324] sm:$0xf] %v741_v38  ;;  %v4903_v38 = vld [vmem:[#allocation3 + $0x2b0] sm:$0xf0] }
 0x10c   : > { %v2834_v51 = vpop.f32.mrf.mxu1  ;;  %v739_v40 = vpack.c.bf16 %v707_v36, %v707_v36  ;;  %v710_v36 = vld [vmem:[#allocation2 + $0x128] sm:$0xff] }
 0x10d   : > { %v5516_v56 = vadd.f32 %v2834_v51, %v5449_v46  ;;  %v5004_v46 = vld [vmem:[%s6581_s1 + $0x158] sm:$0xff]  ;;  %v517_v51 = vld [vmem:[#allocation2 + $0x109] sm:$0xff] }
 0x10e   : > { %v5518_v58 = vpop.f32.mrf.mxu2  ;;  %3185 = vmatpush.bf16.msra.mxu1 %v5004_v46  ;;  %771 = vst [vmem:[#allocation3 + $0x2dc] sm:$0xf] %v739_v40  ;;  %v549_v62 = vpack.c.bf16 %v517_v51, %v517_v51  ;;  %v4894_v46 = vld [vmem:[#allocation3 + $0x268] sm:$0xf0]  ;;  %v742_v40 = vpack.c.bf16 %v710_v36, %v710_v36 }
 0x10f   : > { %2873 = vmatmul.bf16.gmra.mxu1 %v4211_v48  ;;  %v4895_v48 = vld [vmem:[#allocation3 + $0x270] sm:$0xf0]  ;;  %v4215_v17 = vor.u32 %v4894_v46, %v4214_v12 }
 0x110   : > { %v5520_v33 = vpop.f32.mrf.mxu0  ;;  %v4223_v55 = vor.u32 %v4895_v48, %v4222_v44  ;;  %581 = vst [vmem:[#allocation3 + $0x31c] sm:$0xf] %v549_v62  ;;  %v5011_v44 = vld [vmem:[%s6581_s1 + $0x190] sm:$0xff] }
 0x111   : > { %867 = vst [vmem:[#allocation3 + $0x2e0] sm:$0xf] %v549_v62  ;;  %v5019_v48 = vld [vmem:[%s6581_s1 + $0x1d0] sm:$0xff]  ;;  %3275 = vmatpush.bf16.msra.mxu2 %v5011_v44  ;;  %v519_v62 = vld [vmem:[#allocation2 + $0x121] sm:$0xff] }
 0x112   : > { %v5528_v14 = vpop.f32.mrf.mxu3  ;;  %774 = vst [vmem:[#allocation3 + $0x348] sm:$0xf] %v742_v40  ;;  %3364 = vmatpush.bf16.msra.mxu3 %v5019_v48 }
 0x113   : > { %3135 = vmatmul.bf16.gmra.mxu0 %v4187_v2  ;;  %v612_v2 = vld [vmem:[#allocation2 + $0xfa] sm:$0xff] }
 0x114   : > { %v2836_v20 = vpop.f32.mrf.mxu1  ;;  %v644_v8 = vpack.c.bf16 %v612_v2, %v612_v2  ;;  %v613_v2 = vld [vmem:[#allocation2 + $0x10a] sm:$0xff] }
 0x115   : > { %v5531_v24 = vadd.f32 %v2836_v20, %v5453_v60  ;;  %v4907_v20 = vld [vmem:[#allocation3 + $0x2d4] sm:$0xf]  ;;  %v4908_v46 = vld [vmem:[#allocation3 + $0x2dc] sm:$0xf] }
 0x116   : > { %v5533_v26 = vpop.f32.mrf.mxu2  ;;  %676 = vst [vmem:[#allocation3 + $0x2fc] sm:$0xf] %v644_v8  ;;  %v614_v8 = vld [vmem:[#allocation2 + $0x112] sm:$0xff] }
 0x117   : > { %3051 = vmatmul.bf16.gmra.mxu3 %v4219_v15  ;;  %v4916_v48 = vld [vmem:[#allocation3 + $0x31c] sm:$0xf] }
 0x118   : > { %v5535_v29 = vpop.f32.mrf.mxu0 }
 0x11a   : > { %v5537_v42 = vpop.f32.mrf.mxu3 }
 0x11b   : > { %2957 = vmatmul.bf16.gmra.mxu2 %v4179_v27 }
 0x11c   : > { %v2839_v60 = vpop.f32.mrf.mxu1 }
 0x11d   : > { %v5540_v49 = vadd.f32 %v2839_v60, %v5459_v11  ;;  %v4255_v11 = vor.u32 %v4899_v30, %v4252_v6  ;;  %v4904_v60 = vld [vmem:[#allocation3 + $0x2b8] sm:$0xf0]  ;;  %v551_v30 = vpack.c.bf16 %v519_v62, %v519_v62  ;;  %v552_v6 = vpack.c.bf16 %v520_v0, %v520_v0 }
 0x11e   : > { %v5542_v50 = vpop.f32.mrf.mxu2 }
 0x11f   : > { %2878 = vmatmul.bf16.gmra.mxu1 %v4247_v43  ;;  %v4258_v43 = vld [vmem:[#allocation3 + $0x298] sm:$0xf]  ;;  %583 = vst [vmem:[#allocation3 + $0x364] sm:$0xf] %v551_v30 }
 0x120   : > { %v5544_v5 = vpop.f32.mrf.mxu0  ;;  %584 = vst [vmem:[#allocation3 + $0x388] sm:$0xf] %v552_v6 }
 0x121   : > { %869 = vst [vmem:[#allocation3 + $0x328] sm:$0xf] %v551_v30  ;;  %v4294_v30 = vld [vmem:[#allocation3 + $0x2e0] sm:$0xf] }
 0x122   : > { %v5546_v10 = vpop.f32.mrf.mxu3  ;;  %870 = vst [vmem:[#allocation3 + $0x34c] sm:$0xf] %v552_v6  ;;  %v4913_v6 = vld [vmem:[#allocation3 + $0x300] sm:$0xf0] }
 0x123   : > { %3140 = vmatmul.bf16.gmra.mxu0 %v4223_v55  ;;  %v4259_v55 = vor.u32 %v4904_v60, %v4258_v43 }
 0x124   : > { %v2841_v13 = vpop.f32.mrf.mxu1 }
 0x125   : > { %v5549_v15 = vadd.f32 %v2841_v13, %v5465_v22  ;;  %v4283_v22 = vor.u32 %v4907_v20, %v4280_v28  ;;  %v4288_v13 = vld [vmem:[#allocation3 + $0x2fc] sm:$0xf0] }
 0x126   : > { %v5551_v16 = vpop.f32.mrf.mxu2  ;;  %v5003_v20 = vld [vmem:[%s6581_s1 + $0x150] sm:$0xff]  ;;  %v4291_v31 = vor.u32 %v4908_v46, %v4288_v13  ;;  %v4295_v13 = vor.u32 %v4913_v6, %v4294_v30 }
 0x127   : > { %3056 = vmatmul.bf16.gmra.mxu3 %v4255_v11  ;;  %v645_v11 = vpack.c.bf16 %v613_v2, %v613_v2  ;;  %3186 = vmatpush.bf16.msra.mxu1 %v5003_v20  ;;  %v4352_v6 = vld [vmem:[#allocation3 + $0x384] sm:$0xf0] }
 0x128   : > { %v5553_v27 = vpop.f32.mrf.mxu0 }
 0x129   : > { %677 = vst [vmem:[#allocation3 + $0x320] sm:$0xf] %v645_v11 }
 0x12a   : > { %v5555_v41 = vpop.f32.mrf.mxu3 }
 0x12b   : > { %2962 = vmatmul.bf16.gmra.mxu2 %v4215_v17 }
 0x12c   : > { %v2844_v51 = vpop.f32.mrf.mxu1 }
 0x12d   : > { %v5564_v53 = vadd.f32 %v2844_v51, %v5483_v47  ;;  %v646_v47 = vpack.c.bf16 %v614_v8, %v614_v8 }
 0x12e   : > { %v2923_v54 = vpop.f32.mrf.mxu2 }
 0x12f   : > { %v2924_v3 = vadd.f32 %v2923_v54, %v5516_v56  ;;  %2883 = vmatmul.bf16.gmra.mxu1 %v4283_v22  ;;  %v5027_v56 = vld [vmem:[%s6581_s1 + $0x210] sm:$0xff]  ;;  %678 = vst [vmem:[#allocation3 + $0x344] sm:$0xf] %v646_v47  ;;  %v711_v54 = vld [vmem:[#allocation2 + $0x138] sm:$0xff]  ;;  %v522_v47 = vld [vmem:[#allocation2 + $0x141] sm:$0xff] }
 0x130   : > { %v5567_v12 = vpop.f32.mrf.mxu0  ;;  %3453 = vmatpush.bf16.msra.mxu0 %v5027_v56  ;;  %v743_v0 = vpack.c.bf16 %v711_v54, %v711_v54  ;;  %v4912_v54 = vld [vmem:[#allocation3 + $0x2f8] sm:$0xf0] }
 0x131   : > { %v3013_v17 = vadd.f32 %v5537_v42, %v2924_v3  ;;  %v4250_v42 = vld [vmem:[#allocation3 + $0x290] sm:$0xf] }
 0x132   : > { %v5576_v28 = vpop.f32.mrf.mxu3  ;;  %v4251_v44 = vor.u32 %v4903_v38, %v4250_v42  ;;  %775 = vst [vmem:[#allocation3 + $0x36c] sm:$0xf] %v743_v0  ;;  %v616_v42 = vld [vmem:[#allocation2 + $0x12a] sm:$0xff] }
 0x133   : > { %3145 = vmatmul.bf16.gmra.mxu0 %v4259_v55  ;;  %v5579_v36 = vadd.f32 %v5544_v5, %v3013_v17  ;;  %v4316_v5 = vld [vmem:[#allocation3 + $0x33c] sm:$0xf0]  ;;  %v712_v55 = vld [vmem:[#allocation2 + $0x140] sm:$0xff] }
 0x134   : > { %v2846_v40 = vpop.f32.mrf.mxu1  ;;  %v744_v2 = vpack.c.bf16 %v712_v55, %v712_v55  ;;  %v615_v17 = vld [vmem:[#allocation2 + $0x122] sm:$0xff] }
 0x135   : > { %v5582_v43 = vadd.f32 %v2846_v40, %v5489_v57  ;;  %v4319_v57 = vor.u32 %v4916_v48, %v4316_v5  ;;  %v647_v38 = vpack.c.bf16 %v615_v17, %v615_v17  ;;  %v4286_v5 = vld [vmem:[#allocation3 + $0x2d8] sm:$0xf] }
 0x136   : > { %v2925_v22 = vpop.f32.mrf.mxu2  ;;  %776 = vst [vmem:[#allocation3 + $0x390] sm:$0xf] %v744_v2  ;;  %v4287_v2 = vor.u32 %v4912_v54, %v4286_v5 }
 0x137   : > { %v2926_v60 = vadd.f32 %v2925_v22, %v5531_v24  ;;  %3061 = vmatmul.bf16.gmra.mxu3 %v4291_v31  ;;  %v554_v31 = vpack.c.bf16 %v522_v47, %v522_v47  ;;  %v4324_v22 = vld [vmem:[#allocation3 + $0x344] sm:$0xf0]  ;;  %679 = vst [vmem:[#allocation3 + $0x368] sm:$0xf] %v647_v38 }
 0x138   : > { %v5585_v51 = vpop.f32.mrf.mxu0 }
 0x139   : > { %v3015_v62 = vadd.f32 %v5546_v10, %v2926_v60  ;;  %v521_v10 = vld [vmem:[#allocation2 + $0x139] sm:$0xff]  ;;  %v648_v60 = vpack.c.bf16 %v616_v42, %v616_v42  ;;  %586 = vst [vmem:[#allocation3 + $0x3d0] sm:$0xf] %v554_v31 }
 0x13a   : > { %v5588_v3 = vpop.f32.mrf.mxu3  ;;  %v553_v56 = vpack.c.bf16 %v521_v10, %v521_v10  ;;  %872 = vst [vmem:[#allocation3 + $0x394] sm:$0xf] %v554_v31 }
 0x13b   : > { %2967 = vmatmul.bf16.gmra.mxu2 %v4251_v44  ;;  %v5591_v24 = vadd.f32 %v5553_v27, %v3015_v62  ;;  %v4917_v27 = vld [vmem:[#allocation3 + $0x324] sm:$0xf]  ;;  %680 = vst [vmem:[#allocation3 + $0x38c] sm:$0xf] %v648_v60  ;;  %v524_v60 = vld [vmem:[#allocation2 + $0x159] sm:$0xff] }
 0x13c   : > { %v2849_v8 = vpop.f32.mrf.mxu1  ;;  %585 = vst [vmem:[#allocation3 + $0x3ac] sm:$0xf] %v553_v56  ;;  %v4327_v48 = vor.u32 %v4917_v27, %v4324_v22  ;;  %v523_v22 = vld [vmem:[#allocation2 + $0x151] sm:$0xff]  ;;  %v556_v54 = vpack.c.bf16 %v524_v60, %v524_v60 }
 0x13d   : > { %v5594_v11 = vadd.f32 %v2849_v8, %v5497_v21  ;;  %871 = vst [vmem:[#allocation3 + $0x370] sm:$0xf] %v553_v56  ;;  %v714_v8 = vld [vmem:[#allocation2 + $0x158] sm:$0xff]  ;;  %v5018_v56 = vld [vmem:[%s6581_s1 + $0x1c8] sm:$0xff]  ;;  %v555_v5 = vpack.c.bf16 %v523_v22, %v523_v22 }
 0x13e   : > { %v2928_v46 = vpop.f32.mrf.mxu2  ;;  %v746_v10 = vpack.c.bf16 %v714_v8, %v714_v8  ;;  %3365 = vmatpush.bf16.msra.mxu3 %v5018_v56  ;;  %588 = vst [vmem:[#allocation3 + $0x418] sm:$0xf] %v556_v54 }
 0x13f   : > { %v2929_v20 = vadd.f32 %v2928_v46, %v5540_v49  ;;  %2888 = vmatmul.bf16.gmra.mxu1 %v4319_v57  ;;  %v4925_v57 = vld [vmem:[#allocation3 + $0x364] sm:$0xf]  ;;  %587 = vst [vmem:[#allocation3 + $0x3f4] sm:$0xf] %v555_v5 }
 0x140   : > { %v5597_v40 = vpop.f32.mrf.mxu0  ;;  %v4355_v17 = vor.u32 %v4925_v57, %v4352_v6  ;;  %778 = vst [vmem:[#allocation3 + $0x3d8] sm:$0xf] %v746_v10  ;;  %v5002_v6 = vld [vmem:[%s6581_s1 + $0x148] sm:$0xff] }
 0x141   : > { %v3018_v21 = vadd.f32 %v5555_v41, %v2929_v20  ;;  %v4922_v20 = vld [vmem:[#allocation3 + $0x348] sm:$0xf0]  ;;  %3187 = vmatpush.bf16.msra.mxu1 %v5002_v6  ;;  %873 = vst [vmem:[#allocation3 + $0x3b8] sm:$0xf] %v555_v5 }
 0x142   : > { %v5600_v44 = vpop.f32.mrf.mxu3  ;;  %874 = vst [vmem:[#allocation3 + $0x3dc] sm:$0xf] %v556_v54 }
 0x143   : > { %3150 = vmatmul.bf16.gmra.mxu0 %v4295_v13  ;;  %v5603_v49 = vadd.f32 %v5567_v12, %v3018_v21  ;;  %v713_v12 = vld [vmem:[#allocation2 + $0x150] sm:$0xff]  ;;  %v617_v21 = vld [vmem:[#allocation2 + $0x13a] sm:$0xff] }
 0x144   : > { %v2851_v55 = vpop.f32.mrf.mxu1  ;;  %v745_v13 = vpack.c.bf16 %v713_v12, %v713_v12  ;;  %v4934_v56 = vld [vmem:[#allocation3 + $0x3ac] sm:$0xf]  ;;  %v4366_v5 = vld [vmem:[#allocation3 + $0x370] sm:$0xf] }
 0x145   : > { %v5606_v62 = vadd.f32 %v2851_v55, %v5505_v39  ;;  %v4330_v39 = vld [vmem:[#allocation3 + $0x328] sm:$0xf]  ;;  %v618_v55 = vld [vmem:[#allocation2 + $0x142] sm:$0xff] }
 0x146   : > { %v2930_v0 = vpop.f32.mrf.mxu2  ;;  %777 = vst [vmem:[#allocation3 + $0x3b4] sm:$0xf] %v745_v13  ;;  %v4331_v27 = vor.u32 %v4922_v20, %v4330_v39  ;;  %v4921_v13 = vld [vmem:[#allocation3 + $0x340] sm:$0xf0] }
 0x147   : > { %v2931_v41 = vadd.f32 %v2930_v0, %v5549_v15  ;;  %3066 = vmatmul.bf16.gmra.mxu3 %v4327_v48  ;;  %v5010_v15 = vld [vmem:[%s6581_s1 + $0x188] sm:$0xff] }
 0x148   : > { %v5609_v30 = vpop.f32.mrf.mxu0  ;;  %3276 = vmatpush.bf16.msra.mxu2 %v5010_v15 }
 0x149   : > { %v3020_v46 = vadd.f32 %v5576_v28, %v2931_v41  ;;  %v4926_v41 = vld [vmem:[#allocation3 + $0x36c] sm:$0xf] }
 0x14a   : > { %v5612_v47 = vpop.f32.mrf.mxu3 }
 0x14b   : > { %2972 = vmatmul.bf16.gmra.mxu2 %v4287_v2  ;;  %v5621_v31 = vadd.f32 %v5585_v51, %v3020_v46  ;;  %v649_v51 = vpack.c.bf16 %v617_v21, %v617_v21  ;;  %v4360_v2 = vld [vmem:[#allocation3 + $0x38c] sm:$0xf0] }
 0x14c   : > { %v2854_v28 = vpop.f32.mrf.mxu1  ;;  %v4363_v8 = vor.u32 %v4926_v41, %v4360_v2  ;;  %v525_v2 = vld [vmem:[#allocation2 + $0x169] sm:$0xff] }
 0x14d   : > { %v5624_v42 = vadd.f32 %v2854_v28, %v5520_v33  ;;  %v650_v33 = vpack.c.bf16 %v618_v55, %v618_v55  ;;  %681 = vst [vmem:[#allocation3 + $0x3b0] sm:$0xf] %v649_v51  ;;  %v4931_v55 = vld [vmem:[#allocation3 + $0x390] sm:$0xf0]  ;;  %v557_v6 = vpack.c.bf16 %v525_v2, %v525_v2 }
 0x14e   : > { %v2933_v38 = vpop.f32.mrf.mxu2  ;;  %v4367_v41 = vor.u32 %v4931_v55, %v4366_v5  ;;  %v4943_v55 = vld [vmem:[#allocation3 + $0x3f4] sm:$0xf] }
 0x14f   : > { %v2934_v48 = vadd.f32 %v2933_v38, %v5564_v53  ;;  %2893 = vmatmul.bf16.gmra.mxu1 %v4355_v17  ;;  %v5026_v53 = vld [vmem:[%s6581_s1 + $0x208] sm:$0xff]  ;;  %682 = vst [vmem:[#allocation3 + $0x3d4] sm:$0xf] %v650_v33  ;;  %v4388_v38 = vld [vmem:[#allocation3 + $0x3cc] sm:$0xf0]  ;;  %v526_v33 = vld [vmem:[#allocation2 + $0x171] sm:$0xff] }
 0x150   : > { %v5627_v0 = vpop.f32.mrf.mxu0  ;;  %3454 = vmatpush.bf16.msra.mxu0 %v5026_v53  ;;  %v558_v53 = vpack.c.bf16 %v526_v33, %v526_v33  ;;  %589 = vst [vmem:[#allocation3 + $0x43c] sm:$0xf] %v557_v6  ;;  %v5017_v33 = vld [vmem:[%s6581_s1 + $0x1c0] sm:$0xff] }
 0x151   : > { %v3023_v57 = vadd.f32 %v5588_v3, %v2934_v48  ;;  %v4322_v3 = vld [vmem:[#allocation3 + $0x320] sm:$0xf]  ;;  %875 = vst [vmem:[#allocation3 + $0x400] sm:$0xf] %v557_v6  ;;  %v4402_v6 = vld [vmem:[#allocation3 + $0x3b8] sm:$0xf]  ;;  %3366 = vmatpush.bf16.msra.mxu3 %v5017_v33 }
 0x152   : > { %v5636_v12 = vpop.f32.mrf.mxu3  ;;  %v4323_v15 = vor.u32 %v4921_v13, %v4322_v3  ;;  %590 = vst [vmem:[#allocation3 + $0x460] sm:$0xf] %v558_v53 }
 0x153   : > { %3155 = vmatmul.bf16.gmra.mxu0 %v4331_v27  ;;  %v5639_v46 = vadd.f32 %v5597_v40, %v3023_v57  ;;  %v715_v40 = vld [vmem:[#allocation2 + $0x168] sm:$0xff]  ;;  %v716_v27 = vld [vmem:[#allocation2 + $0x170] sm:$0xff]  ;;  %876 = vst [vmem:[#allocation3 + $0x424] sm:$0xf] %v558_v53 }
 0x154   : > { %v2856_v10 = vpop.f32.mrf.mxu1  ;;  %v747_v60 = vpack.c.bf16 %v715_v40, %v715_v40  ;;  %v748_v21 = vpack.c.bf16 %v716_v27, %v716_v27  ;;  %v4930_v40 = vld [vmem:[#allocation3 + $0x388] sm:$0xf0]  ;;  %v4940_v53 = vld [vmem:[#allocation3 + $0x3d8] sm:$0xf0] }
 0x155   : > { %v5642_v39 = vadd.f32 %v2856_v10, %v5535_v29  ;;  %v4391_v29 = vor.u32 %v4934_v56, %v4388_v38  ;;  %v4396_v10 = vld [vmem:[#allocation3 + $0x3d4] sm:$0xf0]  ;;  %v4358_v56 = vld [vmem:[#allocation3 + $0x368] sm:$0xf] }
 0x156   : > { %v2935_v17 = vpop.f32.mrf.mxu2  ;;  %779 = vst [vmem:[#allocation3 + $0x3fc] sm:$0xf] %v747_v60  ;;  %v364_v60 = vld [vmem:[%s5161_s10 + $0xf8] sm:$0xff] }
 0x157   : > { %v2936_v20 = vadd.f32 %v2935_v17, %v5582_v43  ;;  %3071 = vmatmul.bf16.gmra.mxu3 %v4363_v8  ;;  %780 = vst [vmem:[#allocation3 + $0x420] sm:$0xf] %v748_v21  ;;  %v620_v8 = vld [vmem:[#allocation2 + $0x15a] sm:$0xff] }
 0x158   : > { %v3118_v28 = vpop.f32.mrf.mxu0  ;;  %v652_v17 = vpack.c.bf16 %v620_v8, %v620_v8  ;;  %398 = vst.msk [vmem:[#allocation2 + $0x189] sm:$0xff] %vm366_vm0, %v364_v60 }
 0x159   : > { %v3025_v22 = vadd.f32 %v5600_v44, %v2936_v20  ;;  %v619_v44 = vld [vmem:[#allocation2 + $0x152] sm:$0xff] }
 0x15a   : > { %v5646_v48 = vpop.f32.mrf.mxu3  ;;  %v651_v3 = vpack.c.bf16 %v619_v44, %v619_v44  ;;  %684 = vst [vmem:[#allocation3 + $0x41c] sm:$0xf] %v652_v17  ;;  %v4403_v17 = vor.u32 %v4940_v53, %v4402_v6 }
 0x15b   : > { %2977 = vmatmul.bf16.gmra.mxu2 %v4323_v15  ;;  %v5649_v43 = vadd.f32 %v5609_v30, %v3025_v22  ;;  %v4935_v30 = vld [vmem:[#allocation3 + $0x3b4] sm:$0xf]  ;;  %v363_v22 = vld [vmem:[%s5161_s10 + $0xf0] sm:$0xff] }
 0x15c   : > { %v5651_v54 = vpop.f32.mrf.mxu1  ;;  %683 = vst [vmem:[#allocation3 + $0x3f8] sm:$0xf] %v651_v3  ;;  %v621_v3 = vld [vmem:[#allocation2 + $0x16a] sm:$0xff] }
 0x15d   : > { %397 = vst.msk [vmem:[#allocation2 + $0x181] sm:$0xff] %vm366_vm0, %v363_v22  ;;  %v4944_v60 = vld [vmem:[#allocation3 + $0x3fc] sm:$0xf] }
 0x15e   : > { %v2938_v51 = vpop.f32.mrf.mxu2 }
 0x15f   : > { %v2939_v57 = vadd.f32 %v2938_v51, %v5594_v11  ;;  %2898 = vmatmul.bf16.gmra.mxu1 %v4391_v29  ;;  %v4399_v11 = vor.u32 %v4935_v30, %v4396_v10  ;;  %v4359_v29 = vor.u32 %v4930_v40, %v4358_v56  ;;  %v622_v30 = vld [vmem:[#allocation2 + $0x172] sm:$0xff]  ;;  %v879_v40 = vld [vmem:[#allocation2 + $0x1a] sm:$0xff] }
 0x160   : > { %v5654_v13 = vpop.f32.mrf.mxu0 }
 0x161   : > { %v3028_v20 = vadd.f32 %v5612_v47, %v2939_v57 }
 0x162   : > { %v5657_v15 = vpop.f32.mrf.mxu3 }
 0x163   : > { %3160 = vmatmul.bf16.gmra.mxu0 %v4367_v41  ;;  %v5660_v38 = vadd.f32 %v5627_v0, %v3028_v20  ;;  %v4424_v0 = vld [vmem:[#allocation3 + $0x414] sm:$0xf0] }
 0x164   : > { %v5662_v27 = vpop.f32.mrf.mxu1  ;;  %v4427_v2 = vor.u32 %v4943_v55, %v4424_v0  ;;  %v717_v8 = vld [vmem:[#allocation2 + $0x180] sm:$0xff]  ;;  %v718_v20 = vld [vmem:[#allocation2 + $0x188] sm:$0xff] }
 0x165   : > { %v749_v56 = vpack.c.bf16 %v717_v8, %v717_v8  ;;  %v813_v55 = vld [vmem:[#allocation2 + $0x181] sm:$0xff] }
 0x166   : > { %v2940_v21 = vpop.f32.mrf.mxu2  ;;  %v4394_v8 = vld [vmem:[#allocation3 + $0x3b0] sm:$0xf] }
 0x167   : > { %v2941_v47 = vadd.f32 %v2940_v21, %v5606_v62  ;;  %3076 = vmatmul.bf16.gmra.mxu3 %v4399_v11  ;;  %v5009_v62 = vld [vmem:[%s6581_s1 + $0x180] sm:$0xff]  ;;  %v653_v11 = vpack.c.bf16 %v621_v3, %v621_v3  ;;  %v4432_v21 = vld [vmem:[#allocation3 + $0x41c] sm:$0xf0]  ;;  %781 = vst [vmem:[#allocation3 + $0x444] sm:$0xf] %v749_v56 }
 0x168   : > { %v5668_v5 = vpop.f32.mrf.mxu0  ;;  %3277 = vmatpush.bf16.msra.mxu2 %v5009_v62  ;;  %v814_v62 = vld [vmem:[#allocation2 + $0x189] sm:$0xff]  ;;  %v4435_v53 = vor.u32 %v4944_v60, %v4432_v21  ;;  %v4939_v3 = vld [vmem:[#allocation3 + $0x3d0] sm:$0xf0]  ;;  %v1073_v60 = vld [vmem:[#allocation2 + $0x39] sm:$0xff] }
 0x169   : > { %v3030_v51 = vadd.f32 %v5636_v12, %v2941_v47  ;;  %v750_v47 = vpack.c.bf16 %v718_v20, %v718_v20  ;;  %685 = vst [vmem:[#allocation3 + $0x440] sm:$0xf] %v653_v11 }
 0x16a   : > { %v5672_v41 = vpop.f32.mrf.mxu3 }
 0x16b   : > { %2982 = vmatmul.bf16.gmra.mxu2 %v4359_v29  ;;  %v5680_v44 = vadd.f32 %v3118_v28, %v3030_v51  ;;  %v880_v28 = vld [vmem:[#allocation2 + $0x22] sm:$0xff]  ;;  %v654_v29 = vpack.c.bf16 %v622_v30, %v622_v30  ;;  %782 = vst [vmem:[#allocation3 + $0x468] sm:$0xf] %v750_v47 }
 0x16c   : > { %v5682_v57 = vpop.f32.mrf.mxu1  ;;  %v5025_v51 = vld [vmem:[%s6581_s1 + $0x200] sm:$0xff]  ;;  %v912_v6 = vpack.c.bf16 %v880_v28, %v880_v28  ;;  %v1072_v28 = vld [vmem:[#allocation2 + $0x31] sm:$0xff] }
 0x16d   : > { %3455 = vmatpush.bf16.msra.mxu0 %v5025_v51  ;;  %686 = vst [vmem:[#allocation3 + $0x464] sm:$0xf] %v654_v29  ;;  %v1104_v47 = vpack.c.bf16 %v1072_v28, %v1072_v28  ;;  %v1105_v29 = vpack.c.bf16 %v1073_v60, %v1073_v60  ;;  %v4438_v51 = vld [vmem:[#allocation3 + $0x400] sm:$0xf] }
 0x16e   : > { %v2943_v12 = vpop.f32.mrf.mxu2  ;;  %944 = vst [vmem:[#allocation3 + $0x38] sm:$0xf] %v912_v6 }
 0x16f   : > { %v2944_v10 = vadd.f32 %v2943_v12, %v5624_v42  ;;  %2903 = vmatmul.bf16.gmra.mxu1 %v4427_v2  ;;  %v5001_v42 = vld [vmem:[%s6581_s1 + $0x140] sm:$0xff]  ;;  %v911_v2 = vpack.c.bf16 %v879_v40, %v879_v40  ;;  %v4952_v40 = vld [vmem:[#allocation3 + $0x43c] sm:$0xf]  ;;  %1136 = vst [vmem:[#allocation3 + $0x1c] sm:$0xf] %v1104_v47 }
 0x170   : > { %v5685_v22 = vpop.f32.mrf.mxu0  ;;  %3188 = vmatpush.bf16.msra.mxu1 %v5001_v42  ;;  %1137 = vst [vmem:[#allocation3 + $0x40] sm:$0xf] %v1105_v29  ;;  %v4430_v47 = vld [vmem:[#allocation3 + $0x3f8] sm:$0xf]  ;;  %v4948_v29 = vld [vmem:[#allocation3 + $0x418] sm:$0xf0] }
 0x171   : > { %v3033_v0 = vadd.f32 %v5646_v48, %v2944_v10  ;;  %v845_v48 = vpack.c.bf16 %v813_v55, %v813_v55  ;;  %v846_v10 = vpack.c.bf16 %v814_v62, %v814_v62  ;;  %943 = vst [vmem:[#allocation3 + $0x14] sm:$0xf] %v911_v2  ;;  %v4949_v2 = vld [vmem:[#allocation3 + $0x420] sm:$0xf0]  ;;  %v2860_v62 = vadd.f32 %v5651_v54, %v5435_v25 }
 0x172   : > { %v5694_v33 = vpop.f32.mrf.mxu3 }
 0x173   : > { %3165 = vmatmul.bf16.gmra.mxu0 %v4403_v17  ;;  %v5697_v12 = vadd.f32 %v5654_v13, %v3033_v0  ;;  %v4395_v17 = vor.u32 %v4939_v3, %v4394_v8  ;;  %877 = vst [vmem:[#allocation3 + $0x448] sm:$0xf] %v845_v48  ;;  %v4460_v13 = vld [vmem:[#allocation3 + $0x45c] sm:$0xf0]  ;;  %v4439_v8 = vor.u32 %v4949_v2, %v4438_v51 }
 0x174   : > { %v5699_v30 = vpop.f32.mrf.mxu1  ;;  %878 = vst [vmem:[#allocation3 + $0x46c] sm:$0xf] %v846_v10  ;;  %v4463_v0 = vor.u32 %v4952_v40, %v4460_v13  ;;  %v4468_v40 = vld [vmem:[#allocation3 + $0x464] sm:$0xf0]  ;;  %v2862_v51 = vadd.f32 %v5662_v27, %v5451_v52 }
 0x176   : > { %v2945_v20 = vpop.f32.mrf.mxu2 }
 0x177   : > { %v2946_v56 = vadd.f32 %v2945_v20, %v5642_v39  ;;  %3081 = vmatmul.bf16.gmra.mxu3 %v4435_v53  ;;  %v882_v53 = vld [vmem:[#allocation2 + $0x3a] sm:$0xff]  ;;  %v976_v20 = vld [vmem:[#allocation2 + $0x30] sm:$0xff] }
 0x178   : > { %v5702_v11 = vpop.f32.mrf.mxu0  ;;  %v914_v10 = vpack.c.bf16 %v882_v53, %v882_v53  ;;  %v1008_v13 = vpack.c.bf16 %v976_v20, %v976_v20  ;;  %v3936_v53 = vld [vmem:[#allocation3 + $0x34] sm:$0xf0] }
 0x179   : > { %v3035_v21 = vadd.f32 %v5657_v15, %v2946_v56  ;;  %v881_v15 = vld [vmem:[#allocation2 + $0x32] sm:$0xff] }
 0x17a   : > { %v5705_v55 = vpop.f32.mrf.mxu3  ;;  %v913_v3 = vpack.c.bf16 %v881_v15, %v881_v15  ;;  %v977_v56 = vld [vmem:[#allocation2 + $0x38] sm:$0xff]  ;;  %946 = vst [vmem:[#allocation3 + $0x80] sm:$0xf] %v914_v10 }
 0x17b   : > { %2987 = vmatmul.bf16.gmra.mxu2 %v4395_v17  ;;  %v5708_v39 = vadd.f32 %v5668_v5, %v3035_v21  ;;  %v4953_v17 = vld [vmem:[#allocation3 + $0x444] sm:$0xf]  ;;  %v1009_v28 = vpack.c.bf16 %v977_v56, %v977_v56  ;;  %1040 = vst [vmem:[#allocation3 + $0x18] sm:$0xf] %v1008_v13  ;;  %v4474_v27 = vld [vmem:[#allocation3 + $0x448] sm:$0xf]  ;;  %v2865_v13 = vadd.f32 %v5682_v57, %v5455_v1 }
 0x17c   : > { %v5710_v42 = vpop.f32.mrf.mxu1  ;;  %945 = vst [vmem:[#allocation3 + $0x5c] sm:$0xf] %v913_v3  ;;  %v4471_v54 = vor.u32 %v4953_v17, %v4468_v40 }
 0x17d   : > { %1041 = vst [vmem:[#allocation3 + $0x3c] sm:$0xf] %v1009_v28 }
 0x17e   : > { %v2948_v6 = vpop.f32.mrf.mxu2  ;;  %1232 = vst [vmem:[#allocation3 + $0x20] sm:$0xf] %v913_v3  ;;  %v4958_v3 = vld [vmem:[#allocation3 + $0x468] sm:$0xf0] }
 0x17f   : > { %v2949_v48 = vadd.f32 %v2948_v6, %v2860_v62  ;;  %2908 = vmatmul.bf16.gmra.mxu1 %v4463_v0  ;;  %1233 = vst [vmem:[#allocation3 + $0x44] sm:$0xf] %v914_v10  ;;  %v4431_v62 = vor.u32 %v4948_v29, %v4430_v47  ;;  %v4819_v6 = vld [vmem:[#allocation3 + $0x14] sm:$0xf]  ;;  %v978_v47 = vld [vmem:[#allocation2 + $0x48] sm:$0xff] }
 0x180   : > { %v5714_v5 = vpop.f32.mrf.mxu0  ;;  %v3939_v52 = vor.u32 %v4819_v6, %v3936_v53  ;;  %v3944_v53 = vld [vmem:[#allocation3 + $0x3c] sm:$0xf0] }
 0x181   : > { %v3038_v60 = vadd.f32 %v5672_v41, %v2949_v48  ;;  %v1075_v48 = vld [vmem:[#allocation2 + $0x51] sm:$0xff] }
 0x182   : > { %v5717_v25 = vpop.f32.mrf.mxu3  ;;  %v1107_v56 = vpack.c.bf16 %v1075_v48, %v1075_v48 }
 0x183   : > { %3170 = vmatmul.bf16.gmra.mxu0 %v4439_v8  ;;  %v5720_v21 = vadd.f32 %v5685_v22, %v3038_v60  ;;  %v1074_v22 = vld [vmem:[#allocation2 + $0x49] sm:$0xff] }
 0x184   : > { %v5722_v0 = vpop.f32.mrf.mxu1  ;;  %v1106_v20 = vpack.c.bf16 %v1074_v22, %v1074_v22  ;;  %1139 = vst [vmem:[#allocation3 + $0x88] sm:$0xf] %v1107_v56  ;;  %v883_v60 = vld [vmem:[#allocation2 + $0x4a] sm:$0xff]  ;;  %v4957_v56 = vld [vmem:[#allocation3 + $0x460] sm:$0xf0] }
 0x186   : > { %v2950_v41 = vpop.f32.mrf.mxu2  ;;  %1138 = vst [vmem:[#allocation3 + $0x64] sm:$0xf] %v1106_v20  ;;  %v4466_v20 = vld [vmem:[#allocation3 + $0x440] sm:$0xf] }
 0x187   : > { %v2951_v2 = vadd.f32 %v2950_v41, %v2862_v51  ;;  %3086 = vmatmul.bf16.gmra.mxu3 %v4471_v54  ;;  %v884_v54 = vld [vmem:[#allocation2 + $0x52] sm:$0xff]  ;;  %v915_v51 = vpack.c.bf16 %v883_v60, %v883_v60 }
 0x188   : > { %v5726_v15 = vpop.f32.mrf.mxu0  ;;  %v916_v41 = vpack.c.bf16 %v884_v54, %v884_v54  ;;  %v3972_v60 = vld [vmem:[#allocation3 + $0x7c] sm:$0xf0] }
 0x189   : > { %v3040_v8 = vadd.f32 %v5694_v33, %v2951_v2  ;;  %v4475_v33 = vor.u32 %v4958_v3, %v4474_v27  ;;  %v979_v2 = vld [vmem:[#allocation2 + $0x50] sm:$0xff]  ;;  %947 = vst [vmem:[#allocation3 + $0xa4] sm:$0xf] %v915_v51  ;;  %v2867_v27 = vadd.f32 %v5699_v30, %v5461_v18 }
 0x18a   : > { %v5729_v17 = vpop.f32.mrf.mxu3  ;;  %v1011_v22 = vpack.c.bf16 %v979_v2, %v979_v2  ;;  %948 = vst [vmem:[#allocation3 + $0xc8] sm:$0xf] %v916_v41  ;;  %v1077_v54 = vld [vmem:[#allocation2 + $0x69] sm:$0xff] }
 0x18b   : > { %2992 = vmatmul.bf16.gmra.mxu2 %v4431_v62  ;;  %v5732_v10 = vadd.f32 %v5702_v11, %v3040_v8  ;;  %v1010_v62 = vpack.c.bf16 %v978_v47, %v978_v47  ;;  %v4820_v11 = vld [vmem:[#allocation3 + $0x1c] sm:$0xf]  ;;  %1234 = vst [vmem:[#allocation3 + $0x68] sm:$0xf] %v915_v51  ;;  %v1109_v2 = vpack.c.bf16 %v1077_v54, %v1077_v54  ;;  %v3950_v30 = vld [vmem:[#allocation3 + $0x20] sm:$0xf] }
 0x18c   : > { %v5734_v40 = vpop.f32.mrf.mxu1  ;;  %v3947_v57 = vor.u32 %v4820_v11, %v3944_v53  ;;  %1043 = vst [vmem:[#allocation3 + $0x84] sm:$0xf] %v1011_v22  ;;  %v4825_v51 = vld [vmem:[#allocation3 + $0x40] sm:$0xf0]  ;;  %v2870_v53 = vadd.f32 %v5710_v42, %v5473_v34 }
 0x18d   : > { %1042 = vst [vmem:[#allocation3 + $0x60] sm:$0xf] %v1010_v62 }
 0x18e   : > { %v2953_v28 = vpop.f32.mrf.mxu2  ;;  %1235 = vst [vmem:[#allocation3 + $0x8c] sm:$0xf] %v916_v41 }
 0x18f   : > { %v2954_v29 = vadd.f32 %v2953_v28, %v2865_v13  ;;  %3189 = vmatmul.bf16.vlgmr.msra.gmra.mxu1 %v3939_v52  ;;  %v4467_v13 = vor.u32 %v4957_v56, %v4466_v20  ;;  %v4828_v28 = vld [vmem:[#allocation3 + $0x5c] sm:$0xf]  ;;  %1141 = vst [vmem:[#allocation3 + $0xd0] sm:$0xf] %v1109_v2  ;;  %v980_v20 = vld [vmem:[#allocation2 + $0x60] sm:$0xff] }
 0x190   : > { %v5738_v6 = vpop.f32.mrf.mxu0  ;;  %v3975_v18 = vor.u32 %v4828_v28, %v3972_v60  ;;  %v3980_v60 = vld [vmem:[#allocation3 + $0x84] sm:$0xf0]  ;;  %v4824_v2 = vld [vmem:[#allocation3 + $0x38] sm:$0xf0] }
 0x191   : > { %v3043_v48 = vadd.f32 %v5705_v55, %v2954_v29 }
 0x192   : > { %v5741_v1 = vpop.f32.mrf.mxu3 }
 0x193   : > { %3175 = vmatmul.bf16.gmra.mxu0 %v4475_v33  ;;  %v5744_v8 = vadd.f32 %v5714_v5, %v3043_v48  ;;  %v1076_v5 = vld [vmem:[#allocation2 + $0x61] sm:$0xff] }
 0x194   : > { %v5746_v52 = vpop.f32.mrf.mxu1  ;;  %v1108_v29 = vpack.c.bf16 %v1076_v5, %v1076_v5  ;;  %v885_v48 = vld [vmem:[#allocation2 + $0x62] sm:$0xff] }
 0x196   : > { %v2955_v55 = vpop.f32.mrf.mxu2  ;;  %1140 = vst [vmem:[#allocation3 + $0xac] sm:$0xf] %v1108_v29  ;;  %v3942_v29 = vld [vmem:[#allocation3 + $0x18] sm:$0xf] }
 0x197   : > { %v2956_v3 = vadd.f32 %v2955_v55, %v2867_v27  ;;  %3367 = vmatmul.bf16.vlgmr.msra.gmra.mxu3 %v3947_v57  ;;  %v886_v57 = vld [vmem:[#allocation2 + $0x6a] sm:$0xff]  ;;  %v917_v27 = vpack.c.bf16 %v885_v48, %v885_v48  ;;  %v4008_v48 = vld [vmem:[#allocation3 + $0xc4] sm:$0xf0] }
 0x198   : > { %v5750_v33 = vpop.f32.mrf.mxu0  ;;  %v918_v55 = vpack.c.bf16 %v886_v57, %v886_v57  ;;  %v1079_v57 = vld [vmem:[#allocation2 + $0x81] sm:$0xff] }
 0x199   : > { %v3045_v47 = vadd.f32 %v5717_v25, %v2956_v3  ;;  %v3951_v25 = vor.u32 %v4825_v51, %v3950_v30  ;;  %v981_v3 = vld [vmem:[#allocation2 + $0x68] sm:$0xff]  ;;  %949 = vst [vmem:[#allocation3 + $0xec] sm:$0xf] %v917_v27  ;;  %v2872_v30 = vadd.f32 %v5722_v0, %v5485_v59  ;;  %v3986_v0 = vld [vmem:[#allocation3 + $0x68] sm:$0xf] }
 0x19a   : > { %v5753_v62 = vpop.f32.mrf.mxu3  ;;  %v1013_v5 = vpack.c.bf16 %v981_v3, %v981_v3  ;;  %950 = vst [vmem:[#allocation3 + $0x110] sm:$0xf] %v918_v55  ;;  %v1111_v3 = vpack.c.bf16 %v1079_v57, %v1079_v57 }
 0x19b   : > { %2997 = vmatmul.bf16.gmra.mxu2 %v4467_v13  ;;  %v5756_v41 = vadd.f32 %v5726_v15, %v3045_v47  ;;  %v1012_v13 = vpack.c.bf16 %v980_v20, %v980_v20  ;;  %v4829_v15 = vld [vmem:[#allocation3 + $0x64] sm:$0xf]  ;;  %1236 = vst [vmem:[#allocation3 + $0xb0] sm:$0xf] %v917_v27  ;;  %v4834_v27 = vld [vmem:[#allocation3 + $0x88] sm:$0xf0] }
 0x19c   : > { %v5758_v11 = vpop.f32.mrf.mxu1  ;;  %v3983_v42 = vor.u32 %v4829_v15, %v3980_v60  ;;  %1045 = vst [vmem:[#allocation3 + $0xcc] sm:$0xf] %v1013_v5  ;;  %v2875_v60 = vadd.f32 %v5734_v40, %v5493_v7 }
 0x19d   : > { %1044 = vst [vmem:[#allocation3 + $0xa8] sm:$0xf] %v1012_v13 }
 0x19e   : > { %v2958_v22 = vpop.f32.mrf.mxu2  ;;  %1237 = vst [vmem:[#allocation3 + $0xd4] sm:$0xf] %v918_v55 }
 0x19f   : > { %v2959_v56 = vadd.f32 %v2958_v22, %v2870_v53  ;;  %3194 = vmatmul.bf16.gmra.mxu1 %v3975_v18  ;;  %v3943_v53 = vor.u32 %v4824_v2, %v3942_v29  ;;  %v4837_v22 = vld [vmem:[#allocation3 + $0xa4] sm:$0xf]  ;;  %1143 = vst [vmem:[#allocation3 + $0x118] sm:$0xf] %v1111_v3  ;;  %v982_v29 = vld [vmem:[#allocation2 + $0x78] sm:$0xff] }
 0x1a0   : > { %v5762_v28 = vpop.f32.mrf.mxu0  ;;  %v4011_v59 = vor.u32 %v4837_v22, %v4008_v48  ;;  %v4016_v48 = vld [vmem:[#allocation3 + $0xcc] sm:$0xf0]  ;;  %v4833_v3 = vld [vmem:[#allocation3 + $0x80] sm:$0xf0] }
 0x1a1   : > { %v3048_v54 = vadd.f32 %v5729_v17, %v2959_v56 }
 0x1a2   : > { %v5765_v34 = vpop.f32.mrf.mxu3 }
 0x1a3   : > { %3456 = vmatmul.bf16.vlgmr.msra.gmra.mxu0 %v3951_v25  ;;  %v5768_v47 = vadd.f32 %v5738_v6, %v3048_v54  ;;  %v1078_v6 = vld [vmem:[#allocation2 + $0x79] sm:$0xff] }
 0x1a4   : > { %v5770_v18 = vpop.f32.mrf.mxu1  ;;  %v1110_v56 = vpack.c.bf16 %v1078_v6, %v1078_v6  ;;  %v887_v54 = vld [vmem:[#allocation2 + $0x7a] sm:$0xff] }
 0x1a6   : > { %v2960_v17 = vpop.f32.mrf.mxu2  ;;  %1142 = vst [vmem:[#allocation3 + $0xf4] sm:$0xf] %v1110_v56  ;;  %v3978_v56 = vld [vmem:[#allocation3 + $0x60] sm:$0xf] }
 0x1a7   : > { %v2961_v51 = vadd.f32 %v2960_v17, %v2872_v30  ;;  %3372 = vmatmul.bf16.gmra.mxu3 %v3983_v42  ;;  %v888_v42 = vld [vmem:[#allocation2 + $0x82] sm:$0xff]  ;;  %v919_v30 = vpack.c.bf16 %v887_v54, %v887_v54 }
 0x1a8   : > { %v5774_v25 = vpop.f32.mrf.mxu0  ;;  %v920_v17 = vpack.c.bf16 %v888_v42, %v888_v42  ;;  %v4044_v54 = vld [vmem:[#allocation3 + $0x10c] sm:$0xf0] }
 0x1a9   : > { %v3050_v20 = vadd.f32 %v5741_v1, %v2961_v51  ;;  %v3987_v1 = vor.u32 %v4834_v27, %v3986_v0  ;;  %v983_v51 = vld [vmem:[#allocation2 + $0x80] sm:$0xff]  ;;  %951 = vst [vmem:[#allocation3 + $0x134] sm:$0xf] %v919_v30  ;;  %v2877_v0 = vadd.f32 %v5746_v52, %v5501_v32 }
 0x1aa   : > { %v5777_v13 = vpop.f32.mrf.mxu3  ;;  %v1015_v6 = vpack.c.bf16 %v983_v51, %v983_v51  ;;  %952 = vst [vmem:[#allocation3 + $0x158] sm:$0xf] %v920_v17  ;;  %v1081_v42 = vld [vmem:[#allocation2 + $0x99] sm:$0xff] }
 0x1ab   : > { %3278 = vmatmul.bf16.vlgmr.msra.gmra.mxu2 %v3943_v53  ;;  %v5780_v55 = vadd.f32 %v5750_v33, %v3050_v20  ;;  %v1014_v53 = vpack.c.bf16 %v982_v29, %v982_v29  ;;  %v4838_v33 = vld [vmem:[#allocation3 + $0xac] sm:$0xf]  ;;  %1238 = vst [vmem:[#allocation3 + $0xf8] sm:$0xf] %v919_v30  ;;  %v1113_v51 = vpack.c.bf16 %v1081_v42, %v1081_v42  ;;  %v4022_v52 = vld [vmem:[#allocation3 + $0xb0] sm:$0xf] }
 0x1ac   : > { %v5782_v15 = vpop.f32.mrf.mxu1  ;;  %v4019_v40 = vor.u32 %v4838_v33, %v4016_v48  ;;  %1047 = vst [vmem:[#allocation3 + $0x114] sm:$0xf] %v1015_v6  ;;  %v4843_v30 = vld [vmem:[#allocation3 + $0xd0] sm:$0xf0]  ;;  %v2880_v48 = vadd.f32 %v5758_v11, %v5457_v4 }
 0x1ad   : > { %1046 = vst [vmem:[#allocation3 + $0xf0] sm:$0xf] %v1014_v53 }
 0x1ae   : > { %v2963_v5 = vpop.f32.mrf.mxu2  ;;  %1239 = vst [vmem:[#allocation3 + $0x11c] sm:$0xf] %v920_v17 }
 0x1af   : > { %v2964_v2 = vadd.f32 %v2963_v5, %v2875_v60  ;;  %3199 = vmatmul.bf16.gmra.mxu1 %v4011_v59  ;;  %v3979_v60 = vor.u32 %v4833_v3, %v3978_v56  ;;  %v4846_v5 = vld [vmem:[#allocation3 + $0xec] sm:$0xf]  ;;  %1145 = vst [vmem:[#allocation3 + $0x160] sm:$0xf] %v1113_v51  ;;  %v984_v56 = vld [vmem:[#allocation2 + $0x90] sm:$0xff] }
 0x1b0   : > { %v5786_v22 = vpop.f32.mrf.mxu0  ;;  %v4047_v32 = vor.u32 %v4846_v5, %v4044_v54  ;;  %v4052_v54 = vld [vmem:[#allocation3 + $0x114] sm:$0xf0]  ;;  %v4842_v51 = vld [vmem:[#allocation3 + $0xc8] sm:$0xf0] }
 0x1b1   : > { %v3053_v57 = vadd.f32 %v5753_v62, %v2964_v2 }
 0x1b2   : > { %v5789_v7 = vpop.f32.mrf.mxu3 }
 0x1b3   : > { %3461 = vmatmul.bf16.gmra.mxu0 %v3987_v1  ;;  %v5792_v20 = vadd.f32 %v5762_v28, %v3053_v57  ;;  %v1080_v28 = vld [vmem:[#allocation2 + $0x91] sm:$0xff] }
 0x1b4   : > { %v5794_v59 = vpop.f32.mrf.mxu1  ;;  %v1112_v2 = vpack.c.bf16 %v1080_v28, %v1080_v28  ;;  %v889_v57 = vld [vmem:[#allocation2 + $0x92] sm:$0xff] }
 0x1b6   : > { %v2965_v62 = vpop.f32.mrf.mxu2  ;;  %1144 = vst [vmem:[#allocation3 + $0x13c] sm:$0xf] %v1112_v2  ;;  %v4014_v2 = vld [vmem:[#allocation3 + $0xa8] sm:$0xf] }
 0x1b7   : > { %v2966_v27 = vadd.f32 %v2965_v62, %v2877_v0  ;;  %3377 = vmatmul.bf16.gmra.mxu3 %v4019_v40  ;;  %v890_v40 = vld [vmem:[#allocation2 + $0x9a] sm:$0xff]  ;;  %v921_v0 = vpack.c.bf16 %v889_v57, %v889_v57  ;;  %v4080_v57 = vld [vmem:[#allocation3 + $0x154] sm:$0xf0] }
 0x1b8   : > { %v5798_v1 = vpop.f32.mrf.mxu0  ;;  %v922_v62 = vpack.c.bf16 %v890_v40, %v890_v40  ;;  %v1083_v40 = vld [vmem:[#allocation2 + $0xb1] sm:$0xff] }
 0x1b9   : > { %v3055_v29 = vadd.f32 %v5765_v34, %v2966_v27  ;;  %v4023_v34 = vor.u32 %v4843_v30, %v4022_v52  ;;  %v985_v27 = vld [vmem:[#allocation2 + $0x98] sm:$0xff]  ;;  %953 = vst [vmem:[#allocation3 + $0x17c] sm:$0xf] %v921_v0  ;;  %v2882_v52 = vadd.f32 %v5770_v18, %v5463_v19  ;;  %v4058_v18 = vld [vmem:[#allocation3 + $0xf8] sm:$0xf] }
 0x1ba   : > { %v5801_v53 = vpop.f32.mrf.mxu3  ;;  %v1017_v28 = vpack.c.bf16 %v985_v27, %v985_v27  ;;  %954 = vst [vmem:[#allocation3 + $0x1a0] sm:$0xf] %v922_v62  ;;  %v1115_v27 = vpack.c.bf16 %v1083_v40, %v1083_v40 }
 0x1bb   : > { %3283 = vmatmul.bf16.gmra.mxu2 %v3979_v60  ;;  %v5804_v17 = vadd.f32 %v5774_v25, %v3055_v29  ;;  %v1016_v60 = vpack.c.bf16 %v984_v56, %v984_v56  ;;  %v4847_v25 = vld [vmem:[#allocation3 + $0xf4] sm:$0xf]  ;;  %1240 = vst [vmem:[#allocation3 + $0x140] sm:$0xf] %v921_v0  ;;  %v4852_v0 = vld [vmem:[#allocation3 + $0x118] sm:$0xf0] }
 0x1bc   : > { %v5806_v33 = vpop.f32.mrf.mxu1  ;;  %v4055_v11 = vor.u32 %v4847_v25, %v4052_v54  ;;  %1049 = vst [vmem:[#allocation3 + $0x15c] sm:$0xf] %v1017_v28  ;;  %v2885_v54 = vadd.f32 %v5782_v15, %v5475_v37 }
 0x1bd   : > { %1048 = vst [vmem:[#allocation3 + $0x138] sm:$0xf] %v1016_v60 }
 0x1be   : > { %v2968_v6 = vpop.f32.mrf.mxu2  ;;  %1241 = vst [vmem:[#allocation3 + $0x164] sm:$0xf] %v922_v62 }
 0x1bf   : > { %v2969_v3 = vadd.f32 %v2968_v6, %v2880_v48  ;;  %3204 = vmatmul.bf16.gmra.mxu1 %v4047_v32  ;;  %v4015_v48 = vor.u32 %v4842_v51, %v4014_v2  ;;  %v4855_v6 = vld [vmem:[#allocation3 + $0x134] sm:$0xf]  ;;  %1147 = vst [vmem:[#allocation3 + $0x1a8] sm:$0xf] %v1115_v27  ;;  %v986_v2 = vld [vmem:[#allocation2 + $0xa8] sm:$0xff] }
 0x1c0   : > { %v5810_v5 = vpop.f32.mrf.mxu0  ;;  %v4083_v19 = vor.u32 %v4855_v6, %v4080_v57  ;;  %v4088_v57 = vld [vmem:[#allocation3 + $0x15c] sm:$0xf0]  ;;  %v4851_v27 = vld [vmem:[#allocation3 + $0x110] sm:$0xf0] }
 0x1c1   : > { %v3058_v42 = vadd.f32 %v5777_v13, %v2969_v3 }
 0x1c2   : > { %v5813_v4 = vpop.f32.mrf.mxu3 }
 0x1c3   : > { %3466 = vmatmul.bf16.gmra.mxu0 %v4023_v34  ;;  %v5816_v29 = vadd.f32 %v5786_v22, %v3058_v42  ;;  %v1082_v22 = vld [vmem:[#allocation2 + $0xa9] sm:$0xff] }
 0x1c4   : > { %v5818_v32 = vpop.f32.mrf.mxu1  ;;  %v1114_v3 = vpack.c.bf16 %v1082_v22, %v1082_v22  ;;  %v891_v42 = vld [vmem:[#allocation2 + $0xaa] sm:$0xff] }
 0x1c6   : > { %v2970_v13 = vpop.f32.mrf.mxu2  ;;  %1146 = vst [vmem:[#allocation3 + $0x184] sm:$0xf] %v1114_v3  ;;  %v4050_v3 = vld [vmem:[#allocation3 + $0xf0] sm:$0xf] }
 0x1c7   : > { %v2971_v30 = vadd.f32 %v2970_v13, %v2882_v52  ;;  %3382 = vmatmul.bf16.gmra.mxu3 %v4055_v11  ;;  %v892_v11 = vld [vmem:[#allocation2 + $0xb2] sm:$0xff]  ;;  %v923_v52 = vpack.c.bf16 %v891_v42, %v891_v42 }
 0x1c8   : > { %v5822_v34 = vpop.f32.mrf.mxu0  ;;  %v924_v13 = vpack.c.bf16 %v892_v11, %v892_v11  ;;  %v4116_v42 = vld [vmem:[#allocation3 + $0x19c] sm:$0xf0] }
 0x1c9   : > { %v3060_v56 = vadd.f32 %v5789_v7, %v2971_v30  ;;  %v4059_v7 = vor.u32 %v4852_v0, %v4058_v18  ;;  %v987_v30 = vld [vmem:[#allocation2 + $0xb0] sm:$0xff]  ;;  %955 = vst [vmem:[#allocation3 + $0x1c4] sm:$0xf] %v923_v52  ;;  %v2887_v18 = vadd.f32 %v5794_v59, %v5487_v61 }
 0x1ca   : > { %v5825_v60 = vpop.f32.mrf.mxu3  ;;  %v1019_v22 = vpack.c.bf16 %v987_v30, %v987_v30  ;;  %956 = vst [vmem:[#allocation3 + $0x1e8] sm:$0xf] %v924_v13  ;;  %v1085_v11 = vld [vmem:[#allocation2 + $0xc9] sm:$0xff] }
 0x1cb   : > { %3288 = vmatmul.bf16.gmra.mxu2 %v4015_v48  ;;  %v5828_v62 = vadd.f32 %v5798_v1, %v3060_v56  ;;  %v1018_v48 = vpack.c.bf16 %v986_v2, %v986_v2  ;;  %v4856_v1 = vld [vmem:[#allocation3 + $0x13c] sm:$0xf]  ;;  %1242 = vst [vmem:[#allocation3 + $0x188] sm:$0xf] %v923_v52  ;;  %v1117_v30 = vpack.c.bf16 %v1085_v11, %v1085_v11  ;;  %v4094_v59 = vld [vmem:[#allocation3 + $0x140] sm:$0xf] }
 0x1cc   : > { %v5830_v25 = vpop.f32.mrf.mxu1  ;;  %v4091_v15 = vor.u32 %v4856_v1, %v4088_v57  ;;  %1051 = vst [vmem:[#allocation3 + $0x1a4] sm:$0xf] %v1019_v22  ;;  %v4861_v52 = vld [vmem:[#allocation3 + $0x160] sm:$0xf0]  ;;  %v2890_v57 = vadd.f32 %v5806_v33, %v5495_v9 }
 0x1cd   : > { %1050 = vst [vmem:[#allocation3 + $0x180] sm:$0xf] %v1018_v48 }
 0x1ce   : > { %v2973_v28 = vpop.f32.mrf.mxu2  ;;  %1243 = vst [vmem:[#allocation3 + $0x1ac] sm:$0xf] %v924_v13 }
 0x1cf   : > { %v2974_v51 = vadd.f32 %v2973_v28, %v2885_v54  ;;  %3209 = vmatmul.bf16.gmra.mxu1 %v4083_v19  ;;  %v4051_v54 = vor.u32 %v4851_v27, %v4050_v3  ;;  %v4864_v28 = vld [vmem:[#allocation3 + $0x17c] sm:$0xf]  ;;  %1149 = vst [vmem:[#allocation3 + $0x1f0] sm:$0xf] %v1117_v30  ;;  %v988_v3 = vld [vmem:[#allocation2 + $0xc0] sm:$0xff] }
 0x1d0   : > { %v5834_v6 = vpop.f32.mrf.mxu0  ;;  %v4119_v61 = vor.u32 %v4864_v28, %v4116_v42  ;;  %v4124_v42 = vld [vmem:[#allocation3 + $0x1a4] sm:$0xf0]  ;;  %v4860_v30 = vld [vmem:[#allocation3 + $0x158] sm:$0xf0] }
 0x1d1   : > { %v3063_v40 = vadd.f32 %v5801_v53, %v2974_v51 }
 0x1d2   : > { %v5837_v37 = vpop.f32.mrf.mxu3 }
 0x1d3   : > { %3471 = vmatmul.bf16.gmra.mxu0 %v4059_v7  ;;  %v5840_v56 = vadd.f32 %v5810_v5, %v3063_v40  ;;  %v1084_v5 = vld [vmem:[#allocation2 + $0xc1] sm:$0xff] }
 0x1d4   : > { %v5842_v19 = vpop.f32.mrf.mxu1  ;;  %v1116_v51 = vpack.c.bf16 %v1084_v5, %v1084_v5  ;;  %v893_v40 = vld [vmem:[#allocation2 + $0xc2] sm:$0xff] }
 0x1d6   : > { %v2975_v53 = vpop.f32.mrf.mxu2  ;;  %1148 = vst [vmem:[#allocation3 + $0x1cc] sm:$0xf] %v1116_v51  ;;  %v4086_v51 = vld [vmem:[#allocation3 + $0x138] sm:$0xf] }
 0x1d7   : > { %v2976_v0 = vadd.f32 %v2975_v53, %v2887_v18  ;;  %3387 = vmatmul.bf16.gmra.mxu3 %v4091_v15  ;;  %v894_v15 = vld [vmem:[#allocation2 + $0xca] sm:$0xff]  ;;  %v925_v18 = vpack.c.bf16 %v893_v40, %v893_v40  ;;  %v4152_v40 = vld [vmem:[#allocation3 + $0x1e4] sm:$0xf0] }
 0x1d8   : > { %v5846_v7 = vpop.f32.mrf.mxu0  ;;  %v926_v53 = vpack.c.bf16 %v894_v15, %v894_v15  ;;  %v1087_v15 = vld [vmem:[#allocation2 + $0xe1] sm:$0xff] }
 0x1d9   : > { %v3065_v2 = vadd.f32 %v5813_v4, %v2976_v0  ;;  %v4095_v4 = vor.u32 %v4861_v52, %v4094_v59  ;;  %v989_v0 = vld [vmem:[#allocation2 + $0xc8] sm:$0xff]  ;;  %957 = vst [vmem:[#allocation3 + $0x20c] sm:$0xf] %v925_v18  ;;  %v2892_v59 = vadd.f32 %v5818_v32, %v5503_v35  ;;  %v4130_v32 = vld [vmem:[#allocation3 + $0x188] sm:$0xf] }
 0x1da   : > { %v5849_v48 = vpop.f32.mrf.mxu3  ;;  %v1021_v5 = vpack.c.bf16 %v989_v0, %v989_v0  ;;  %958 = vst [vmem:[#allocation3 + $0x230] sm:$0xf] %v926_v53  ;;  %v1119_v0 = vpack.c.bf16 %v1087_v15, %v1087_v15 }
 0x1db   : > { %3293 = vmatmul.bf16.gmra.mxu2 %v4051_v54  ;;  %v5852_v13 = vadd.f32 %v5822_v34, %v3065_v2  ;;  %v1020_v54 = vpack.c.bf16 %v988_v3, %v988_v3  ;;  %v4865_v34 = vld [vmem:[#allocation3 + $0x184] sm:$0xf]  ;;  %1244 = vst [vmem:[#allocation3 + $0x1d0] sm:$0xf] %v925_v18  ;;  %v4870_v18 = vld [vmem:[#allocation3 + $0x1a8] sm:$0xf0] }
 0x1dc   : > { %v5854_v1 = vpop.f32.mrf.mxu1  ;;  %v4127_v33 = vor.u32 %v4865_v34, %v4124_v42  ;;  %1053 = vst [vmem:[#allocation3 + $0x1ec] sm:$0xf] %v1021_v5  ;;  %v2895_v42 = vadd.f32 %v5830_v25, %v5518_v58 }
 0x1dd   : > { %1052 = vst [vmem:[#allocation3 + $0x1c8] sm:$0xf] %v1020_v54 }
 0x1de   : > { %v2978_v22 = vpop.f32.mrf.mxu2  ;;  %1245 = vst [vmem:[#allocation3 + $0x1f4] sm:$0xf] %v926_v53 }
 0x1df   : > { %v2979_v27 = vadd.f32 %v2978_v22, %v2890_v57  ;;  %3214 = vmatmul.bf16.gmra.mxu1 %v4119_v61  ;;  %v4087_v57 = vor.u32 %v4860_v30, %v4086_v51  ;;  %v4873_v22 = vld [vmem:[#allocation3 + $0x1c4] sm:$0xf]  ;;  %1151 = vst [vmem:[#allocation3 + $0x238] sm:$0xf] %v1119_v0  ;;  %v990_v51 = vld [vmem:[#allocation2 + $0xd8] sm:$0xff] }
 0x1e0   : > { %v5858_v28 = vpop.f32.mrf.mxu0  ;;  %v4155_v35 = vor.u32 %v4873_v22, %v4152_v40  ;;  %v4160_v40 = vld [vmem:[#allocation3 + $0x1ec] sm:$0xf0]  ;;  %v4869_v0 = vld [vmem:[#allocation3 + $0x1a0] sm:$0xf0] }
 0x1e1   : > { %v3068_v11 = vadd.f32 %v5825_v60, %v2979_v27 }
 0x1e2   : > { %v5861_v9 = vpop.f32.mrf.mxu3 }
 0x1e3   : > { %3476 = vmatmul.bf16.gmra.mxu0 %v4095_v4  ;;  %v5864_v2 = vadd.f32 %v5834_v6, %v3068_v11  ;;  %v1086_v6 = vld [vmem:[#allocation2 + $0xd9] sm:$0xff] }
 0x1e4   : > { %v5866_v61 = vpop.f32.mrf.mxu1  ;;  %v1118_v27 = vpack.c.bf16 %v1086_v6, %v1086_v6  ;;  %v895_v11 = vld [vmem:[#allocation2 + $0xda] sm:$0xff] }
 0x1e6   : > { %v2980_v60 = vpop.f32.mrf.mxu2  ;;  %1150 = vst [vmem:[#allocation3 + $0x214] sm:$0xf] %v1118_v27  ;;  %v4122_v27 = vld [vmem:[#allocation3 + $0x180] sm:$0xf] }
 0x1e7   : > { %v2981_v52 = vadd.f32 %v2980_v60, %v2892_v59  ;;  %3392 = vmatmul.bf16.gmra.mxu3 %v4127_v33  ;;  %v896_v33 = vld [vmem:[#allocation2 + $0xe2] sm:$0xff]  ;;  %v927_v59 = vpack.c.bf16 %v895_v11, %v895_v11 }
 0x1e8   : > { %v5870_v4 = vpop.f32.mrf.mxu0  ;;  %v928_v60 = vpack.c.bf16 %v896_v33, %v896_v33  ;;  %v4188_v11 = vld [vmem:[#allocation3 + $0x22c] sm:$0xf0] }
 0x1e9   : > { %v3070_v3 = vadd.f32 %v5837_v37, %v2981_v52  ;;  %v4131_v37 = vor.u32 %v4870_v18, %v4130_v32  ;;  %v991_v52 = vld [vmem:[#allocation2 + $0xe0] sm:$0xff]  ;;  %959 = vst [vmem:[#allocation3 + $0x254] sm:$0xf] %v927_v59  ;;  %v2897_v32 = vadd.f32 %v5842_v19, %v5533_v26 }
 0x1ea   : > { %v5873_v54 = vpop.f32.mrf.mxu3  ;;  %v1023_v6 = vpack.c.bf16 %v991_v52, %v991_v52  ;;  %960 = vst [vmem:[#allocation3 + $0x278] sm:$0xf] %v928_v60  ;;  %v1089_v33 = vld [vmem:[#allocation2 + $0xf9] sm:$0xff] }
 0x1eb   : > { %3298 = vmatmul.bf16.gmra.mxu2 %v4087_v57  ;;  %v5876_v53 = vadd.f32 %v5846_v7, %v3070_v3  ;;  %v1022_v57 = vpack.c.bf16 %v990_v51, %v990_v51  ;;  %v4874_v7 = vld [vmem:[#allocation3 + $0x1cc] sm:$0xf]  ;;  %1246 = vst [vmem:[#allocation3 + $0x218] sm:$0xf] %v927_v59  ;;  %v1121_v52 = vpack.c.bf16 %v1089_v33, %v1089_v33  ;;  %v4166_v19 = vld [vmem:[#allocation3 + $0x1d0] sm:$0xf] }
 0x1ec   : > { %v5878_v34 = vpop.f32.mrf.mxu1  ;;  %v4163_v25 = vor.u32 %v4874_v7, %v4160_v40  ;;  %1055 = vst [vmem:[#allocation3 + $0x234] sm:$0xf] %v1023_v6  ;;  %v4879_v59 = vld [vmem:[#allocation3 + $0x1f0] sm:$0xf0]  ;;  %v2900_v40 = vadd.f32 %v5854_v1, %v5542_v50 }
 0x1ed   : > { %1054 = vst [vmem:[#allocation3 + $0x210] sm:$0xf] %v1022_v57 }
 0x1ee   : > { %v2983_v5 = vpop.f32.mrf.mxu2  ;;  %1247 = vst [vmem:[#allocation3 + $0x23c] sm:$0xf] %v928_v60 }
 0x1ef   : > { %v2984_v30 = vadd.f32 %v2983_v5, %v2895_v42  ;;  %3219 = vmatmul.bf16.gmra.mxu1 %v4155_v35  ;;  %v4123_v42 = vor.u32 %v4869_v0, %v4122_v27  ;;  %v4882_v5 = vld [vmem:[#allocation3 + $0x20c] sm:$0xf]  ;;  %1153 = vst [vmem:[#allocation3 + $0x280] sm:$0xf] %v1121_v52  ;;  %v992_v27 = vld [vmem:[#allocation2 + $0xf0] sm:$0xff] }
 0x1f0   : > { %v5882_v22 = vpop.f32.mrf.mxu0  ;;  %v4191_v26 = vor.u32 %v4882_v5, %v4188_v11  ;;  %v4196_v11 = vld [vmem:[#allocation3 + $0x234] sm:$0xf0]  ;;  %v4878_v52 = vld [vmem:[#allocation3 + $0x1e8] sm:$0xf0] }
 0x1f1   : > { %v3073_v15 = vadd.f32 %v5849_v48, %v2984_v30 }
 0x1f2   : > { %v5885_v58 = vpop.f32.mrf.mxu3 }
 0x1f3   : > { %3481 = vmatmul.bf16.gmra.mxu0 %v4131_v37  ;;  %v5888_v3 = vadd.f32 %v5858_v28, %v3073_v15  ;;  %v1088_v28 = vld [vmem:[#allocation2 + $0xf1] sm:$0xff] }
 0x1f4   : > { %v5890_v35 = vpop.f32.mrf.mxu1  ;;  %v1120_v30 = vpack.c.bf16 %v1088_v28, %v1088_v28  ;;  %v897_v15 = vld [vmem:[#allocation2 + $0xf2] sm:$0xff] }
 0x1f6   : > { %v2985_v48 = vpop.f32.mrf.mxu2  ;;  %1152 = vst [vmem:[#allocation3 + $0x25c] sm:$0xf] %v1120_v30  ;;  %v4158_v30 = vld [vmem:[#allocation3 + $0x1c8] sm:$0xf] }
 0x1f7   : > { %v2986_v18 = vadd.f32 %v2985_v48, %v2897_v32  ;;  %3397 = vmatmul.bf16.gmra.mxu3 %v4163_v25  ;;  %v898_v25 = vld [vmem:[#allocation2 + $0xfa] sm:$0xff]  ;;  %v929_v32 = vpack.c.bf16 %v897_v15, %v897_v15  ;;  %v4224_v15 = vld [vmem:[#allocation3 + $0x274] sm:$0xf0] }
 0x1f8   : > { %v5894_v37 = vpop.f32.mrf.mxu0  ;;  %v930_v48 = vpack.c.bf16 %v898_v25, %v898_v25  ;;  %v1091_v25 = vld [vmem:[#allocation2 + $0x111] sm:$0xff] }
 0x1f9   : > { %v3075_v51 = vadd.f32 %v5861_v9, %v2986_v18  ;;  %v4167_v9 = vor.u32 %v4879_v59, %v4166_v19  ;;  %v993_v18 = vld [vmem:[#allocation2 + $0xf8] sm:$0xff]  ;;  %961 = vst [vmem:[#allocation3 + $0x29c] sm:$0xf] %v929_v32  ;;  %v2902_v19 = vadd.f32 %v5866_v61, %v5551_v16  ;;  %v4202_v61 = vld [vmem:[#allocation3 + $0x218] sm:$0xf] }
 0x1fa   : > { %v5897_v57 = vpop.f32.mrf.mxu3  ;;  %v1025_v28 = vpack.c.bf16 %v993_v18, %v993_v18  ;;  %962 = vst [vmem:[#allocation3 + $0x2c0] sm:$0xf] %v930_v48  ;;  %v1123_v18 = vpack.c.bf16 %v1091_v25, %v1091_v25 }
 0x1fb   : > { %3303 = vmatmul.bf16.gmra.mxu2 %v4123_v42  ;;  %v5900_v60 = vadd.f32 %v5870_v4, %v3075_v51  ;;  %v1024_v42 = vpack.c.bf16 %v992_v27, %v992_v27  ;;  %v4883_v4 = vld [vmem:[#allocation3 + $0x214] sm:$0xf]  ;;  %1248 = vst [vmem:[#allocation3 + $0x260] sm:$0xf] %v929_v32  ;;  %v4888_v32 = vld [vmem:[#allocation3 + $0x238] sm:$0xf0] }
 0x1fc   : > { %v5902_v7 = vpop.f32.mrf.mxu1  ;;  %v4199_v1 = vor.u32 %v4883_v4, %v4196_v11  ;;  %1057 = vst [vmem:[#allocation3 + $0x27c] sm:$0xf] %v1025_v28  ;;  %v2905_v11 = vadd.f32 %v5878_v34, %v5491_v63 }
 0x1fd   : > { %1056 = vst [vmem:[#allocation3 + $0x258] sm:$0xf] %v1024_v42 }
 0x1fe   : > { %v2988_v6 = vpop.f32.mrf.mxu2  ;;  %1249 = vst [vmem:[#allocation3 + $0x284] sm:$0xf] %v930_v48 }
 0x1ff   : > { %v2989_v0 = vadd.f32 %v2988_v6, %v2900_v40  ;;  %3224 = vmatmul.bf16.gmra.mxu1 %v4191_v26  ;;  %v4159_v40 = vor.u32 %v4878_v52, %v4158_v30  ;;  %v4891_v6 = vld [vmem:[#allocation3 + $0x254] sm:$0xf]  ;;  %1155 = vst [vmem:[#allocation3 + $0x2c8] sm:$0xf] %v1123_v18  ;;  %v900_v30 = vld [vmem:[#allocation2 + $0x112] sm:$0xff]  ;;  %v994_v52 = vld [vmem:[#allocation2 + $0x108] sm:$0xff] }
 0x200   : > { %v5906_v5 = vpop.f32.mrf.mxu0  ;;  %v4227_v16 = vor.u32 %v4891_v6, %v4224_v15  ;;  %v4892_v15 = vld [vmem:[#allocation3 + $0x25c] sm:$0xf]  ;;  %v4887_v18 = vld [vmem:[#allocation3 + $0x230] sm:$0xf0] }
 0x201   : > { %v3078_v33 = vadd.f32 %v5873_v54, %v2989_v0 }
 0x202   : > { %v5909_v50 = vpop.f32.mrf.mxu3 }
 0x203   : > { %3486 = vmatmul.bf16.gmra.mxu0 %v4167_v9  ;;  %v5912_v51 = vadd.f32 %v5882_v22, %v3078_v33  ;;  %v1090_v22 = vld [vmem:[#allocation2 + $0x109] sm:$0xff]  ;;  %v4203_v33 = vor.u32 %v4888_v32, %v4202_v61  ;;  %v2907_v61 = vadd.f32 %v5890_v35, %v5499_v23 }
 0x204   : > { %v5914_v26 = vpop.f32.mrf.mxu1  ;;  %v1122_v0 = vpack.c.bf16 %v1090_v22, %v1090_v22  ;;  %v4232_v22 = vld [vmem:[#allocation3 + $0x27c] sm:$0xf0] }
 0x205   : > { %v4235_v34 = vor.u32 %v4892_v15, %v4232_v22  ;;  %v4238_v35 = vld [vmem:[#allocation3 + $0x260] sm:$0xf]  ;;  %v2910_v15 = vadd.f32 %v5902_v7, %v5507_v45 }
 0x206   : > { %v2990_v54 = vpop.f32.mrf.mxu2  ;;  %1154 = vst [vmem:[#allocation3 + $0x2a4] sm:$0xf] %v1122_v0  ;;  %v4194_v0 = vld [vmem:[#allocation3 + $0x210] sm:$0xf] }
 0x207   : > { %v2991_v59 = vadd.f32 %v2990_v54, %v2902_v19  ;;  %3402 = vmatmul.bf16.gmra.mxu3 %v4199_v1  ;;  %v899_v1 = vld [vmem:[#allocation2 + $0x10a] sm:$0xff] }
 0x208   : > { %v5918_v9 = vpop.f32.mrf.mxu0  ;;  %v931_v54 = vpack.c.bf16 %v899_v1, %v899_v1  ;;  %v1092_v1 = vld [vmem:[#allocation2 + $0x121] sm:$0xff] }
 0x209   : > { %v3080_v27 = vadd.f32 %v5885_v58, %v2991_v59  ;;  %v932_v59 = vpack.c.bf16 %v900_v30, %v900_v30  ;;  %v1093_v30 = vld [vmem:[#allocation2 + $0x129] sm:$0xff] }
 0x20a   : > { %v5921_v42 = vpop.f32.mrf.mxu3  ;;  %963 = vst [vmem:[#allocation3 + $0x2e4] sm:$0xf] %v931_v54 }
 0x20b   : > { %3308 = vmatmul.bf16.gmra.mxu2 %v4159_v40  ;;  %v5924_v48 = vadd.f32 %v5894_v37, %v3080_v27  ;;  %v995_v40 = vld [vmem:[#allocation2 + $0x110] sm:$0xff]  ;;  %v1026_v37 = vpack.c.bf16 %v994_v52, %v994_v52  ;;  %964 = vst [vmem:[#allocation3 + $0x308] sm:$0xf] %v932_v59 }
 0x20c   : > { %v3190_v4 = vpop.f32.mrf.mxu1  ;;  %v1027_v25 = vpack.c.bf16 %v995_v40, %v995_v40  ;;  %1250 = vst [vmem:[#allocation3 + $0x2a8] sm:$0xf] %v931_v54  ;;  %v1125_v40 = vpack.c.bf16 %v1093_v30, %v1093_v30  ;;  %v4897_v54 = vld [vmem:[#allocation3 + $0x280] sm:$0xf0]  ;;  %v4230_v30 = vld [vmem:[#allocation3 + $0x258] sm:$0xf] }
 0x20d   : > { %v5929_v28 = vadd.f32 %v3190_v4, %v5579_v36  ;;  %1058 = vst [vmem:[#allocation3 + $0x2a0] sm:$0xf] %v1026_v37 }
 0x20e   : > { %v2993_v58 = vpop.f32.mrf.mxu2  ;;  %1059 = vst [vmem:[#allocation3 + $0x2c4] sm:$0xf] %v1027_v25  ;;  %v4239_v25 = vor.u32 %v4897_v54, %v4238_v35 }
 0x20f   : > { %v2994_v19 = vadd.f32 %v2993_v58, %v2905_v11  ;;  %3229 = vmatmul.bf16.gmra.mxu1 %v4227_v16  ;;  %1251 = vst [vmem:[#allocation3 + $0x2cc] sm:$0xf] %v932_v59  ;;  %v4195_v11 = vor.u32 %v4887_v18, %v4194_v0  ;;  %v4900_v58 = vld [vmem:[#allocation3 + $0x29c] sm:$0xf]  ;;  %v996_v0 = vld [vmem:[#allocation2 + $0x120] sm:$0xff] }
 0x210   : > { %v5931_v6 = vpop.f32.mrf.mxu0  ;;  %1157 = vst [vmem:[#allocation3 + $0x310] sm:$0xf] %v1125_v40  ;;  %v2912_v40 = vadd.f32 %v5914_v26, %v5528_v14 }
 0x211   : > { %v3083_v63 = vadd.f32 %v5897_v57, %v2994_v19  ;;  %v1124_v19 = vpack.c.bf16 %v1092_v1, %v1092_v1 }
 0x212   : > { %v5934_v36 = vpop.f32.mrf.mxu3 }
 0x213   : > { %3491 = vmatmul.bf16.gmra.mxu0 %v4203_v33  ;;  %v5937_v27 = vadd.f32 %v5906_v5, %v3083_v63  ;;  %v4260_v5 = vld [vmem:[#allocation3 + $0x2bc] sm:$0xf0]  ;;  %1156 = vst [vmem:[#allocation3 + $0x2ec] sm:$0xf] %v1124_v19  ;;  %v901_v63 = vld [vmem:[#allocation2 + $0x122] sm:$0xff] }
 0x214   : > { %v3192_v16 = vpop.f32.mrf.mxu1  ;;  %v4274_v14 = vld [vmem:[#allocation3 + $0x2a8] sm:$0xf] }
 0x215   : > { %v5942_v32 = vadd.f32 %v3192_v16, %v5591_v24  ;;  %v4263_v24 = vor.u32 %v4900_v58, %v4260_v5  ;;  %v933_v16 = vpack.c.bf16 %v901_v63, %v901_v63  ;;  %v4268_v58 = vld [vmem:[#allocation3 + $0x2c4] sm:$0xf0] }
 0x216   : > { %v2995_v57 = vpop.f32.mrf.mxu2  ;;  %v4906_v26 = vld [vmem:[#allocation3 + $0x2c8] sm:$0xf0] }
 0x217   : > { %v2996_v4 = vadd.f32 %v2995_v57, %v2907_v61  ;;  %3407 = vmatmul.bf16.gmra.mxu3 %v4235_v34  ;;  %v902_v34 = vld [vmem:[#allocation2 + $0x12a] sm:$0xff]  ;;  %965 = vst [vmem:[#allocation3 + $0x32c] sm:$0xf] %v933_v16 }
 0x218   : > { %v5944_v33 = vpop.f32.mrf.mxu0  ;;  %v934_v61 = vpack.c.bf16 %v902_v34, %v902_v34  ;;  %v997_v57 = vld [vmem:[#allocation2 + $0x128] sm:$0xff]  ;;  %1252 = vst [vmem:[#allocation3 + $0x2f0] sm:$0xf] %v933_v16  ;;  %v5040_v16 = vld [vmem:[%s6584_s4 + $0x38] sm:$0xff] }
 0x219   : > { %v3085_v52 = vadd.f32 %v5909_v50, %v2996_v4  ;;  %v1029_v5 = vpack.c.bf16 %v997_v57, %v997_v57  ;;  %3751 = vmatpush.bf16.msrb.mxu1 %v5040_v16  ;;  %v1096_v16 = vld [vmem:[#allocation2 + $0x151] sm:$0xff] }
 0x21a   : > { %v5947_v23 = vpop.f32.mrf.mxu3  ;;  %966 = vst [vmem:[#allocation3 + $0x350] sm:$0xf] %v934_v61 }
 0x21b   : > { %3313 = vmatmul.bf16.gmra.mxu2 %v4195_v11  ;;  %v5950_v59 = vadd.f32 %v5918_v9, %v3085_v52  ;;  %v1028_v9 = vpack.c.bf16 %v996_v0, %v996_v0  ;;  %v4901_v11 = vld [vmem:[#allocation3 + $0x2a4] sm:$0xf]  ;;  %v4896_v52 = vld [vmem:[#allocation3 + $0x278] sm:$0xf0]  ;;  %1061 = vst [vmem:[#allocation3 + $0x30c] sm:$0xf] %v1029_v5 }
 0x21c   : > { %v3195_v37 = vpop.f32.mrf.mxu1  ;;  %v4271_v7 = vor.u32 %v4901_v11, %v4268_v58  ;;  %1253 = vst [vmem:[#allocation3 + $0x314] sm:$0xf] %v934_v61  ;;  %v4231_v54 = vor.u32 %v4896_v52, %v4230_v30  ;;  %v4275_v11 = vor.u32 %v4906_v26, %v4274_v14  ;;  %v903_v58 = vld [vmem:[#allocation2 + $0x13a] sm:$0xff]  ;;  %v904_v5 = vld [vmem:[#allocation2 + $0x142] sm:$0xff] }
 0x21d   : > { %v5955_v22 = vadd.f32 %v3195_v37, %v5603_v49  ;;  %1060 = vst [vmem:[#allocation3 + $0x2e8] sm:$0xf] %v1028_v9  ;;  %v4909_v37 = vld [vmem:[#allocation3 + $0x2e4] sm:$0xf]  ;;  %v935_v30 = vpack.c.bf16 %v903_v58, %v903_v58  ;;  %v936_v52 = vpack.c.bf16 %v904_v5, %v904_v5 }
 0x21e   : > { %v2998_v50 = vpop.f32.mrf.mxu2 }
 0x21f   : > { %v2999_v18 = vadd.f32 %v2998_v50, %v2910_v15  ;;  %3234 = vmatmul.bf16.gmra.mxu1 %v4263_v24  ;;  %v1094_v50 = vld [vmem:[#allocation2 + $0x139] sm:$0xff]  ;;  %967 = vst [vmem:[#allocation3 + $0x374] sm:$0xf] %v935_v30 }
 0x220   : > { %v5957_v4 = vpop.f32.mrf.mxu0  ;;  %v1126_v34 = vpack.c.bf16 %v1094_v50, %v1094_v50  ;;  %968 = vst [vmem:[#allocation3 + $0x398] sm:$0xf] %v936_v52  ;;  %v4266_v50 = vld [vmem:[#allocation3 + $0x2a0] sm:$0xf] }
 0x221   : > { %v3088_v45 = vadd.f32 %v5921_v42, %v2999_v18  ;;  %1254 = vst [vmem:[#allocation3 + $0x338] sm:$0xf] %v935_v30  ;;  %v4332_v26 = vld [vmem:[#allocation3 + $0x34c] sm:$0xf0] }
 0x222   : > { %v5960_v49 = vpop.f32.mrf.mxu3  ;;  %1158 = vst [vmem:[#allocation3 + $0x334] sm:$0xf] %v1126_v34 }
 0x223   : > { %3496 = vmatmul.bf16.gmra.mxu0 %v4239_v25  ;;  %v5963_v1 = vadd.f32 %v5931_v6, %v3088_v45  ;;  %v4296_v6 = vld [vmem:[#allocation3 + $0x304] sm:$0xf0]  ;;  %v1095_v25 = vld [vmem:[#allocation2 + $0x141] sm:$0xff]  ;;  %1255 = vst [vmem:[#allocation3 + $0x35c] sm:$0xf] %v936_v52 }
 0x224   : > { %v3197_v19 = vpop.f32.mrf.mxu1  ;;  %v1127_v0 = vpack.c.bf16 %v1095_v25, %v1095_v25  ;;  %v998_v45 = vld [vmem:[#allocation2 + $0x138] sm:$0xff]  ;;  %v4905_v25 = vld [vmem:[#allocation3 + $0x2c0] sm:$0xf0]  ;;  %v4915_v30 = vld [vmem:[#allocation3 + $0x310] sm:$0xf0] }
 0x225   : > { %v5968_v24 = vadd.f32 %v3197_v19, %v5621_v31  ;;  %v4299_v31 = vor.u32 %v4909_v37, %v4296_v6  ;;  %v999_v19 = vld [vmem:[#allocation2 + $0x140] sm:$0xff]  ;;  %v4267_v14 = vor.u32 %v4905_v25, %v4266_v50 }
 0x226   : > { %v3000_v42 = vpop.f32.mrf.mxu2  ;;  %1159 = vst [vmem:[#allocation3 + $0x358] sm:$0xf] %v1127_v0 }
 0x227   : > { %v3001_v35 = vadd.f32 %v3000_v42, %v2912_v40  ;;  %3412 = vmatmul.bf16.gmra.mxu3 %v4271_v7  ;;  %v1030_v40 = vpack.c.bf16 %v998_v45, %v998_v45  ;;  %v4910_v42 = vld [vmem:[#allocation3 + $0x2ec] sm:$0xf] }
 0x228   : > { %v3459_v15 = vpop.f32.mrf.mxu0 }
 0x229   : > { %v3090_v63 = vadd.f32 %v5934_v36, %v3001_v35  ;;  %v4304_v35 = vld [vmem:[#allocation3 + $0x30c] sm:$0xf0]  ;;  %1062 = vst [vmem:[#allocation3 + $0x330] sm:$0xf] %v1030_v40  ;;  %v905_v40 = vld [vmem:[#allocation2 + $0x152] sm:$0xff] }
 0x22a   : > { %v5971_v18 = vpop.f32.mrf.mxu3  ;;  %v4919_v25 = vld [vmem:[#allocation3 + $0x334] sm:$0xf] }
 0x22b   : > { %3318 = vmatmul.bf16.gmra.mxu2 %v4231_v54  ;;  %v5977_v61 = vadd.f32 %v5944_v33, %v3090_v63  ;;  %v1031_v54 = vpack.c.bf16 %v999_v19, %v999_v19 }
 0x22c   : > { %v3200_v57 = vpop.f32.mrf.mxu1 }
 0x22d   : > { %6606 = vst [vmem:[#allocation4_spill] sm:$0xff] %v5977_v61  ;;  %v5980_v36 = vadd.f32 %v3200_v57, %v5639_v46  ;;  %v1097_v57 = vld [vmem:[#allocation2 + $0x159] sm:$0xff] }
 0x22e   : > { %v3279_v9 = vpop.f32.mrf.mxu2  ;;  %1063 = vst [vmem:[#allocation3 + $0x354] sm:$0xf] %v1031_v54  ;;  %v1129_v58 = vpack.c.bf16 %v1097_v57, %v1097_v57 }
 0x22f   : > { %v3280_v7 = vadd.f32 %v3279_v9, %v5929_v28  ;;  %3239 = vmatmul.bf16.gmra.mxu1 %v4299_v31  ;;  %v4307_v28 = vor.u32 %v4910_v42, %v4304_v35  ;;  %v4918_v31 = vld [vmem:[#allocation3 + $0x32c] sm:$0xf] }
 0x230   : > { %v3462_v33 = vpop.f32.mrf.mxu0  ;;  %v4335_v45 = vor.u32 %v4918_v31, %v4332_v26  ;;  %1161 = vst [vmem:[#allocation3 + $0x3a0] sm:$0xf] %v1129_v58  ;;  %v906_v42 = vld [vmem:[#allocation2 + $0x15a] sm:$0xff] }
 0x231   : > { %v3369_v46 = vadd.f32 %v5947_v23, %v3280_v7  ;;  %v4302_v26 = vld [vmem:[#allocation3 + $0x2e8] sm:$0xf] }
 0x232   : > { %v5984_v37 = vpop.f32.mrf.mxu3 }
 0x233   : > { %v5987_v6 = vadd.f32 %v5957_v4, %v3369_v46  ;;  %3501 = vmatmul.bf16.gmra.mxu0 %v4275_v11  ;;  %v1128_v11 = vpack.c.bf16 %v1096_v16, %v1096_v16  ;;  %v938_v46 = vpack.c.bf16 %v906_v42, %v906_v42  ;;  %v4914_v16 = vld [vmem:[#allocation3 + $0x308] sm:$0xf0] }
 0x234   : > { %v3202_v63 = vpop.f32.mrf.mxu1  ;;  %v4303_v58 = vor.u32 %v4914_v16, %v4302_v26  ;;  %v1003_v26 = vld [vmem:[#allocation2 + $0x170] sm:$0xff] }
 0x235   : > { %v5990_v34 = vadd.f32 %v3202_v63, %v5649_v43  ;;  %1160 = vst [vmem:[#allocation3 + $0x37c] sm:$0xf] %v1128_v11  ;;  %v4340_v63 = vld [vmem:[#allocation3 + $0x354] sm:$0xf0] }
 0x236   : > { %v3281_v0 = vpop.f32.mrf.mxu2  ;;  %970 = vst [vmem:[#allocation3 + $0x3e0] sm:$0xf] %v938_v46 }
 0x237   : > { %v3282_v23 = vadd.f32 %v3281_v0, %v5942_v32  ;;  %3417 = vmatmul.bf16.gmra.mxu3 %v4307_v28  ;;  %v4310_v32 = vld [vmem:[#allocation3 + $0x2f0] sm:$0xf]  ;;  %v1001_v28 = vld [vmem:[#allocation2 + $0x158] sm:$0xff]  ;;  %1257 = vst [vmem:[#allocation3 + $0x3a4] sm:$0xf] %v938_v46 }
 0x238   : > { %v3464_v4 = vpop.f32.mrf.mxu0  ;;  %v4311_v54 = vor.u32 %v4915_v30, %v4310_v32  ;;  %v1098_v32 = vld [vmem:[#allocation2 + $0x169] sm:$0xff]  ;;  %v1099_v30 = vld [vmem:[#allocation2 + $0x171] sm:$0xff] }
 0x239   : > { %v3371_v9 = vadd.f32 %v5960_v49, %v3282_v23  ;;  %v1000_v49 = vld [vmem:[#allocation2 + $0x150] sm:$0xff]  ;;  %v1033_v23 = vpack.c.bf16 %v1001_v28, %v1001_v28  ;;  %v1131_v42 = vpack.c.bf16 %v1099_v30, %v1099_v30  ;;  %v4924_v46 = vld [vmem:[#allocation3 + $0x358] sm:$0xf0]  ;;  %v4923_v30 = vld [vmem:[#allocation3 + $0x350] sm:$0xf0] }
 0x23a   : > { %v5994_v5 = vpop.f32.mrf.mxu3  ;;  %v1032_v0 = vpack.c.bf16 %v1000_v49, %v1000_v49 }
 0x23b   : > { %v5996_v43 = vadd.f32 %v3459_v15, %v3371_v9  ;;  %3323 = vmatmul.bf16.gmra.mxu2 %v4267_v14  ;;  %v937_v15 = vpack.c.bf16 %v905_v40, %v905_v40  ;;  %1065 = vst [vmem:[#allocation3 + $0x39c] sm:$0xf] %v1033_v23  ;;  %v1130_v40 = vpack.c.bf16 %v1098_v32, %v1098_v32  ;;  %v4338_v32 = vld [vmem:[#allocation3 + $0x330] sm:$0xf] }
 0x23c   : > { %v3205_v7 = vpop.f32.mrf.mxu1  ;;  %1064 = vst [vmem:[#allocation3 + $0x378] sm:$0xf] %v1032_v0 }
 0x23d   : > { %v5999_v52 = vadd.f32 %v3205_v7, %v5660_v38  ;;  %969 = vst [vmem:[#allocation3 + $0x3bc] sm:$0xf] %v937_v15  ;;  %v4368_v7 = vld [vmem:[#allocation3 + $0x394] sm:$0xf0] }
 0x23e   : > { %v3284_v19 = vpop.f32.mrf.mxu2  ;;  %1256 = vst [vmem:[#allocation3 + $0x380] sm:$0xf] %v937_v15  ;;  %v4346_v15 = vld [vmem:[#allocation3 + $0x338] sm:$0xf] }
 0x23f   : > { %v3285_v35 = vadd.f32 %v3284_v19, %v5955_v22  ;;  %3244 = vmatmul.bf16.gmra.mxu1 %v4335_v45  ;;  %v4343_v22 = vor.u32 %v4919_v25, %v4340_v63  ;;  %v4927_v45 = vld [vmem:[#allocation3 + $0x374] sm:$0xf]  ;;  %1162 = vst [vmem:[#allocation3 + $0x3c4] sm:$0xf] %v1130_v40  ;;  %v907_v25 = vld [vmem:[#allocation2 + $0x16a] sm:$0xff]  ;;  %v908_v63 = vld [vmem:[#allocation2 + $0x172] sm:$0xff]  ;;  %v4347_v23 = vor.u32 %v4924_v46, %v4346_v15 }
 0x240   : > { %v6002_v50 = vpop.f32.mrf.mxu0  ;;  %1163 = vst [vmem:[#allocation3 + $0x3e8] sm:$0xf] %v1131_v42  ;;  %v4339_v42 = vor.u32 %v4923_v30, %v4338_v32  ;;  %v1101_v15 = vld [vmem:[#allocation2 + $0x189] sm:$0xff] }
 0x241   : > { %v3374_v38 = vadd.f32 %v5971_v18, %v3285_v35  ;;  %v4371_v35 = vor.u32 %v4927_v45, %v4368_v7 }
 0x242   : > { %v6005_v14 = vpop.f32.mrf.mxu3 }
 0x243   : > { %v6007_v31 = vadd.f32 %v3462_v33, %v3374_v38  ;;  %3506 = vmatmul.bf16.gmra.mxu0 %v4311_v54  ;;  %v939_v38 = vpack.c.bf16 %v907_v25, %v907_v25  ;;  %v1133_v25 = vpack.c.bf16 %v1101_v15, %v1101_v15  ;;  %v4932_v15 = vld [vmem:[#allocation3 + $0x398] sm:$0xf0] }
 0x244   : > { %v3207_v57 = vpop.f32.mrf.mxu1 }
 0x245   : > { %v6010_v9 = vadd.f32 %v3207_v57, %v5680_v44  ;;  %v4928_v57 = vld [vmem:[#allocation3 + $0x37c] sm:$0xf]  ;;  %971 = vst [vmem:[#allocation3 + $0x404] sm:$0xf] %v939_v38 }
 0x246   : > { %v3286_v11 = vpop.f32.mrf.mxu2  ;;  %1258 = vst [vmem:[#allocation3 + $0x3c8] sm:$0xf] %v939_v38  ;;  %v4933_v38 = vld [vmem:[#allocation3 + $0x3a0] sm:$0xf0] }
 0x247   : > { %v3287_v18 = vadd.f32 %v3286_v11, %v5968_v24  ;;  %3422 = vmatmul.bf16.gmra.mxu3 %v4343_v22  ;;  %v5039_v24 = vld [vmem:[%s6584_s4 + $0x30] sm:$0xff]  ;;  %v940_v22 = vpack.c.bf16 %v908_v63, %v908_v63  ;;  %1165 = vst [vmem:[#allocation3 + $0x430] sm:$0xf] %v1133_v25 }
 0x248   : > { %v3469_v33 = vpop.f32.mrf.mxu0  ;;  %3752 = vmatpush.bf16.msrb.mxu1 %v5039_v24  ;;  %v4376_v11 = vld [vmem:[#allocation3 + $0x39c] sm:$0xf0]  ;;  %v4937_v30 = vld [vmem:[#allocation3 + $0x3c4] sm:$0xf] }
 0x249   : > { %v3376_v19 = vadd.f32 %v5984_v37, %v3287_v18  ;;  %972 = vst [vmem:[#allocation3 + $0x428] sm:$0xf] %v940_v22 }
 0x24a   : > { %v6014_v49 = vpop.f32.mrf.mxu3  ;;  %1259 = vst [vmem:[#allocation3 + $0x3ec] sm:$0xf] %v940_v22 }
 0x24b   : > { %v6016_v44 = vadd.f32 %v3464_v4, %v3376_v19  ;;  %3328 = vmatmul.bf16.gmra.mxu2 %v4303_v58  ;;  %v1002_v4 = vld [vmem:[#allocation2 + $0x168] sm:$0xff]  ;;  %v1035_v58 = vpack.c.bf16 %v1003_v26, %v1003_v26 }
 0x24c   : > { %v3210_v54 = vpop.f32.mrf.mxu1  ;;  %v1034_v18 = vpack.c.bf16 %v1002_v4, %v1002_v4 }
 0x24d   : > { %v6022_v28 = vadd.f32 %v3210_v54, %v5697_v12  ;;  %1067 = vst [vmem:[#allocation3 + $0x3e4] sm:$0xf] %v1035_v58  ;;  %v4404_v54 = vld [vmem:[#allocation3 + $0x3dc] sm:$0xf0] }
 0x24e   : > { %v3289_v37 = vpop.f32.mrf.mxu2  ;;  %1066 = vst [vmem:[#allocation3 + $0x3c0] sm:$0xf] %v1034_v18 }
 0x24f   : > { %v3290_v0 = vadd.f32 %v3289_v37, %v5980_v36  ;;  %3249 = vmatmul.bf16.gmra.mxu1 %v4371_v35  ;;  %v4379_v36 = vor.u32 %v4928_v57, %v4376_v11  ;;  %v4936_v35 = vld [vmem:[#allocation3 + $0x3bc] sm:$0xf]  ;;  %v909_v57 = vld [vmem:[#allocation2 + $0x182] sm:$0xff] }
 0x250   : > { %v3472_v16 = vpop.f32.mrf.mxu0  ;;  %v910_v11 = vld [vmem:[#allocation2 + $0x18a] sm:$0xff] }
 0x251   : > { %v3379_v12 = vadd.f32 %v5994_v5, %v3290_v0  ;;  %v4407_v0 = vor.u32 %v4936_v35, %v4404_v54 }
 0x252   : > { %v6026_v45 = vpop.f32.mrf.mxu3 }
 0x253   : > { %v6029_v7 = vadd.f32 %v6002_v50, %v3379_v12  ;;  %3511 = vmatmul.bf16.gmra.mxu0 %v4347_v23  ;;  %v1100_v50 = vld [vmem:[#allocation2 + $0x181] sm:$0xff]  ;;  %v942_v12 = vpack.c.bf16 %v910_v11, %v910_v11 }
 0x254   : > { %v6031_v19 = vpop.f32.mrf.mxu1  ;;  %v1132_v37 = vpack.c.bf16 %v1100_v50, %v1100_v50  ;;  %v4374_v50 = vld [vmem:[#allocation3 + $0x378] sm:$0xf] }
 0x255   : > { %974 = vst [vmem:[#allocation3 + $0x470] sm:$0xf] %v942_v12 }
 0x256   : > { %v3291_v40 = vpop.f32.mrf.mxu2  ;;  %1164 = vst [vmem:[#allocation3 + $0x40c] sm:$0xf] %v1132_v37 }
 0x257   : > { %v3292_v5 = vadd.f32 %v3291_v40, %v5990_v34  ;;  %3427 = vmatmul.bf16.gmra.mxu3 %v4379_v36  ;;  %v4382_v34 = vld [vmem:[#allocation3 + $0x380] sm:$0xf]  ;;  %v1005_v36 = vld [vmem:[#allocation2 + $0x188] sm:$0xff]  ;;  %v4412_v40 = vld [vmem:[#allocation3 + $0x3e4] sm:$0xf0] }
 0x258   : > { %v3474_v24 = vpop.f32.mrf.mxu0  ;;  %v4383_v58 = vor.u32 %v4933_v38, %v4382_v34  ;;  %1261 = vst [vmem:[#allocation3 + $0x434] sm:$0xf] %v942_v12  ;;  %v4440_v34 = vld [vmem:[#allocation3 + $0x424] sm:$0xf0] }
 0x259   : > { %v3381_v46 = vadd.f32 %v6005_v14, %v3292_v5  ;;  %v1004_v14 = vld [vmem:[#allocation2 + $0x180] sm:$0xff]  ;;  %v4418_v12 = vld [vmem:[#allocation3 + $0x3c8] sm:$0xf] }
 0x25a   : > { %v6035_v63 = vpop.f32.mrf.mxu3  ;;  %v1036_v5 = vpack.c.bf16 %v1004_v14, %v1004_v14  ;;  %v1102_v38 = vld [vmem:[#allocation2 + $0x199] sm:$0xff] }
 0x25b   : > { %v6037_v4 = vadd.f32 %v3469_v33, %v3381_v46  ;;  %3333 = vmatmul.bf16.gmra.mxu2 %v4339_v42  ;;  %v941_v33 = vpack.c.bf16 %v909_v57, %v909_v57  ;;  %v1037_v42 = vpack.c.bf16 %v1005_v36, %v1005_v36  ;;  %v1134_v11 = vpack.c.bf16 %v1102_v38, %v1102_v38  ;;  %v4942_v36 = vld [vmem:[#allocation3 + $0x3e8] sm:$0xf0]  ;;  %v4941_v38 = vld [vmem:[#allocation3 + $0x3e0] sm:$0xf0] }
 0x25c   : > { %v3215_v23 = vpop.f32.mrf.mxu1  ;;  %1068 = vst [vmem:[#allocation3 + $0x408] sm:$0xf] %v1036_v5 }
 0x25d   : > { %v6040_v22 = vadd.f32 %v3215_v23, %v5720_v21  ;;  %973 = vst [vmem:[#allocation3 + $0x44c] sm:$0xf] %v941_v33  ;;  %v4945_v23 = vld [vmem:[#allocation3 + $0x404] sm:$0xf]  ;;  %v4946_v5 = vld [vmem:[#allocation3 + $0x40c] sm:$0xf] }
 0x25e   : > { %v3294_v26 = vpop.f32.mrf.mxu2  ;;  %1069 = vst [vmem:[#allocation3 + $0x42c] sm:$0xf] %v1037_v42  ;;  %v5083_v42 = vld [vmem:[#allocation2] sm:$0xff] }
 0x25f   : > { %v3295_v18 = vadd.f32 %v3294_v26, %v5999_v52  ;;  %3254 = vmatmul.bf16.gmra.mxu1 %v4407_v0  ;;  %v4415_v52 = vor.u32 %v4937_v30, %v4412_v40  ;;  %1260 = vst [vmem:[#allocation3 + $0x410] sm:$0xf] %v941_v33  ;;  %v4375_v0 = vor.u32 %v4932_v15, %v4374_v50  ;;  %v1103_v26 = vld [vmem:[#allocation2 + $0x1a1] sm:$0xff] }
 0x260   : > { %v3477_v32 = vpop.f32.mrf.mxu0  ;;  %v1135_v14 = vpack.c.bf16 %v1103_v26, %v1103_v26  ;;  %1166 = vst [vmem:[#allocation3 + $0x454] sm:$0xf] %v1134_v11  ;;  %v4448_v50 = vld [vmem:[#allocation3 + $0x42c] sm:$0xf0] }
 0x261   : > { %v3384_v35 = vadd.f32 %v6014_v49, %v3295_v18  ;;  %v1198_v15 = vld [vmem:[#allocation2 + $0x19a] sm:$0xff] }
 0x262   : > { %v6044_v21 = vpop.f32.mrf.mxu3  ;;  %1167 = vst [vmem:[#allocation3 + $0x478] sm:$0xf] %v1135_v14 }
 0x263   : > { %v6046_v54 = vadd.f32 %v3472_v16, %v3384_v35  ;;  %3516 = vmatmul.bf16.gmra.mxu0 %v4383_v58  ;;  %v1038_v35 = vpack.c.bf16 %v5083_v42, %v5083_v42  ;;  %v4951_v42 = vld [vmem:[#allocation3 + $0x430] sm:$0xf0] }
 0x264   : > { %v3217_v46 = vpop.f32.mrf.mxu1 }
 0x265   : > { %v6049_v37 = vadd.f32 %v3217_v46, %v5732_v10  ;;  %v4443_v10 = vor.u32 %v4945_v23, %v4440_v34  ;;  %v1199_v46 = vld [vmem:[#allocation2 + $0x1a2] sm:$0xff]  ;;  %1070 = vst [vmem:[#allocation3 + $0x450] sm:$0xf] %v1038_v35  ;;  %v4410_v34 = vld [vmem:[#allocation3 + $0x3c0] sm:$0xf] }
 0x266   : > { %v3296_v25 = vpop.f32.mrf.mxu2  ;;  %1071 = vst [vmem:[#allocation3 + $0x474] sm:$0xf] %v1038_v35 }
 0x267   : > { %v3297_v49 = vadd.f32 %v3296_v25, %v6010_v9  ;;  %3432 = vmatmul.bf16.gmra.mxu3 %v4415_v52  ;;  %v5038_v9 = vld [vmem:[%s6584_s4 + $0x28] sm:$0xff] }
 0x268   : > { %v3479_v16 = vpop.f32.mrf.mxu0  ;;  %3753 = vmatpush.bf16.msrb.mxu1 %v5038_v9 }
 0x269   : > { %v3386_v57 = vadd.f32 %v6026_v45, %v3297_v49  ;;  %v1230_v49 = vpack.c.bf16 %v1198_v15, %v1198_v15  ;;  %v4955_v15 = vld [vmem:[#allocation3 + $0x454] sm:$0xf] }
 0x26a   : > { %v3393_v18 = vpop.f32.mrf.mxu3 }
 0x26b   : > { %v6053_v58 = vadd.f32 %v3474_v24, %v3386_v57  ;;  %3338 = vmatmul.bf16.gmra.mxu2 %v4375_v0  ;;  %v4419_v24 = vor.u32 %v4942_v36, %v4418_v12  ;;  %v1231_v0 = vpack.c.bf16 %v1199_v46, %v1199_v46  ;;  %1262 = vst [vmem:[#allocation3 + $0x458] sm:$0xf] %v1230_v49  ;;  %v4484_v46 = vld [vmem:[#allocation3 + $0x474] sm:$0xf0] }
 0x26c   : > { %v3220_v33 = vpop.f32.mrf.mxu1  ;;  %v3213_v57 = vadd.f32 %v6031_v19, %v5708_v39 }
 0x26d   : > { %v6059_v30 = vadd.f32 %v3220_v33, %v5744_v8  ;;  %1263 = vst [vmem:[#allocation3 + $0x47c] sm:$0xf] %v1231_v0  ;;  %v4954_v33 = vld [vmem:[#allocation3 + $0x44c] sm:$0xf]  ;;  %v4446_v0 = vld [vmem:[#allocation3 + $0x408] sm:$0xf] }
 0x26e   : > { %v3299_v45 = vpop.f32.mrf.mxu2 }
 0x26f   : > { %v3300_v40 = vadd.f32 %v3299_v45, %v6022_v28  ;;  %3259 = vmatmul.bf16.gmra.mxu1 %v4443_v10  ;;  %v4451_v28 = vor.u32 %v4946_v5, %v4448_v50  ;;  %v4411_v10 = vor.u32 %v4941_v38, %v4410_v34  ;;  %v4454_v5 = vld [vmem:[#allocation3 + $0x410] sm:$0xf] }
 0x270   : > { %v3482_v52 = vpop.f32.mrf.mxu0  ;;  %v4455_v35 = vor.u32 %v4951_v42, %v4454_v5  ;;  %v4482_v42 = vld [vmem:[#allocation3 + $0x450] sm:$0xf] }
 0x271   : > { %v3389_v25 = vadd.f32 %v6035_v63, %v3300_v40 }
 0x272   : > { %v3395_v8 = vpop.f32.mrf.mxu3 }
 0x273   : > { %v6063_v23 = vadd.f32 %v3477_v32, %v3389_v25  ;;  %3521 = vmatmul.bf16.gmra.mxu0 %v4419_v24  ;;  %v4476_v32 = vld [vmem:[#allocation3 + $0x46c] sm:$0xf0] }
 0x274   : > { %v3222_v26 = vpop.f32.mrf.mxu1  ;;  %v4479_v40 = vor.u32 %v4954_v33, %v4476_v32  ;;  %v4490_v33 = vld [vmem:[#allocation3 + $0x458] sm:$0xf]  ;;  %v4960_v32 = vld [vmem:[#allocation3 + $0x478] sm:$0xf0] }
 0x275   : > { %v3223_v11 = vadd.f32 %v3222_v26, %v5756_v41 }
 0x276   : > { %v3301_v63 = vpop.f32.mrf.mxu2 }
 0x277   : > { %v3302_v14 = vadd.f32 %v3301_v63, %v3213_v57  ;;  %3437 = vmatmul.bf16.gmra.mxu3 %v4451_v28  ;;  %v4950_v28 = vld [vmem:[#allocation3 + $0x428] sm:$0xf0] }
 0x278   : > { %v3484_v9 = vpop.f32.mrf.mxu0 }
 0x279   : > { %v3391_v12 = vadd.f32 %v6044_v21, %v3302_v14 }
 0x27a   : > { %v3398_v36 = vpop.f32.mrf.mxu3 }
 0x27b   : > { %v6069_v45 = vadd.f32 %v3479_v16, %v3391_v12  ;;  %3343 = vmatmul.bf16.gmra.mxu2 %v4411_v10  ;;  %v4487_v16 = vor.u32 %v4955_v15, %v4484_v46 }
 0x27c   : > { %v3225_v24 = vpop.f32.mrf.mxu1 }
 0x27d   : > { %v3226_v39 = vadd.f32 %v3225_v24, %v5768_v47 }
 0x27e   : > { %v3304_v41 = vpop.f32.mrf.mxu2 }
 0x27f   : > { %v3305_v19 = vadd.f32 %v3304_v41, %v6040_v22  ;;  %3264 = vmatmul.bf16.gmra.mxu1 %v4479_v40  ;;  %v4447_v22 = vor.u32 %v4950_v28, %v4446_v0  ;;  %v4491_v40 = vor.u32 %v4960_v32, %v4490_v33  ;;  %v4959_v41 = vld [vmem:[#allocation3 + $0x470] sm:$0xf0] }
 0x280   : > { %v3487_v50 = vpop.f32.mrf.mxu0 }
 0x281   : > { %v3394_v25 = vadd.f32 %v3393_v18, %v3305_v19  ;;  %v5037_v18 = vld [vmem:[%s6584_s4 + $0x20] sm:$0xff] }
 0x282   : > { %v3400_v21 = vpop.f32.mrf.mxu3  ;;  %3754 = vmatpush.bf16.msrb.mxu1 %v5037_v18 }
 0x283   : > { %v6073_v49 = vadd.f32 %v3482_v52, %v3394_v25  ;;  %3526 = vmatmul.bf16.gmra.mxu0 %v4455_v35  ;;  %v4483_v25 = vor.u32 %v4959_v41, %v4482_v42 }
 0x284   : > { %v3227_v34 = vpop.f32.mrf.mxu1 }
 0x285   : > { %v3228_v38 = vadd.f32 %v3227_v34, %v5780_v55 }
 0x286   : > { %v3306_v47 = vpop.f32.mrf.mxu2 }
 0x287   : > { %v3307_v26 = vadd.f32 %v3306_v47, %v6049_v37  ;;  %3442 = vmatmul.bf16.gmra.mxu3 %v4487_v16 }
 0x288   : > { %v3489_v57 = vpop.f32.mrf.mxu0 }
 0x289   : > { %v3396_v63 = vadd.f32 %v3395_v8, %v3307_v26 }
 0x28a   : > { %v3403_v14 = vpop.f32.mrf.mxu3 }
 0x28b   : > { %v6077_v10 = vadd.f32 %v3484_v9, %v3396_v63  ;;  %3348 = vmatmul.bf16.gmra.mxu2 %v4447_v22 }
 0x28c   : > { %v3230_v52 = vpop.f32.mrf.mxu1 }
 0x28d   : > { %v3231_v55 = vadd.f32 %v3230_v52, %v5792_v20 }
 0x28e   : > { %v3309_v12 = vpop.f32.mrf.mxu2 }
 0x28f   : > { %v3310_v37 = vadd.f32 %v3309_v12, %v6059_v30 }
 0x290   : > { %v3492_v24 = vpop.f32.mrf.mxu0 }
 0x291   : > { %v3399_v8 = vadd.f32 %v3398_v36, %v3310_v37 }
 0x292   : > { %v3405_v5 = vpop.f32.mrf.mxu3 }
 0x293   : > { %v6084_v9 = vadd.f32 %v3487_v50, %v3399_v8  ;;  %3531 = vmatmul.bf16.gmra.mxu0 %v4491_v40 }
 0x294   : > { %v3232_v19 = vpop.f32.mrf.mxu1 }
 0x295   : > { %v3233_v35 = vadd.f32 %v3232_v19, %v5804_v17 }
 0x296   : > { %v3311_v15 = vpop.f32.mrf.mxu2 }
 0x297   : > { %v3312_v46 = vadd.f32 %v3311_v15, %v3223_v11 }
 0x298   : > { %v3494_v20 = vpop.f32.mrf.mxu0 }
 0x299   : > { %v3401_v16 = vadd.f32 %v3400_v21, %v3312_v46 }
 0x29a   : > { %v3408_v0 = vpop.f32.mrf.mxu3 }
 0x29b   : > { %v6087_v28 = vadd.f32 %v3489_v57, %v3401_v16  ;;  %3353 = vmatmul.bf16.gmra.mxu2 %v4483_v25 }
 0x29c   : > { %v3235_v30 = vpop.f32.mrf.mxu1 }
 0x29d   : > { %v3236_v36 = vadd.f32 %v3235_v30, %v5816_v29  ;;  %v5036_v29 = vld [vmem:[%s6584_s4 + $0x18] sm:$0xff] }
 0x29e   : > { %v3314_v50 = vpop.f32.mrf.mxu2  ;;  %3755 = vmatpush.bf16.msrb.mxu1 %v5036_v29 }
 0x29f   : > { %v3315_v34 = vadd.f32 %v3314_v50, %v3226_v39 }
 0x2a0   : > { %v3497_v47 = vpop.f32.mrf.mxu0 }
 0x2a1   : > { %v3404_v26 = vadd.f32 %v3403_v14, %v3315_v34 }
 0x2a2   : > { %v3410_v22 = vpop.f32.mrf.mxu3 }
 0x2a3   : > { %v6090_v63 = vadd.f32 %v3492_v24, %v3404_v26 }
 0x2a4   : > { %v3237_v17 = vpop.f32.mrf.mxu1 }
 0x2a5   : > { %v3238_v11 = vadd.f32 %v3237_v17, %v5828_v62 }
 0x2a6   : > { %v3316_v18 = vpop.f32.mrf.mxu2 }
 0x2a7   : > { %v3317_v52 = vadd.f32 %v3316_v18, %v3228_v38 }
 0x2a8   : > { %v3499_v21 = vpop.f32.mrf.mxu0 }
 0x2a9   : > { %v3406_v33 = vadd.f32 %v3405_v5, %v3317_v52 }
 0x2aa   : > { %v3413_v57 = vpop.f32.mrf.mxu3 }
 0x2ab   : > { %v6093_v32 = vadd.f32 %v3494_v20, %v3406_v33 }
 0x2ac   : > { %v3240_v39 = vpop.f32.mrf.mxu1 }
 0x2ad   : > { %v3241_v14 = vadd.f32 %v3240_v39, %v5840_v56 }
 0x2ae   : > { %v3319_v12 = vpop.f32.mrf.mxu2 }
 0x2af   : > { %v3320_v37 = vadd.f32 %v3319_v12, %v3231_v55 }
 0x2b0   : > { %v3502_v40 = vpop.f32.mrf.mxu0 }
 0x2b1   : > { %v3409_v24 = vadd.f32 %v3408_v0, %v3320_v37 }
 0x2b2   : > { %v3415_v62 = vpop.f32.mrf.mxu3 }
 0x2b3   : > { %v6099_v8 = vadd.f32 %v3497_v47, %v3409_v24 }
 0x2b4   : > { %v6103_v46 = vpop.f32.mrf.mxu1 }
 0x2b6   : > { %v3321_v38 = vpop.f32.mrf.mxu2 }
 0x2b7   : > { %v3322_v5 = vadd.f32 %v3321_v38, %v3233_v35  ;;  %v6147_v38 = vld [vmem:[%s6582_s2] ss:$0 sm:$0xff] }
 0x2b8   : > { %v3504_v42 = vpop.f32.mrf.mxu0 }
 0x2b9   : > { %v3411_v41 = vadd.f32 %v3410_v22, %v3322_v5  ;;  %v5035_v22 = vld [vmem:[%s6584_s4 + $0x10] sm:$0xff]  ;;  %v3542_v5 = vmul.f32 %v6147_v38, %v5996_v43 }
 0x2ba   : > { %v3418_v19 = vpop.f32.mrf.mxu3  ;;  %3756 = vmatpush.bf16.msrb.mxu1 %v5035_v22 }
 0x2bb   : > { %v6101_v15 = vadd.f32 %v3499_v21, %v3411_v41  ;;  %v6156_v41 = vld [vmem:[%s6583_s3] ss:$0 sm:$0xff] }
 0x2bc   : > { %v6109_v34 = vpop.f32.mrf.mxu1 }
 0x2be   : > { %v3324_v25 = vpop.f32.mrf.mxu2 }
 0x2bf   : > { %v3325_v20 = vadd.f32 %v3324_v25, %v3236_v36  ;;  %v5034_v25 = vld [vmem:[%s6584_s4 + $0x8] sm:$0xff] }
 0x2c0   : > { %v3507_v56 = vpop.f32.mrf.mxu0  ;;  %3757 = vmatpush.bf16.msrb.mxu1 %v5034_v25 }
 0x2c1   : > { %v3414_v16 = vadd.f32 %v3413_v57, %v3325_v20 }
 0x2c2   : > { %v6107_v55 = vpop.f32.mrf.mxu3 }
 0x2c3   : > { %v6105_v30 = vadd.f32 %v3502_v40, %v3414_v16 }
 0x2c6   : > { %v3326_v0 = vpop.f32.mrf.mxu2 }
 0x2c7   : > { %v3327_v50 = vadd.f32 %v3326_v0, %v3238_v11  ;;  %v6122_v11 = vpop.f32.mrf.mxu1 }
 0x2c8   : > { %v6111_v35 = vpop.f32.mrf.mxu0 }
 0x2c9   : > { %v3416_v47 = vadd.f32 %v3415_v62, %v3327_v50  ;;  %v3545_v50 = vmul.f32 %v6147_v38, %v6029_v7  ;;  %v3547_v7 = vmul.f32 %v6147_v38, %v6046_v54 }
 0x2ca   : > { %v6118_v17 = vpop.f32.mrf.mxu3 }
 0x2cb   : > { %v6113_v26 = vadd.f32 %v3504_v42, %v3416_v47  ;;  %v3541_v42 = vmul.f32 %v6147_v38, %v5987_v6  ;;  %v3544_v6 = vmul.f32 %v6147_v38, %v6016_v44 }
 0x2cd   : > { %v6175_v0 = vadd.f32 %v6156_v41, %v3541_v42  ;;  %v6186_v44 = vadd.f32 %v6156_v41, %v3544_v6 }
 0x2ce   : > { %v3329_v36 = vpop.f32.mrf.mxu2 }
 0x2cf   : > { %v3330_v18 = vadd.f32 %v3329_v36, %v3241_v14  ;;  %v6132_v12 = vpop.f32.mrf.mxu1  ;;  %6608 = vst [vmem:[#allocation6_spill] sm:$0xff] %v6175_v0  ;;  %v3546_v36 = vmul.f32 %v6147_v38, %v6037_v4  ;;  %v3548_v4 = vmul.f32 %v6147_v38, %v6053_v58 }
 0x2d0   : > { %v6120_v52 = vpop.f32.mrf.mxu0 }
 0x2d1   : > { %v3419_v21 = vadd.f32 %v3418_v19, %v3330_v18  ;;  %v3543_v19 = vmul.f32 %v6147_v38, %v6007_v31  ;;  %v6591_v18 = vmax.f32 %v6175_v0, 0.0  ;;  %v6203_v25 = vadd.f32 %v6156_v41, %v3546_v36 }
 0x2d2   : > { %v6128_v29 = vpop.f32.mrf.mxu3  ;;  %v6225_v61 = vadd.f32 %v6156_v41, %v3548_v4 }
 0x2d3   : > { %v6124_v33 = vadd.f32 %v3507_v56, %v3419_v21  ;;  %v6166_v56 = vadd.f32 %v6156_v41, %v3542_v5  ;;  %v6178_v31 = vadd.f32 %v6156_v41, %v3543_v19  ;;  %v6193_v5 = vadd.f32 %v6156_v41, %v3545_v50  ;;  %6611 = vst [vmem:[#allocation9_spill] sm:$0xff] %v6203_v25 }
 0x2d4   : > { %v6594_v19 = vmax.f32 %v6186_v44, 0.0  ;;  %6613 = vst [vmem:[#allocation11_spill] sm:$0xff] %v6225_v61 }
 0x2d5   : > { %6607 = vst [vmem:[#allocation5_spill] sm:$0xff] %v6166_v56  ;;  %v6590_v22 = vmax.f32 %v6166_v56, 0.0  ;;  %v6592_v21 = vmax.f32 %v6178_v31, 0.0  ;;  %v6596_v0 = vmax.f32 %v6193_v5, 0.0  ;;  %v6215_v56 = vadd.f32 %v6156_v41, %v3547_v7 }
 0x2d6   : > { %v6126_v57 = vpop.f32.mrf.mxu2  ;;  %6609 = vst [vmem:[#allocation7_spill] sm:$0xff] %v6178_v31 }
 0x2d7   : > { %v6140_v24 = vpop.f32.mrf.mxu1  ;;  %6610 = vst [vmem:[#allocation8_spill] sm:$0xff] %v6193_v5  ;;  %v3641_v42 = vadd.f32 %v6590_v22, %v6591_v18  ;;  %v3549_v22 = vmul.f32 %v6147_v38, %v6063_v23  ;;  %v6597_v18 = vmax.f32 %v6203_v25, 0.0  ;;  %v6599_v23 = vmax.f32 %v6215_v56, 0.0 }
 0x2d8   : > { %v6130_v39 = vpop.f32.mrf.mxu0  ;;  %6612 = vst [vmem:[#allocation10_spill] sm:$0xff] %v6215_v56  ;;  %v3552_v5 = vmul.f32 %v6147_v38, %v6077_v10 }
 0x2d9   : > { %v3642_v54 = vadd.f32 %v3641_v42, %v6592_v21  ;;  %v3550_v42 = vmul.f32 %v6147_v38, %v6069_v45  ;;  %v6235_v31 = vadd.f32 %v6156_v41, %v3549_v22 }
 0x2da   : > { %v6136_v40 = vpop.f32.mrf.mxu3  ;;  %v6263_v25 = vadd.f32 %v6156_v41, %v3552_v5  ;;  %v3243_v5 = vadd.f32 %v6103_v46, %v5852_v13 }
 0x2db   : > { %v3643_v58 = vadd.f32 %v3642_v54, %v6594_v19  ;;  %6614 = vst [vmem:[#allocation12_spill] sm:$0xff] %v6235_v31  ;;  %v3551_v54 = vmul.f32 %v6147_v38, %v6073_v49  ;;  %v6601_v19 = vmax.f32 %v6225_v61, 0.0  ;;  %v6243_v45 = vadd.f32 %v6156_v41, %v3550_v42 }
 0x2dc   : > { %v3620_v61 = vmax.f32 %v6263_v25, 0.0 }
 0x2dd   : > { %v3644_v7 = vadd.f32 %v3643_v58, %v6596_v0  ;;  %v6604_v0 = vmax.f32 %v6235_v31, 0.0  ;;  %v6253_v49 = vadd.f32 %v6156_v41, %v3551_v54  ;;  %v6605_v10 = vmax.f32 %v6243_v45, 0.0 }
 0x2de   : > { %v6134_v37 = vpop.f32.mrf.mxu2 }
 0x2df   : > { %v6182_v47 = vpop.f32.mrf.mxu1  ;;  %v3645_v4 = vadd.f32 %v3644_v7, %v6597_v18  ;;  %v3553_v7 = vmul.f32 %v6147_v38, %v6084_v9  ;;  %v3619_v9 = vmax.f32 %v6253_v49, 0.0 }
 0x2e0   : > { %v6138_v14 = vpop.f32.mrf.mxu0 }
 0x2e1   : > { %v3646_v22 = vadd.f32 %v3645_v4, %v6599_v23  ;;  %v3554_v4 = vmul.f32 %v6147_v38, %v6087_v28  ;;  %v6273_v56 = vadd.f32 %v6156_v41, %v3553_v7  ;;  %v3246_v7 = vadd.f32 %v6109_v34, %v5864_v2 }
 0x2e2   : > { %v6163_v20 = vpop.f32.mrf.mxu3 }
 0x2e3   : > { %v3647_v42 = vadd.f32 %v3646_v22, %v6601_v19  ;;  %v3555_v22 = vmul.f32 %v6147_v38, %v6090_v63  ;;  %v6283_v31 = vadd.f32 %v6156_v41, %v3554_v4  ;;  %v3332_v63 = vadd.f32 %v6126_v57, %v3243_v5 }
 0x2e4   : > { %v3621_v46 = vmax.f32 %v6273_v56, 0.0  ;;  %v3557_v4 = vmul.f32 %v6147_v38, %v6099_v8  ;;  %v3251_v8 = vadd.f32 %v6132_v12, %v5888_v3 }
 0x2e5   : > { %v3648_v54 = vadd.f32 %v3647_v42, %v6604_v0  ;;  %v3556_v42 = vmul.f32 %v6147_v38, %v6093_v32  ;;  %v3248_v32 = vadd.f32 %v6122_v11, %v5876_v53  ;;  %v3622_v34 = vmax.f32 %v6283_v31, 0.0 }
 0x2e6   : > { %v6142_v62 = vpop.f32.mrf.mxu2  ;;  %v3421_v5 = vadd.f32 %v6107_v55, %v3332_v63  ;;  %v3559_v55 = vmul.f32 %v6147_v38, %v6105_v30  ;;  %v3560_v30 = vmul.f32 %v6147_v38, %v6113_v26  ;;  %v3561_v26 = vmul.f32 %v6147_v38, %v6124_v33 }
 0x2e7   : > { %v6229_v21 = vpop.f32.mrf.mxu1  ;;  %v3649_v28 = vadd.f32 %v3648_v54, %v6605_v10  ;;  %v6294_v54 = vadd.f32 %v6156_v41, %v3555_v22  ;;  %v3335_v10 = vadd.f32 %v6134_v37, %v3246_v7  ;;  %v6305_v57 = vadd.f32 %v6156_v41, %v3556_v42 }
 0x2e8   : > { %v6172_v16 = vpop.f32.mrf.mxu0  ;;  %v3558_v22 = vmul.f32 %v6147_v38, %v6101_v15  ;;  %v3337_v53 = vadd.f32 %v6142_v62, %v3248_v32  ;;  %v6317_v7 = vadd.f32 %v6156_v41, %v3557_v4  ;;  %v5033_v15 = vld [vmem:[%s6584_s4] sm:$0xff] }
 0x2e9   : > { %v3650_v13 = vadd.f32 %v3649_v28, %v3619_v9  ;;  %v3623_v28 = vmax.f32 %v6294_v54, 0.0  ;;  %v3424_v3 = vadd.f32 %v6118_v17, %v3335_v10  ;;  %v3624_v63 = vmax.f32 %v6305_v57, 0.0  ;;  %3758 = vmatpush.bf16.msrb.mxu1 %v5033_v15 }
 0x2ea   : > { %v6209_v50 = vpop.f32.mrf.mxu3  ;;  %v6334_v32 = vadd.f32 %v6156_v41, %v3558_v22  ;;  %v3510_v17 = vadd.f32 %v6111_v35, %v3421_v5  ;;  %v6347_v22 = vadd.f32 %v6156_v41, %v3559_v55 }
 0x2eb   : > { %v3651_v2 = vadd.f32 %v3650_v13, %v3620_v61  ;;  %v3253_v13 = vadd.f32 %v6140_v24, %v5900_v60  ;;  %v3256_v60 = vadd.f32 %v6182_v47, %v5912_v51  ;;  %v3513_v35 = vadd.f32 %v6120_v52, %v3424_v3 }
 0x2ec   : > { %v3626_v47 = vmax.f32 %v6334_v32, 0.0 }
 0x2ed   : > { %v3652_v37 = vadd.f32 %v3651_v2, %v3621_v46 }
 0x2ee   : > { %v6170_v43 = vpop.f32.mrf.mxu2 }
 0x2ef   : > { %v3260_v19 = vpop.f32.mrf.mxu1  ;;  %v3340_v12 = vadd.f32 %v6170_v43, %v3251_v8  ;;  %v3653_v42 = vadd.f32 %v3652_v37, %v3622_v34  ;;  %v3426_v43 = vadd.f32 %v6128_v29, %v3337_v53  ;;  %v3625_v8 = vmax.f32 %v6317_v7, 0.0 }
 0x2f0   : > { %v6219_v36 = vpop.f32.mrf.mxu0  ;;  %v3258_v53 = vadd.f32 %v6229_v21, %v5924_v48  ;;  %v3562_v37 = vmul.f32 %v6147_v38, %v3510_v17  ;;  %v3261_v15 = vadd.f32 %v3260_v19, %v5937_v27  ;;  %v3627_v48 = vmax.f32 %v6347_v22, 0.0 }
 0x2f1   : > { %v3654_v2 = vadd.f32 %v3653_v42, %v3623_v28  ;;  %v3429_v29 = vadd.f32 %v6136_v40, %v3340_v12  ;;  %v3515_v33 = vadd.f32 %v6130_v39, %v3426_v43  ;;  %v6370_v21 = vadd.f32 %v6156_v41, %v3561_v26 }
 0x2f2   : > { %v6257_v18 = vpop.f32.mrf.mxu3 }
 0x2f3   : > { %v3655_v5 = vadd.f32 %v3654_v2, %v3624_v63  ;;  %v3518_v3 = vadd.f32 %v6138_v14, %v3429_v29  ;;  %v3564_v19 = vmul.f32 %v6147_v38, %v3515_v33 }
 0x2f5   : > { %v3656_v52 = vadd.f32 %v3655_v5, %v3625_v8 }
 0x2f6   : > { %v6207_v6 = vpop.f32.mrf.mxu2 }
 0x2f7   : > { %v3262_v4 = vpop.f32.mrf.mxu1  ;;  %v3342_v24 = vadd.f32 %v6207_v6, %v3253_v13  ;;  %v6360_v6 = vadd.f32 %v6156_v41, %v3560_v30 }
 0x2f8   : > { %v6267_v23 = vpop.f32.mrf.mxu0  ;;  %v3263_v42 = vadd.f32 %v3262_v4, %v5950_v59  ;;  %v3629_v4 = vmax.f32 %v6370_v21, 0.0 }
 0x2f9   : > { %v3431_v40 = vadd.f32 %v6163_v20, %v3342_v24  ;;  %v3657_v20 = vadd.f32 %v3656_v52, %v3626_v47  ;;  %v3628_v27 = vmax.f32 %v6360_v6, 0.0 }
 0x2fa   : > { %v3438_v11 = vpop.f32.mrf.mxu3 }
 0x2fb   : > { %v3520_v14 = vadd.f32 %v6172_v16, %v3431_v40  ;;  %v3658_v59 = vadd.f32 %v3657_v20, %v3627_v48 }
 0x2fd   : > { %v3659_v16 = vadd.f32 %v3658_v59, %v3628_v27  ;;  %v3566_v29 = vmul.f32 %v6147_v38, %v3520_v14 }
 0x2fe   : > { %v6247_v58 = vpop.f32.mrf.mxu2 }
 0x2ff   : > { %v3345_v51 = vadd.f32 %v6247_v58, %v3256_v60  ;;  %v3563_v58 = vmul.f32 %v6147_v38, %v3513_v35  ;;  %v3565_v60 = vmul.f32 %v6147_v38, %v3518_v3  ;;  %v6397_v35 = vadd.f32 %v6156_v41, %v3564_v19 }
 0x300   : > { %v6326_v62 = vpop.f32.mrf.mxu0 }
 0x301   : > { %v3434_v39 = vadd.f32 %v6209_v50, %v3345_v51  ;;  %v3265_v50 = vpop.f32.mrf.mxu1  ;;  %v3660_v51 = vadd.f32 %v3659_v16, %v3629_v4 }
 0x302   : > { %v3440_v12 = vpop.f32.mrf.mxu3  ;;  %v3266_v33 = vadd.f32 %v3265_v50, %v5963_v1 }
 0x303   : > { %v3523_v24 = vadd.f32 %v6219_v36, %v3434_v39  ;;  %v6405_v36 = vadd.f32 %v6156_v41, %v3565_v60  ;;  %v6615_v60 = vld [vmem:[#allocation4_spill] sm:$0xff] }
 0x305   : > { %v3633_v1 = vmax.f32 %v6405_v36, 0.0 }
 0x306   : > { %v3346_v0 = vpop.f32.mrf.mxu2 }
 0x307   : > { %v3347_v55 = vadd.f32 %v3346_v0, %v3258_v53  ;;  %v6380_v0 = vadd.f32 %v6156_v41, %v3562_v37 }
 0x308   : > { %v3529_v30 = vpop.f32.mrf.mxu0 }
 0x309   : > { %v3436_v43 = vadd.f32 %v6257_v18, %v3347_v55  ;;  %v3630_v18 = vmax.f32 %v6380_v0, 0.0  ;;  %v3267_v19 = vpop.f32.mrf.mxu1 }
 0x30b   : > { %v3525_v5 = vadd.f32 %v6267_v23, %v3436_v43  ;;  %v3661_v40 = vadd.f32 %v3660_v51, %v3630_v18  ;;  %v3632_v23 = vmax.f32 %v6397_v35, 0.0 }
 0x30d   : > { %v3568_v3 = vmul.f32 %v6147_v38, %v3525_v5  ;;  %v5094_v5 = vmov 256.0  }
 0x30e   : > { %v3349_v10 = vpop.f32.mrf.mxu2  ;;  %5077 = vrcp.f32 %v5094_v5 }
 0x30f   : > { %v3350_v13 = vadd.f32 %v3349_v10, %v3261_v15  ;;  %v6389_v10 = vadd.f32 %v6156_v41, %v3563_v58  ;;  %v3443_v15 = vpop.f32.mrf.mxu3  ;;  %v6414_v58 = vadd.f32 %v6156_v41, %v3566_v29 }
 0x311   : > { %v3439_v26 = vadd.f32 %v3438_v11, %v3350_v13  ;;  %v3631_v37 = vmax.f32 %v6389_v10, 0.0  ;;  %v3567_v11 = vmul.f32 %v6147_v38, %v3523_v24  ;;  %v3634_v43 = vmax.f32 %v6414_v58, 0.0 }
 0x312   : > { %v3268_v24 = vadd.f32 %v3267_v19, %v6615_v60 }
 0x313   : > { %v3528_v52 = vadd.f32 %v6326_v62, %v3439_v26  ;;  %v3532_v62 = vpop.f32.mrf.mxu0  ;;  %v6421_v13 = vadd.f32 %v6156_v41, %v3567_v11 }
 0x315   : > { %v3569_v20 = vmul.f32 %v6147_v38, %v3528_v52  ;;  %v3635_v26 = vmax.f32 %v6421_v13, 0.0 }
 0x316   : > { %v3351_v17 = vpop.f32.mrf.mxu2 }
 0x317   : > { %v3352_v2 = vadd.f32 %v3351_v17, %v3263_v42  ;;  %v3662_v42 = vadd.f32 %v3661_v40, %v3631_v37  ;;  %v6436_v16 = vadd.f32 %v6156_v41, %v3569_v20  ;;  %v3445_v40 = vpop.f32.mrf.mxu3 }
 0x319   : > { %v3441_v53 = vadd.f32 %v3440_v12, %v3352_v2  ;;  %v3663_v14 = vadd.f32 %v3662_v42, %v3632_v23  ;;  %v5078_v42 = vpop.eup %5077 }
 0x31a   : > { %vm3683_vm1 = vweird.f32 %v5078_v42 }
 0x31b   : > { %v3530_v12 = vadd.f32 %v3529_v30, %v3441_v53  ;;  %v6428_v30 = vadd.f32 %v6156_v41, %v3568_v3  ;;  %v3664_v59 = vadd.f32 %v3663_v14, %v3633_v1 }
 0x31d   : > { %v3570_v50 = vmul.f32 %v6147_v38, %v3530_v12  ;;  %v3665_v51 = vadd.f32 %v3664_v59, %v3634_v43  ;;  %v3636_v11 = vmax.f32 %v6428_v30, 0.0 }
 0x31e   : > { %v3354_v55 = vpop.f32.mrf.mxu2 }
 0x31f   : > { %v3355_v39 = vadd.f32 %v3354_v55, %v3266_v33  ;;  %v6443_v33 = vadd.f32 %v6156_v41, %v3570_v50  ;;  %v3637_v55 = vmax.f32 %v6436_v16, 0.0 }
 0x321   : > { %v3444_v17 = vadd.f32 %v3443_v15, %v3355_v39  ;;  %v3666_v15 = vadd.f32 %v3665_v51, %v3635_v26  ;;  %v3534_v39 = vpop.f32.mrf.mxu0  ;;  %v3638_v20 = vmax.f32 %v6443_v33, 0.0 }
 0x323   : > { %v3533_v2 = vadd.f32 %v3532_v62, %v3444_v17  ;;  %v3667_v62 = vadd.f32 %v3666_v15, %v3636_v11 }
 0x325   : > { %v3571_v29 = vmul.f32 %v6147_v38, %v3533_v2  ;;  %v3668_v17 = vadd.f32 %v3667_v62, %v3637_v55  ;;  %v3679_v2 = vmul.f32 256.0, %v5078_v42 }
 0x326   : > { %v3356_v53 = vpop.f32.mrf.mxu2 }
 0x327   : > { %v3357_v52 = vadd.f32 %v3356_v53, %v3268_v24  ;;  %v6449_v3 = vadd.f32 %v6156_v41, %v3571_v29  ;;  %v3669_v59 = vadd.f32 %v3668_v17, %v3638_v20  ;;  %v3680_v5 = vsub.f32 1.0, %v3679_v2 }
 0x329   : > { %v3446_v12 = vadd.f32 %v3445_v40, %v3357_v52  ;;  %v3639_v14 = vmax.f32 %v6449_v3, 0.0  ;;  %v3681_v52 = vmul.f32 %v5078_v42, %v3680_v5 }
 0x32b   : > { %v3535_v19 = vadd.f32 %v3534_v39, %v3446_v12  ;;  %v3670_v24 = vadd.f32 %v3669_v59, %v3639_v14  ;;  %v3682_v15 = vadd.f32 %v5078_v42, %v3681_v52  ;;  %v3766_v59 = vld [vmem:[%s6586_s6] sm:$0x1] }
 0x32d   : > { %v3572_v50 = vmul.f32 %v6147_v38, %v3535_v19  ;;  %v3684_v62 = vsel %vm3683_vm1, %v5078_v42, %v3682_v15 }
 0x32f   : > { %v6461_v60 = vadd.f32 %v6156_v41, %v3572_v50  ;;  %v3764_v50 = vld [vmem:[%s6585_s5] sm:$0x1] }
 0x331   : > { %v3640_v29 = vmax.f32 %v6461_v60, 0.0 }
 0x333   : > { %v3671_v53 = vadd.f32 %v3670_v24, %v3640_v29 }
 0x335   : > { %v3672_v51 = vrot.slane %v3671_v53, 4 }
 0x337   : > { %v3673_v40 = vadd.f32 %v3672_v51, %v3671_v53 }
 0x339   : > { %v3674_v38 = vrot.slane %v3673_v40, 2 }
 0x33b   : > { %v3675_v12 = vadd.f32 %v3674_v38, %v3673_v40 }
 0x33d   : > { %v3676_v39 = vrot.slane %v3675_v12, 1 }
 0x33f   : > { %v3677_v41 = vadd.f32 %v3676_v39, %v3675_v12 }
 0x341   : > { %v3685_v19 = vmul.f32 %v3684_v62, %v3677_v41 }
 0x343   : > { %v3686_v17 = vpack.c.bf16 %v3685_v19, %v3685_v19 }
 0x345   : > { %3759 = vmatmul.bf16.vlgmr.msrb.gmra.mxu1 %v3686_v17 }
 0x3c2   : > { %v3760_v2 = vpop.f32.mrf.mxu1 }
 0x3c3   : > { %v3765_v24 = vmul.f32 %v3764_v50, %v3760_v2 }
 0x3c5   : > { %v3767_v5 = vadd.f32 %v3766_v59, %v3765_v24  ;;  %v6616_v59 = vld [vmem:[#allocation6_spill] sm:$0xff] }
 0x3c6   : > { %v6617_v24 = vmax.f32 %v6616_v59, 0.0  ;;  %v6627_v59 = vld [vmem:[#allocation10_spill] sm:$0xff] }
 0x3c7   : > { %v4812_v53 = vmul.f32 -1.442695, %v3767_v5 }
 0x3c9   : > { %5079 = vpow2.f32 %v4812_v53  ;;  %v6618_v53 = vld [vmem:[#allocation5_spill] sm:$0xff] }
 0x3ca   : > { %v3762_v51 = vpop.f32.mrf.mxu1 }
 0x3cb   : > { %v6619_v51 = vmax.f32 %v6618_v53, 0.0 }
 0x3cf   : > { %v5080_v52 = vpop.eup %5079 }
 0x3d0   : > { %v3771_v42 = vadd.f32 1.0, %v5080_v52 }
 0x3d2   : > { %5081 = vrcp.f32 %v3771_v42  ;;  %v3783_v12 = vand.u32 2147483648, %v3771_v42  ;;  %v3781_v62 = vand.u32 2147483647, %v3771_v42  ;;  %vm3777_vm3 = vweird.f32 %v3771_v42 }
 0x3d4   : > { %v3784_v19 = vor.u32 1.1754944e-38, %v3783_v12  ;;  %vm3782_vm5 = vcmp.eq.f32.partialorder %v3781_v62, 8.507059e+37 }
 0x3d8   : > { %v5082_v40 = vpop.eup %5081 }
 0x3d9   : > { %v3773_v38 = vmul.f32 %v5082_v40, %v3771_v42  ;;  %vm3778_vm2 = vweird.f32 %v5082_v40  ;;  %v6620_v42 = vld [vmem:[#allocation7_spill] sm:$0xff] }
 0x3da   : > { %vm3779_vm4 = vmor %vm3777_vm3, %vm3778_vm2 }
 0x3db   : > { %v3774_v15 = vsub.f32 1.0, %v3773_v38 }
 0x3dd   : > { %v3775_v39 = vmul.f32 %v5082_v40, %v3774_v15  ;;  %v6622_v15 = vmax.f32 %v6186_v44, 0.0 }
 0x3df   : > { %v3776_v41 = vadd.f32 %v5082_v40, %v3775_v39  ;;  %v6623_v39 = vld [vmem:[#allocation8_spill] sm:$0xff] }
 0x3e0   : > { %v6624_v62 = vmax.f32 %v6623_v39, 0.0 }
 0x3e1   : > { %v3780_v17 = vsel %vm3779_vm4, %v5082_v40, %v3776_v41  ;;  %v6621_v40 = vmax.f32 %v6620_v42, 0.0 }
 0x3e2   : > { %v3785_v50 = vsel %vm3782_vm5, %v3784_v19, %v3780_v17  ;;  %v6625_v19 = vld [vmem:[#allocation9_spill] sm:$0xff] }
 0x3e3   : > { %v3787_v2 = vperm.slane %v3785_v50, 0  ;;  %v6626_v17 = vmax.f32 %v6625_v19, 0.0 }
 0x3e5   : > { %v3788_v5 = vmul.f32 %v3787_v2, %v6617_v24  ;;  %v3789_v52 = vmul.f32 %v3787_v2, %v6619_v51  ;;  %v3790_v38 = vmul.f32 %v3787_v2, %v6621_v40  ;;  %v3791_v12 = vmul.f32 %v3787_v2, %v6622_v15  ;;  %v6629_v51 = vld [vmem:[#allocation11_spill] sm:$0xff]  ;;  %v6631_v40 = vld [vmem:[#allocation12_spill] sm:$0xff] }
 0x3e6   : > { %v3792_v41 = vmul.f32 %v3787_v2, %v6624_v62  ;;  %v3793_v50 = vmul.f32 %v3787_v2, %v6626_v17  ;;  %v6628_v24 = vmax.f32 %v6627_v59, 0.0  ;;  %v6630_v42 = vmax.f32 %v6629_v51, 0.0 }
 0x3e7   : > { %3820 = vst [vmem:[%s6479_s23] sm:$0xff] %v3788_v5  ;;  %v6632_v15 = vmax.f32 %v6631_v40, 0.0  ;;  %v6633_v5 = vmax.f32 %v6243_v45, 0.0  ;;  %v3801_v45 = vmul.f32 %v3787_v2, %v3622_v34  ;;  %v3802_v49 = vmul.f32 %v3787_v2, %v3623_v28 }
 0x3e8   : > { %3821 = vst [vmem:[%s6479_s23 + $0x8] sm:$0xff] %v3789_v52  ;;  %v3794_v53 = vmul.f32 %v3787_v2, %v6628_v24  ;;  %v3795_v44 = vmul.f32 %v3787_v2, %v6630_v42  ;;  %v3798_v52 = vmul.f32 %v3787_v2, %v3619_v9  ;;  %v3804_v56 = vmul.f32 %v3787_v2, %v3625_v8 }
 0x3e9   : > { %3822 = vst [vmem:[%s6479_s23 + $0x10] sm:$0xff] %v3790_v38  ;;  %v3796_v39 = vmul.f32 %v3787_v2, %v6632_v15  ;;  %v3797_v62 = vmul.f32 %v3787_v2, %v6633_v5  ;;  %v3799_v38 = vmul.f32 %v3787_v2, %v3620_v61  ;;  %v3803_v61 = vmul.f32 %v3787_v2, %v3624_v63 }
 0x3ea   : > { %3823 = vst [vmem:[%s6479_s23 + $0x18] sm:$0xff] %v3791_v12  ;;  %v3800_v12 = vmul.f32 %v3787_v2, %v3621_v46  ;;  %v3805_v31 = vmul.f32 %v3787_v2, %v3626_v47  ;;  %v3806_v25 = vmul.f32 %v3787_v2, %v3627_v48  ;;  %v3807_v9 = vmul.f32 %v3787_v2, %v3628_v27 }
 0x3eb   : > { %3824 = vst [vmem:[%s6479_s23 + $0x20] sm:$0xff] %v3792_v41  ;;  %v3808_v46 = vmul.f32 %v3787_v2, %v3629_v4  ;;  %v3809_v54 = vmul.f32 %v3787_v2, %v3630_v18  ;;  %v3810_v34 = vmul.f32 %v3787_v2, %v3631_v37  ;;  %v3811_v57 = vmul.f32 %v3787_v2, %v3632_v23 }
 0x3ec   : > { %3825 = vst [vmem:[%s6479_s23 + $0x28] sm:$0xff] %v3793_v50  ;;  %v3812_v28 = vmul.f32 %v3787_v2, %v3633_v1  ;;  %v3813_v7 = vmul.f32 %v3787_v2, %v3634_v43  ;;  %v3814_v63 = vmul.f32 %v3787_v2, %v3635_v26  ;;  %v3815_v32 = vmul.f32 %v3787_v2, %v3636_v11 }
 0x3ed   : > { %3826 = vst [vmem:[%s6479_s23 + $0x30] sm:$0xff] %v3794_v53  ;;  %v3816_v8 = vmul.f32 %v3787_v2, %v3637_v55  ;;  %v3817_v22 = vmul.f32 %v3787_v2, %v3638_v20  ;;  %v3818_v47 = vmul.f32 %v3787_v2, %v3639_v14  ;;  %v3819_v6 = vmul.f32 %v3787_v2, %v3640_v29 }
 0x3ee   : > { %3827 = vst [vmem:[%s6479_s23 + $0x38] sm:$0xff] %v3795_v44 }
 0x3ef   : > { %3828 = vst [vmem:[%s6479_s23 + $0x40] sm:$0xff] %v3796_v39 }
 0x3f0   : > { %3829 = vst [vmem:[%s6479_s23 + $0x48] sm:$0xff] %v3797_v62 }
 0x3f1   : > { %3830 = vst [vmem:[%s6479_s23 + $0x50] sm:$0xff] %v3798_v52 }
 0x3f2   : > { %3831 = vst [vmem:[%s6479_s23 + $0x58] sm:$0xff] %v3799_v38 }
 0x3f3   : > { %3832 = vst [vmem:[%s6479_s23 + $0x60] sm:$0xff] %v3800_v12 }
 0x3f4   : > { %3833 = vst [vmem:[%s6479_s23 + $0x68] sm:$0xff] %v3801_v45 }
 0x3f5   : > { %3834 = vst [vmem:[%s6479_s23 + $0x70] sm:$0xff] %v3802_v49 }
 0x3f6   : > { %3835 = vst [vmem:[%s6479_s23 + $0x78] sm:$0xff] %v3803_v61 }
 0x3f7   : > { %3836 = vst [vmem:[%s6479_s23 + $0x80] sm:$0xff] %v3804_v56 }
 0x3f8   : > { %3837 = vst [vmem:[%s6479_s23 + $0x88] sm:$0xff] %v3805_v31 }
 0x3f9   : > { %3838 = vst [vmem:[%s6479_s23 + $0x90] sm:$0xff] %v3806_v25 }
 0x3fa   : > { %3839 = vst [vmem:[%s6479_s23 + $0x98] sm:$0xff] %v3807_v9 }
 0x3fb   : > { %3840 = vst [vmem:[%s6479_s23 + $0xa0] sm:$0xff] %v3808_v46 }
 0x3fc   : > { %3841 = vst [vmem:[%s6479_s23 + $0xa8] sm:$0xff] %v3809_v54 }
 0x3fd   : > { %3842 = vst [vmem:[%s6479_s23 + $0xb0] sm:$0xff] %v3810_v34 }
 0x3fe   : > { %3843 = vst [vmem:[%s6479_s23 + $0xb8] sm:$0xff] %v3811_v57 }
 0x3ff   : > { %3844 = vst [vmem:[%s6479_s23 + $0xc0] sm:$0xff] %v3812_v28 }
 0x400   : > { %3845 = vst [vmem:[%s6479_s23 + $0xc8] sm:$0xff] %v3813_v7 }
 0x401   : > { %3846 = vst [vmem:[%s6479_s23 + $0xd0] sm:$0xff] %v3814_v63 }
 0x402   : > { %3847 = vst [vmem:[%s6479_s23 + $0xd8] sm:$0xff] %v3815_v32 }
 0x403   : > { %3848 = vst [vmem:[%s6479_s23 + $0xe0] sm:$0xff] %v3816_v8 }
 0x404   : > { %3849 = vst [vmem:[%s6479_s23 + $0xe8] sm:$0xff] %v3817_v22 }
 0x405   : > { %3850 = vst [vmem:[%s6479_s23 + $0xf0] sm:$0xff] %v3818_v47 }
 0x406   : > { %3851 = vst [vmem:[%s6479_s23 + $0xf8] sm:$0xff] %v3819_v6 }
 0x407 PF: > { %s17_s24 = sadd.s32 1, %s5090_s24  }
 0x408   : > { %p14_p4 = scmp.ge.s32.totalorder %s17_s24, 4  }
 0x40a   :  { %16 = sbr.rel (!%p14_p4) target bundleno = 1 (0x1), region = 80 }

</bundles_post_ra>
